<compile_context>
chip_gen: v7x
topology: tpu7x:2x2x1
jax: 0.10.0
libtpu: 0.0.40
codegen_flags: <defaults>
</compile_context>

<pallas_src>
import jax
import jax.numpy as jnp
from jax.experimental import pallas as pl
from jax.experimental.pallas import tpu as pltpu

INPUT_SIZE = 4
HIDDEN = 32
LATENT = 16
NUM_LAYERS = 2
SEQ_LEN = 8
BATCH = 2

_W_COLS = 6 * HIDDEN  # 192 — common lane width of the packed weight slab

# Row offsets of each weight section inside the single packed slab.  All offsets are
# multiples of 8 so every in-kernel slice starts on a sublane-tile boundary.
_R_W0 = 0                        # (Din, 6H)  enc-l0 input weights  [Wf_rzn | Wb_rzn]
_R_HH0 = _R_W0 + 8               # (2H, 6H)   enc-l0 fused hidden weights
_R_W1 = _R_HH0 + 2 * HIDDEN      # (2H, 6H)   enc-l1 input weights  [Wf_rzn | Wb_rzn]
_R_HH1 = _R_W1 + 2 * HIDDEN      # (2H, 6H)   enc-l1 fused hidden weights
_R_MV = _R_HH1 + 2 * HIDDEN      # (4H, 2Z)   hid2mean | hid2var
_R_LAT = _R_MV + 4 * HIDDEN      # (Z, 2H)    latent_hid
_R_IND = _R_LAT + LATENT         # (Z, 6H)    decoder GRU input weights (gate-grouped)
_R_HHD = _R_IND + LATENT         # (2H, 6H)   decoder fused hidden weights
_R_OUT = _R_HHD + 2 * HIDDEN     # (2H, Din)  output linear
_W_ROWS = _R_OUT + 2 * HIDDEN    # 488

# Bias-slab row indices (one (1, 6H) row per bias, zero-padded on the right).
_B_G0, _B_N0, _B_G1, _B_N1, _B_MV, _B_LAT, _B_GD, _B_ND, _B_OUT = range(9)

_VMEM = pl.BlockSpec(memory_space=pltpu.MemorySpace.VMEM)


# ---------------------------------------------------------------------------
# Fused kernel
# ---------------------------------------------------------------------------

def _sigmoid(x):
  # sigma(x) == 0.5*tanh(0.5*x) + 0.5 : one EUP op (no exp + exact divide) on the
  # fully serial recurrence's critical path.
  return 0.5 * jnp.tanh(0.5 * x) + 0.5


def vae_kernel(seq_ref, eps_ref, w_ref, b_ref, out_ref):
  f32 = jnp.float32
  B, Z = eps_ref.shape
  H = HIDDEN
  T = SEQ_LEN
  Din = INPUT_SIZE

  def bi_gru(gi_fn, whh, bhn_b, h2, collect):
    """Fused bidirectional GRU, fully unrolled; per-step outputs stay in vregs.

    Column layout of gi/gh: [r_f, r_b, z_f, z_b, n_f, n_b]; h2 = [h_fwd | h_bwd].
    gi_fn(t) -> (B, 6H) with the fwd half from input t and the bwd half from input
    T-1-t; bih and bhh_{r,z} are folded in; bhn_b is bhh_n broadcast to (B, 2H)
    (hoisted out of the loop).
    """
    outs_f = [None] * T
    outs_b = [None] * T
    for t in range(T):
      gi = gi_fn(t)                                              # (B, 6H)
      gh = jnp.dot(h2, whh, preferred_element_type=f32)          # (B, 6H) 1 MXU op/step
      rz = _sigmoid(gi[:, :4 * H] + gh[:, :4 * H])               # r & z, both dirs
      r, zg = rz[:, :2 * H], rz[:, 2 * H:]
      n = jnp.tanh(gi[:, 4 * H:] + r * (gh[:, 4 * H:] + bhn_b))  # (B, 2H)
      h2 = n + zg * (h2 - n)                                     # == (1-z)*n + z*h
      if collect:
        outs_f[t] = h2[:, :H]            # fwd hidden at time t
        outs_b[T - 1 - t] = h2[:, H:]    # bwd hidden at time T-1-t
    return h2, outs_f, outs_b

  def proj_bidir(y_list, wf3, wb3, b6_row):
    """Hoisted input projection for both directions of one bi-GRU layer.

    y_list[t] is the (B, din_l) input at time t.  Two half-width dense matmuls (no
    zero blocks, no duplicated reversed activation slab) followed by a single lane
    interleave into the gate-grouped [r_f,r_b,z_f,z_b,n_f,n_b] layout.
    """
    y_fwd = jnp.concatenate(y_list, axis=0)                  # (T*B, din_l)  time order
    y_bwd = jnp.concatenate(y_list[::-1], axis=0)            # (T*B, din_l)  reversed
    pf = jnp.dot(y_fwd, wf3, preferred_element_type=f32)     # (T*B, 3H) [r,z,n]_f
    pb = jnp.dot(y_bwd, wb3, preferred_element_type=f32)     # (T*B, 3H) [r,z,n]_b
    gi = jnp.concatenate(
        [pf[:, 0:H], pb[:, 0:H],
         pf[:, H:2 * H], pb[:, H:2 * H],
         pf[:, 2 * H:3 * H], pb[:, 2 * H:3 * H]], axis=1)    # (T*B, 6H)
    return gi + b6_row                                       # (1, 6H) broadcast

  # ----- Encoder layer 0 ------------------------------------------------------
  seq = seq_ref[...]                                         # (B, T*Din)
  x_list = [seq[:, t * Din:(t + 1) * Din] for t in range(T)]
  gi0 = proj_bidir(x_list,
                   w_ref[_R_W0:_R_W0 + Din, 0:3 * H],
                   w_ref[_R_W0:_R_W0 + Din, 3 * H:6 * H],
                   b_ref[_B_G0:_B_G0 + 1, :])
  bhn0 = jnp.broadcast_to(b_ref[_B_N0:_B_N0 + 1, 0:2 * H], (B, 2 * H))
  h_zero = jnp.zeros((B, 2 * H), f32)
  h2_l0, f0, b0 = bi_gru(lambda t: gi0[t * B:(t + 1) * B, :],
                         w_ref[_R_HH0:_R_HH0 + 2 * H, :], bhn0, h_zero, True)

  # ----- Encoder layer 1 ------------------------------------------------------
  y1_list = [jnp.concatenate([f0[t], b0[t]], axis=1) for t in range(T)]   # (B, 2H)
  gi1 = proj_bidir(y1_list,
                   w_ref[_R_W1:_R_W1 + 2 * H, 0:3 * H],
                   w_ref[_R_W1:_R_W1 + 2 * H, 3 * H:6 * H],
                   b_ref[_B_G1:_B_G1 + 1, :])
  bhn1 = jnp.broadcast_to(b_ref[_B_N1:_B_N1 + 1, 0:2 * H], (B, 2 * H))
  h2_l1, _, _ = bi_gru(lambda t: gi1[t * B:(t + 1) * B, :],
                       w_ref[_R_HH1:_R_HH1 + 2 * H, :], bhn1, h_zero, False)

  # ----- Lambda (reparameterization) ------------------------------------------
  # hid = cat(h[0..3]) = [h2_l0 | h2_l1]; hid2mean & hid2var fused into (4H, 2Z),
  # evaluated as two dots to avoid an in-kernel concat of the encoder finals.
  mv = (jnp.dot(h2_l0, w_ref[_R_MV:_R_MV + 2 * H, 0:2 * Z],
                preferred_element_type=f32)
        + jnp.dot(h2_l1, w_ref[_R_MV + 2 * H:_R_MV + 4 * H, 0:2 * Z],
                  preferred_element_type=f32)
        + b_ref[_B_MV:_B_MV + 1, 0:2 * Z])                   # (B, 2Z)
  mean = mv[:, :Z]
  logvar = mv[:, Z:2 * Z]
  z = eps_ref[...] * jnp.exp(0.5 * logvar) + mean

  # ----- Decoder ----------------------------------------------------------------
  # latent_hid(z).view(2, B, H): faithful torch row-major .view, done on register
  # slices (no scratch, no row-copy loop).
  zhid = (jnp.dot(z, w_ref[_R_LAT:_R_LAT + Z, 0:2 * H], preferred_element_type=f32)
          + b_ref[_B_LAT:_B_LAT + 1, 0:2 * H])               # (B, 2H)
  rows = []
  for b in range(B):
    pieces = []
    for d in range(2):
      k = (d * B + b) * H
      r_, c_ = k // (2 * H), k % (2 * H)
      pieces.append(zhid[r_:r_ + 1, c_:c_ + H])
    rows.append(jnp.concatenate(pieces, axis=1))
  h2_d0 = jnp.concatenate(rows, axis=0)                      # (B, 2H)

  # Decoder GRU input is z broadcast over T -> time-invariant projection, computed ONCE.
  gi_dec = (jnp.dot(z, w_ref[_R_IND:_R_IND + Z, :], preferred_element_type=f32)
            + b_ref[_B_GD:_B_GD + 1, :])                     # (B, 6H)
  bhnd = jnp.broadcast_to(b_ref[_B_ND:_B_ND + 1, 0:2 * H], (B, 2 * H))
  _, fd, bd = bi_gru(lambda t: gi_dec,
                     w_ref[_R_HHD:_R_HHD + 2 * H, :], bhnd, h2_d0, True)

  # ----- Output linear, emitted directly in (B, T*Din) order --------------------
  wout = w_ref[_R_OUT:_R_OUT + 2 * H, 0:Din]                 # (2H, Din), loaded once
  bout = b_ref[_B_OUT:_B_OUT + 1, 0:Din]
  out_cols = []
  for t in range(T):
    dec_t = jnp.concatenate([fd[t], bd[t]], axis=1)          # (B, 2H)
    out_cols.append(jnp.dot(dec_t, wout, preferred_element_type=f32) + bout)
  out_flat = jnp.concatenate(out_cols, axis=1)               # (B, T*Din)

  # Single merged output slab [out | z | mean | logvar] -> one writeback DMA.
  out_ref[...] = jnp.concatenate([out_flat, z, mean, logvar], axis=1)


# ---------------------------------------------------------------------------
# Wrapper: one pallas_call, only free slices/reshape around it.
# ---------------------------------------------------------------------------

def vae_forward(seq, eps, wslab, bslab):
  B, T, Din = seq.shape
  Z = eps.shape[1]
  # (B,T,Din) -> (B, T*Din) is a contiguous reshape (bitcast; no copy/launch).
  res = pl.pallas_call(
      vae_kernel,
      out_shape=jax.ShapeDtypeStruct((B, T * Din + 3 * Z), jnp.float32),
      in_specs=[_VMEM] * 4,
      out_specs=_VMEM,
  )(seq.reshape(B, T * Din), eps, wslab, bslab)
  td = T * Din
  out = res[:, :td].reshape(B, T, Din)
  z = res[:, td:td + Z]
  mean = res[:, td + Z:td + 2 * Z]
  logvar = res[:, td + 2 * Z:]
  return out, z, mean, logvar


# ---------------------------------------------------------------------------
# Parameter init (PyTorch layout) + packing into the two fused slabs
# ---------------------------------------------------------------------------

def init_params(key):
  keys = iter(jax.random.split(key, 64))

  def u(shape, bound):
    return jax.random.uniform(next(keys), shape, jnp.float32, -bound, bound)

  k_h = 1.0 / float(HIDDEN) ** 0.5

  def gru_dir(din):
    return dict(wih=u((3 * HIDDEN, din), k_h),      # rows [r, z, n] (PyTorch)
                whh=u((3 * HIDDEN, HIDDEN), k_h),
                bih=u((3 * HIDDEN,), k_h),
                bhh=u((3 * HIDDEN,), k_h))

  enc = {}
  for l in range(NUM_LAYERS):
    din = INPUT_SIZE if l == 0 else 2 * HIDDEN
    for d in range(2):
      enc[(l, d)] = gru_dir(din)

  dec_gru = {(0, d): gru_dir(LATENT) for d in range(2)}

  def linear(din, dout):
    b = 1.0 / float(din) ** 0.5
    return u((dout, din), b), u((dout,), b)

  hid2mean_w, hid2mean_b = linear(4 * HIDDEN, LATENT)
  hid2var_w, hid2var_b = linear(4 * HIDDEN, LATENT)
  latent_hid_w, latent_hid_b = linear(LATENT, 2 * HIDDEN)
  out_w, out_b = linear(2 * HIDDEN, INPUT_SIZE)

  return dict(enc=enc,
              hid2mean_w=hid2mean_w, hid2mean_b=hid2mean_b,
              hid2var_w=hid2var_w, hid2var_b=hid2var_b,
              dec=dict(gru=dec_gru,
                       latent_hid_w=latent_hid_w, latent_hid_b=latent_hid_b,
                       out_w=out_w, out_b=out_b))


def _split3(w, H):
  return w[0:H], w[H:2 * H], w[2 * H:3 * H]


def pack_params(p):
  """Pack all PyTorch-layout parameters into one weight slab + one bias slab."""
  H, Z, Din = HIDDEN, LATENT, INPUT_SIZE
  C = _W_COLS

  def fused_hh(pf, pb):
    hfr, hfz, hfn = _split3(pf["whh"], H)
    hbr, hbz, hbn = _split3(pb["whh"], H)
    Zh = jnp.zeros((H, H), jnp.float32)
    return jnp.concatenate([
        jnp.concatenate([hfr.T, Zh, hfz.T, Zh, hfn.T, Zh], axis=1),
        jnp.concatenate([Zh, hbr.T, Zh, hbz.T, Zh, hbn.T], axis=1)], axis=0)

  def gate_bias(pf, pb):
    bif, bhf = pf["bih"], pf["bhh"]
    bib, bhb = pb["bih"], pb["bhh"]
    # bih (all gates) + bhh_{r,z} folded into the input-projection bias; bhh_n is
    # applied separately inside n = tanh(gi_n + r*(gh_n + bhh_n)).
    return jnp.concatenate([
        bif[0:H] + bhf[0:H], bib[0:H] + bhb[0:H],
        bif[H:2 * H] + bhf[H:2 * H], bib[H:2 * H] + bhb[H:2 * H],
        bif[2 * H:], bib[2 * H:]])[None, :]

  def n_bias(pf, pb):
    return jnp.concatenate([pf["bhh"][2 * H:], pb["bhh"][2 * H:]])[None, :]

  e00, e01 = p["enc"][(0, 0)], p["enc"][(0, 1)]
  e10, e11 = p["enc"][(1, 0)], p["enc"][(1, 1)]
  d0, d1 = p["dec"]["gru"][(0, 0)], p["dec"]["gru"][(0, 1)]

  w0fb = jnp.concatenate([e00["wih"].T, e01["wih"].T], axis=1)            # (Din, 6H)
  w1fb = jnp.concatenate([e10["wih"].T, e11["wih"].T], axis=1)            # (2H, 6H)
  wmv = jnp.concatenate([p["hid2mean_w"].T, p["hid2var_w"].T], axis=1)    # (4H, 2Z)
  wlat = p["dec"]["latent_hid_w"].T                                       # (Z, 2H)
  dfr, dfz, dfn = _split3(d0["wih"], H)
  dbr, dbz, dbn = _split3(d1["wih"], H)
  wind = jnp.concatenate([dfr.T, dbr.T, dfz.T, dbz.T, dfn.T, dbn.T], axis=1)  # (Z, 6H)
  wout = p["dec"]["out_w"].T                                              # (2H, Din)

  def pad(m, rows):
    m = jnp.asarray(m, jnp.float32)
    return jnp.pad(m, ((0, rows - m.shape[0]), (0, C - m.shape[1])))

  wslab = jnp.concatenate([
      pad(w0fb, _R_HH0 - _R_W0), pad(fused_hh(e00, e01), 2 * H),
      pad(w1fb, 2 * H), pad(fused_hh(e10, e11), 2 * H),
      pad(wmv, 4 * H), pad(wlat, Z), pad(wind, Z),
      pad(fused_hh(d0, d1), 2 * H), pad(wout, 2 * H)], axis=0)
  assert wslab.shape == (_W_ROWS, C)

  brows = [gate_bias(e00, e01), n_bias(e00, e01),
           gate_bias(e10, e11), n_bias(e10, e11),
           jnp.concatenate([p["hid2mean_b"], p["hid2var_b"]])[None, :],
           p["dec"]["latent_hid_b"][None, :],
           gate_bias(d0, d1), n_bias(d0, d1),
           p["dec"]["out_b"][None, :]]
  bslab = jnp.concatenate(
      [jnp.pad(r, ((0, 0), (0, C - r.shape[1]))) for r in brows], axis=0)
  return wslab, bslab


# ---------------------------------------------------------------------------
# Pure-JAX reference (PyTorch semantics) for correctness checking
# ---------------------------------------------------------------------------

def _ref_gru_dir(x_btd, p, h0, reverse):
  H = HIDDEN
  xs = x_btd[:, ::-1, :] if reverse else x_btd

  def cell(h, x_t):
    gi = x_t @ p["wih"].T + p["bih"]
    gh = h @ p["whh"].T + p["bhh"]
    r = jax.nn.sigmoid(gi[:, :H] + gh[:, :H])
    zg = jax.nn.sigmoid(gi[:, H:2 * H] + gh[:, H:2 * H])
    n = jnp.tanh(gi[:, 2 * H:] + r * gh[:, 2 * H:])
    h = (1.0 - zg) * n + zg * h
    return h, h

  hT, out = jax.lax.scan(cell, h0, jnp.transpose(xs, (1, 0, 2)))
  out = jnp.transpose(out, (1, 0, 2))
  if reverse:
    out = out[:, ::-1, :]
  return out, hT


def ref_forward(seq, eps, p):
  B = seq.shape[0]
  inp = seq
  finals = []
  for l in range(NUM_LAYERS):
    h0 = jnp.zeros((B, HIDDEN), jnp.float32)
    of, hf = _ref_gru_dir(inp, p["enc"][(l, 0)], h0, False)
    ob, hb = _ref_gru_dir(inp, p["enc"][(l, 1)], h0, True)
    inp = jnp.concatenate([of, ob], axis=-1)
    finals += [hf, hb]
  hid = jnp.concatenate(finals, axis=1)
  mean = hid @ p["hid2mean_w"].T + p["hid2mean_b"]
  logvar = hid @ p["hid2var_w"].T + p["hid2var_b"]
  z = eps * jnp.exp(0.5 * logvar) + mean
  zhid = z @ p["dec"]["latent_hid_w"].T + p["dec"]["latent_hid_b"]
  h0d = zhid.reshape(2, B, HIDDEN)
  ins = jnp.broadcast_to(z[:, None, :], (B, SEQ_LEN, LATENT))
  of, _ = _ref_gru_dir(ins, p["dec"]["gru"][(0, 0)], h0d[0], False)
  ob, _ = _ref_gru_dir(ins, p["dec"]["gru"][(0, 1)], h0d[1], True)
  dec = jnp.concatenate([of, ob], axis=-1)
  out = dec @ p["dec"]["out_w"].T + p["dec"]["out_b"]
  return out, z, mean, logvar


if __name__ == "__main__":
  root = jax.random.PRNGKey(0)
  k_params, k_seq, k_eps = jax.random.split(root, 3)

  params = init_params(k_params)
  wslab, bslab = pack_params(params)
  seq = jax.random.normal(k_seq, (BATCH, SEQ_LEN, INPUT_SIZE), jnp.float32)
  eps = jax.random.normal(k_eps, (BATCH, LATENT), jnp.float32)  # reparam noise

  fwd = jax.jit(vae_forward)
  out, z, mean_z, logvar_z = fwd(seq, eps, wslab, bslab)
  jax.block_until_ready((out, z, mean_z, logvar_z))

  assert out.shape == (BATCH, SEQ_LEN, INPUT_SIZE)
  assert z.shape == (BATCH, LATENT)
  assert mean_z.shape == (BATCH, LATENT)
  assert logvar_z.shape == (BATCH, LATENT)
  assert bool(jnp.all(jnp.isfinite(out))) and bool(jnp.all(jnp.isfinite(z)))

  # Numerical check against a pure-JAX reference of the PyTorch module.
  r_out, r_z, r_mean, r_logvar = ref_forward(seq, eps, params)
  for a, b in ((out, r_out), (z, r_z), (mean_z, r_mean), (logvar_z, r_logvar)):
    assert bool(jnp.allclose(a, b, atol=1e-4, rtol=1e-4))

  print("KERNEL_OK")
</pallas_src>

<mosaic_0001>
module attributes {stable_mosaic.version = 11 : i64} {
  func.func @vae_kernel(%arg0: memref<2x32xf32, #tpu.memory_space<vmem>>, %arg1: memref<2x16xf32, #tpu.memory_space<vmem>>, %arg2: memref<488x192xf32, #tpu.memory_space<vmem>>, %arg3: memref<9x192xf32, #tpu.memory_space<vmem>>, %arg4: memref<2x80xf32, #tpu.memory_space<vmem>>) attributes {dimension_semantics = [], scalar_prefetch = 0 : i64, scratch_operands = 0 : i64, tpu.core_type = #tpu.core_type<tc>} {
    %c0 = arith.constant 0 : index
    %c0_0 = arith.constant 0 : index
    %0 = vector.load %arg0[%c0, %c0_0] : memref<2x32xf32, #tpu.memory_space<vmem>>, vector<2x32xf32>
    %1 = vector.extract_strided_slice %0 {offsets = [0, 0], sizes = [2, 4], strides = [1, 1]} : vector<2x32xf32> to vector<2x4xf32>
    %2 = vector.extract_strided_slice %0 {offsets = [0, 4], sizes = [2, 4], strides = [1, 1]} : vector<2x32xf32> to vector<2x4xf32>
    %3 = vector.extract_strided_slice %0 {offsets = [0, 8], sizes = [2, 4], strides = [1, 1]} : vector<2x32xf32> to vector<2x4xf32>
    %4 = vector.extract_strided_slice %0 {offsets = [0, 12], sizes = [2, 4], strides = [1, 1]} : vector<2x32xf32> to vector<2x4xf32>
    %5 = vector.extract_strided_slice %0 {offsets = [0, 16], sizes = [2, 4], strides = [1, 1]} : vector<2x32xf32> to vector<2x4xf32>
    %6 = vector.extract_strided_slice %0 {offsets = [0, 20], sizes = [2, 4], strides = [1, 1]} : vector<2x32xf32> to vector<2x4xf32>
    %7 = vector.extract_strided_slice %0 {offsets = [0, 24], sizes = [2, 4], strides = [1, 1]} : vector<2x32xf32> to vector<2x4xf32>
    %8 = vector.extract_strided_slice %0 {offsets = [0, 28], sizes = [2, 4], strides = [1, 1]} : vector<2x32xf32> to vector<2x4xf32>
    %c0_1 = arith.constant 0 : index
    %c0_2 = arith.constant 0 : index
    %9 = vector.load %arg2[%c0_1, %c0_2] : memref<488x192xf32, #tpu.memory_space<vmem>>, vector<4x96xf32>
    %c0_3 = arith.constant 0 : index
    %c96 = arith.constant 96 : index
    %10 = vector.load %arg2[%c0_3, %c96] : memref<488x192xf32, #tpu.memory_space<vmem>>, vector<4x96xf32>
    %c0_4 = arith.constant 0 : index
    %c0_5 = arith.constant 0 : index
    %11 = vector.load %arg3[%c0_4, %c0_5] : memref<9x192xf32, #tpu.memory_space<vmem>>, vector<1x192xf32>
    %12 = tpu.concatenate %1, %2, %3, %4, %5, %6, %7, %8 in 0 : vector<2x4xf32>, vector<2x4xf32>, vector<2x4xf32>, vector<2x4xf32>, vector<2x4xf32>, vector<2x4xf32>, vector<2x4xf32>, vector<2x4xf32> -> vector<16x4xf32>
    %13 = tpu.concatenate %8, %7, %6, %5, %4, %3, %2, %1 in 0 : vector<2x4xf32>, vector<2x4xf32>, vector<2x4xf32>, vector<2x4xf32>, vector<2x4xf32>, vector<2x4xf32>, vector<2x4xf32>, vector<2x4xf32> -> vector<16x4xf32>
    %cst = arith.constant dense<0.000000e+00> : vector<16x96xf32>
    %14 = tpu.matmul %12, %9, %cst {dimension_numbers = #tpu.dot_dimension_numbers<[1], [0], [0], [1], [0, 0, 1, 1], [], []>} : vector<16x4xf32>, vector<4x96xf32>, vector<16x96xf32> -> vector<16x96xf32>
    %cst_6 = arith.constant dense<0.000000e+00> : vector<16x96xf32>
    %15 = tpu.matmul %13, %10, %cst_6 {dimension_numbers = #tpu.dot_dimension_numbers<[1], [0], [0], [1], [0, 0, 1, 1], [], []>} : vector<16x4xf32>, vector<4x96xf32>, vector<16x96xf32> -> vector<16x96xf32>
    %16 = vector.extract_strided_slice %14 {offsets = [0, 0], sizes = [16, 32], strides = [1, 1]} : vector<16x96xf32> to vector<16x32xf32>
    %17 = vector.extract_strided_slice %15 {offsets = [0, 0], sizes = [16, 32], strides = [1, 1]} : vector<16x96xf32> to vector<16x32xf32>
    %18 = vector.extract_strided_slice %14 {offsets = [0, 32], sizes = [16, 32], strides = [1, 1]} : vector<16x96xf32> to vector<16x32xf32>
    %19 = vector.extract_strided_slice %15 {offsets = [0, 32], sizes = [16, 32], strides = [1, 1]} : vector<16x96xf32> to vector<16x32xf32>
    %20 = vector.extract_strided_slice %14 {offsets = [0, 64], sizes = [16, 32], strides = [1, 1]} : vector<16x96xf32> to vector<16x32xf32>
    %21 = vector.extract_strided_slice %15 {offsets = [0, 64], sizes = [16, 32], strides = [1, 1]} : vector<16x96xf32> to vector<16x32xf32>
    %22 = tpu.concatenate %16, %17, %18, %19, %20, %21 in 1 : vector<16x32xf32>, vector<16x32xf32>, vector<16x32xf32>, vector<16x32xf32>, vector<16x32xf32>, vector<16x32xf32> -> vector<16x192xf32>
    %23 = vector.broadcast %11 : vector<1x192xf32> to vector<16x192xf32>
    %24 = arith.addf %22, %23 : vector<16x192xf32>
    %c1 = arith.constant 1 : index
    %c0_7 = arith.constant 0 : index
    %25 = vector.load %arg3[%c1, %c0_7] : memref<9x192xf32, #tpu.memory_space<vmem>>, vector<1x64xf32>
    %26 = vector.shape_cast %25 : vector<1x64xf32> to vector<1x64xf32>
    %27 = vector.broadcast %26 : vector<1x64xf32> to vector<2x64xf32>
    %cst_8 = arith.constant 0.000000e+00 : f32
    %28 = vector.broadcast %cst_8 : f32 to vector<2x64xf32>
    %c8 = arith.constant 8 : index
    %c0_9 = arith.constant 0 : index
    %29 = vector.load %arg2[%c8, %c0_9] : memref<488x192xf32, #tpu.memory_space<vmem>>, vector<64x192xf32>
    %30 = vector.extract_strided_slice %24 {offsets = [0, 0], sizes = [2, 192], strides = [1, 1]} : vector<16x192xf32> to vector<2x192xf32>
    %cst_10 = arith.constant dense<0.000000e+00> : vector<2x192xf32>
    %31 = tpu.matmul %28, %29, %cst_10 {dimension_numbers = #tpu.dot_dimension_numbers<[1], [0], [0], [1], [0, 0, 1, 1], [], []>} : vector<2x64xf32>, vector<64x192xf32>, vector<2x192xf32> -> vector<2x192xf32>
    %32 = vector.extract_strided_slice %30 {offsets = [0, 0], sizes = [2, 128], strides = [1, 1]} : vector<2x192xf32> to vector<2x128xf32>
    %33 = vector.extract_strided_slice %31 {offsets = [0, 0], sizes = [2, 128], strides = [1, 1]} : vector<2x192xf32> to vector<2x128xf32>
    %34 = arith.addf %32, %33 : vector<2x128xf32>
    %cst_11 = arith.constant 5.000000e-01 : f32
    %35 = vector.broadcast %cst_11 : f32 to vector<2x128xf32>
    %36 = arith.mulf %35, %34 : vector<2x128xf32>
    %37 = math.tanh %36 : vector<2x128xf32>
    %cst_12 = arith.constant 5.000000e-01 : f32
    %38 = vector.broadcast %cst_12 : f32 to vector<2x128xf32>
    %39 = arith.mulf %38, %37 : vector<2x128xf32>
    %cst_13 = arith.constant 5.000000e-01 : f32
    %40 = vector.broadcast %cst_13 : f32 to vector<2x128xf32>
    %41 = arith.addf %39, %40 : vector<2x128xf32>
    %42 = vector.extract_strided_slice %41 {offsets = [0, 0], sizes = [2, 64], strides = [1, 1]} : vector<2x128xf32> to vector<2x64xf32>
    %43 = vector.extract_strided_slice %41 {offsets = [0, 64], sizes = [2, 64], strides = [1, 1]} : vector<2x128xf32> to vector<2x64xf32>
    %44 = vector.extract_strided_slice %30 {offsets = [0, 128], sizes = [2, 64], strides = [1, 1]} : vector<2x192xf32> to vector<2x64xf32>
    %45 = vector.extract_strided_slice %31 {offsets = [0, 128], sizes = [2, 64], strides = [1, 1]} : vector<2x192xf32> to vector<2x64xf32>
    %46 = arith.addf %45, %27 : vector<2x64xf32>
    %47 = arith.mulf %42, %46 : vector<2x64xf32>
    %48 = arith.addf %44, %47 : vector<2x64xf32>
    %49 = math.tanh %48 : vector<2x64xf32>
    %50 = arith.subf %28, %49 : vector<2x64xf32>
    %51 = arith.mulf %43, %50 : vector<2x64xf32>
    %52 = arith.addf %49, %51 : vector<2x64xf32>
    %53 = vector.extract_strided_slice %52 {offsets = [0, 0], sizes = [2, 32], strides = [1, 1]} : vector<2x64xf32> to vector<2x32xf32>
    %54 = vector.extract_strided_slice %52 {offsets = [0, 32], sizes = [2, 32], strides = [1, 1]} : vector<2x64xf32> to vector<2x32xf32>
    %55 = vector.extract_strided_slice %24 {offsets = [2, 0], sizes = [2, 192], strides = [1, 1]} : vector<16x192xf32> to vector<2x192xf32>
    %cst_14 = arith.constant dense<0.000000e+00> : vector<2x192xf32>
    %56 = tpu.matmul %52, %29, %cst_14 {dimension_numbers = #tpu.dot_dimension_numbers<[1], [0], [0], [1], [0, 0, 1, 1], [], []>} : vector<2x64xf32>, vector<64x192xf32>, vector<2x192xf32> -> vector<2x192xf32>
    %57 = vector.extract_strided_slice %55 {offsets = [0, 0], sizes = [2, 128], strides = [1, 1]} : vector<2x192xf32> to vector<2x128xf32>
    %58 = vector.extract_strided_slice %56 {offsets = [0, 0], sizes = [2, 128], strides = [1, 1]} : vector<2x192xf32> to vector<2x128xf32>
    %59 = arith.addf %57, %58 : vector<2x128xf32>
    %cst_15 = arith.constant 5.000000e-01 : f32
    %60 = vector.broadcast %cst_15 : f32 to vector<2x128xf32>
    %61 = arith.mulf %60, %59 : vector<2x128xf32>
    %62 = math.tanh %61 : vector<2x128xf32>
    %cst_16 = arith.constant 5.000000e-01 : f32
    %63 = vector.broadcast %cst_16 : f32 to vector<2x128xf32>
    %64 = arith.mulf %63, %62 : vector<2x128xf32>
    %cst_17 = arith.constant 5.000000e-01 : f32
    %65 = vector.broadcast %cst_17 : f32 to vector<2x128xf32>
    %66 = arith.addf %64, %65 : vector<2x128xf32>
    %67 = vector.extract_strided_slice %66 {offsets = [0, 0], sizes = [2, 64], strides = [1, 1]} : vector<2x128xf32> to vector<2x64xf32>
    %68 = vector.extract_strided_slice %66 {offsets = [0, 64], sizes = [2, 64], strides = [1, 1]} : vector<2x128xf32> to vector<2x64xf32>
    %69 = vector.extract_strided_slice %55 {offsets = [0, 128], sizes = [2, 64], strides = [1, 1]} : vector<2x192xf32> to vector<2x64xf32>
    %70 = vector.extract_strided_slice %56 {offsets = [0, 128], sizes = [2, 64], strides = [1, 1]} : vector<2x192xf32> to vector<2x64xf32>
    %71 = arith.addf %70, %27 : vector<2x64xf32>
    %72 = arith.mulf %67, %71 : vector<2x64xf32>
    %73 = arith.addf %69, %72 : vector<2x64xf32>
    %74 = math.tanh %73 : vector<2x64xf32>
    %75 = arith.subf %52, %74 : vector<2x64xf32>
    %76 = arith.mulf %68, %75 : vector<2x64xf32>
    %77 = arith.addf %74, %76 : vector<2x64xf32>
    %78 = vector.extract_strided_slice %77 {offsets = [0, 0], sizes = [2, 32], strides = [1, 1]} : vector<2x64xf32> to vector<2x32xf32>
    %79 = vector.extract_strided_slice %77 {offsets = [0, 32], sizes = [2, 32], strides = [1, 1]} : vector<2x64xf32> to vector<2x32xf32>
    %80 = vector.extract_strided_slice %24 {offsets = [4, 0], sizes = [2, 192], strides = [1, 1]} : vector<16x192xf32> to vector<2x192xf32>
    %cst_18 = arith.constant dense<0.000000e+00> : vector<2x192xf32>
    %81 = tpu.matmul %77, %29, %cst_18 {dimension_numbers = #tpu.dot_dimension_numbers<[1], [0], [0], [1], [0, 0, 1, 1], [], []>} : vector<2x64xf32>, vector<64x192xf32>, vector<2x192xf32> -> vector<2x192xf32>
    %82 = vector.extract_strided_slice %80 {offsets = [0, 0], sizes = [2, 128], strides = [1, 1]} : vector<2x192xf32> to vector<2x128xf32>
    %83 = vector.extract_strided_slice %81 {offsets = [0, 0], sizes = [2, 128], strides = [1, 1]} : vector<2x192xf32> to vector<2x128xf32>
    %84 = arith.addf %82, %83 : vector<2x128xf32>
    %cst_19 = arith.constant 5.000000e-01 : f32
    %85 = vector.broadcast %cst_19 : f32 to vector<2x128xf32>
    %86 = arith.mulf %85, %84 : vector<2x128xf32>
    %87 = math.tanh %86 : vector<2x128xf32>
    %cst_20 = arith.constant 5.000000e-01 : f32
    %88 = vector.broadcast %cst_20 : f32 to vector<2x128xf32>
    %89 = arith.mulf %88, %87 : vector<2x128xf32>
    %cst_21 = arith.constant 5.000000e-01 : f32
    %90 = vector.broadcast %cst_21 : f32 to vector<2x128xf32>
    %91 = arith.addf %89, %90 : vector<2x128xf32>
    %92 = vector.extract_strided_slice %91 {offsets = [0, 0], sizes = [2, 64], strides = [1, 1]} : vector<2x128xf32> to vector<2x64xf32>
    %93 = vector.extract_strided_slice %91 {offsets = [0, 64], sizes = [2, 64], strides = [1, 1]} : vector<2x128xf32> to vector<2x64xf32>
    %94 = vector.extract_strided_slice %80 {offsets = [0, 128], sizes = [2, 64], strides = [1, 1]} : vector<2x192xf32> to vector<2x64xf32>
    %95 = vector.extract_strided_slice %81 {offsets = [0, 128], sizes = [2, 64], strides = [1, 1]} : vector<2x192xf32> to vector<2x64xf32>
    %96 = arith.addf %95, %27 : vector<2x64xf32>
    %97 = arith.mulf %92, %96 : vector<2x64xf32>
    %98 = arith.addf %94, %97 : vector<2x64xf32>
    %99 = math.tanh %98 : vector<2x64xf32>
    %100 = arith.subf %77, %99 : vector<2x64xf32>
    %101 = arith.mulf %93, %100 : vector<2x64xf32>
    %102 = arith.addf %99, %101 : vector<2x64xf32>
    %103 = vector.extract_strided_slice %102 {offsets = [0, 0], sizes = [2, 32], strides = [1, 1]} : vector<2x64xf32> to vector<2x32xf32>
    %104 = vector.extract_strided_slice %102 {offsets = [0, 32], sizes = [2, 32], strides = [1, 1]} : vector<2x64xf32> to vector<2x32xf32>
    %105 = vector.extract_strided_slice %24 {offsets = [6, 0], sizes = [2, 192], strides = [1, 1]} : vector<16x192xf32> to vector<2x192xf32>
    %cst_22 = arith.constant dense<0.000000e+00> : vector<2x192xf32>
    %106 = tpu.matmul %102, %29, %cst_22 {dimension_numbers = #tpu.dot_dimension_numbers<[1], [0], [0], [1], [0, 0, 1, 1], [], []>} : vector<2x64xf32>, vector<64x192xf32>, vector<2x192xf32> -> vector<2x192xf32>
    %107 = vector.extract_strided_slice %105 {offsets = [0, 0], sizes = [2, 128], strides = [1, 1]} : vector<2x192xf32> to vector<2x128xf32>
    %108 = vector.extract_strided_slice %106 {offsets = [0, 0], sizes = [2, 128], strides = [1, 1]} : vector<2x192xf32> to vector<2x128xf32>
    %109 = arith.addf %107, %108 : vector<2x128xf32>
    %cst_23 = arith.constant 5.000000e-01 : f32
    %110 = vector.broadcast %cst_23 : f32 to vector<2x128xf32>
    %111 = arith.mulf %110, %109 : vector<2x128xf32>
    %112 = math.tanh %111 : vector<2x128xf32>
    %cst_24 = arith.constant 5.000000e-01 : f32
    %113 = vector.broadcast %cst_24 : f32 to vector<2x128xf32>
    %114 = arith.mulf %113, %112 : vector<2x128xf32>
    %cst_25 = arith.constant 5.000000e-01 : f32
    %115 = vector.broadcast %cst_25 : f32 to vector<2x128xf32>
    %116 = arith.addf %114, %115 : vector<2x128xf32>
    %117 = vector.extract_strided_slice %116 {offsets = [0, 0], sizes = [2, 64], strides = [1, 1]} : vector<2x128xf32> to vector<2x64xf32>
    %118 = vector.extract_strided_slice %116 {offsets = [0, 64], sizes = [2, 64], strides = [1, 1]} : vector<2x128xf32> to vector<2x64xf32>
    %119 = vector.extract_strided_slice %105 {offsets = [0, 128], sizes = [2, 64], strides = [1, 1]} : vector<2x192xf32> to vector<2x64xf32>
    %120 = vector.extract_strided_slice %106 {offsets = [0, 128], sizes = [2, 64], strides = [1, 1]} : vector<2x192xf32> to vector<2x64xf32>
    %121 = arith.addf %120, %27 : vector<2x64xf32>
    %122 = arith.mulf %117, %121 : vector<2x64xf32>
    %123 = arith.addf %119, %122 : vector<2x64xf32>
    %124 = math.tanh %123 : vector<2x64xf32>
    %125 = arith.subf %102, %124 : vector<2x64xf32>
    %126 = arith.mulf %118, %125 : vector<2x64xf32>
    %127 = arith.addf %124, %126 : vector<2x64xf32>
    %128 = vector.extract_strided_slice %127 {offsets = [0, 0], sizes = [2, 32], strides = [1, 1]} : vector<2x64xf32> to vector<2x32xf32>
    %129 = vector.extract_strided_slice %127 {offsets = [0, 32], sizes = [2, 32], strides = [1, 1]} : vector<2x64xf32> to vector<2x32xf32>
    %130 = vector.extract_strided_slice %24 {offsets = [8, 0], sizes = [2, 192], strides = [1, 1]} : vector<16x192xf32> to vector<2x192xf32>
    %cst_26 = arith.constant dense<0.000000e+00> : vector<2x192xf32>
    %131 = tpu.matmul %127, %29, %cst_26 {dimension_numbers = #tpu.dot_dimension_numbers<[1], [0], [0], [1], [0, 0, 1, 1], [], []>} : vector<2x64xf32>, vector<64x192xf32>, vector<2x192xf32> -> vector<2x192xf32>
    %132 = vector.extract_strided_slice %130 {offsets = [0, 0], sizes = [2, 128], strides = [1, 1]} : vector<2x192xf32> to vector<2x128xf32>
    %133 = vector.extract_strided_slice %131 {offsets = [0, 0], sizes = [2, 128], strides = [1, 1]} : vector<2x192xf32> to vector<2x128xf32>
    %134 = arith.addf %132, %133 : vector<2x128xf32>
    %cst_27 = arith.constant 5.000000e-01 : f32
    %135 = vector.broadcast %cst_27 : f32 to vector<2x128xf32>
    %136 = arith.mulf %135, %134 : vector<2x128xf32>
    %137 = math.tanh %136 : vector<2x128xf32>
    %cst_28 = arith.constant 5.000000e-01 : f32
    %138 = vector.broadcast %cst_28 : f32 to vector<2x128xf32>
    %139 = arith.mulf %138, %137 : vector<2x128xf32>
    %cst_29 = arith.constant 5.000000e-01 : f32
    %140 = vector.broadcast %cst_29 : f32 to vector<2x128xf32>
    %141 = arith.addf %139, %140 : vector<2x128xf32>
    %142 = vector.extract_strided_slice %141 {offsets = [0, 0], sizes = [2, 64], strides = [1, 1]} : vector<2x128xf32> to vector<2x64xf32>
    %143 = vector.extract_strided_slice %141 {offsets = [0, 64], sizes = [2, 64], strides = [1, 1]} : vector<2x128xf32> to vector<2x64xf32>
    %144 = vector.extract_strided_slice %130 {offsets = [0, 128], sizes = [2, 64], strides = [1, 1]} : vector<2x192xf32> to vector<2x64xf32>
    %145 = vector.extract_strided_slice %131 {offsets = [0, 128], sizes = [2, 64], strides = [1, 1]} : vector<2x192xf32> to vector<2x64xf32>
    %146 = arith.addf %145, %27 : vector<2x64xf32>
    %147 = arith.mulf %142, %146 : vector<2x64xf32>
    %148 = arith.addf %144, %147 : vector<2x64xf32>
    %149 = math.tanh %148 : vector<2x64xf32>
    %150 = arith.subf %127, %149 : vector<2x64xf32>
    %151 = arith.mulf %143, %150 : vector<2x64xf32>
    %152 = arith.addf %149, %151 : vector<2x64xf32>
    %153 = vector.extract_strided_slice %152 {offsets = [0, 0], sizes = [2, 32], strides = [1, 1]} : vector<2x64xf32> to vector<2x32xf32>
    %154 = vector.extract_strided_slice %152 {offsets = [0, 32], sizes = [2, 32], strides = [1, 1]} : vector<2x64xf32> to vector<2x32xf32>
    %155 = vector.extract_strided_slice %24 {offsets = [10, 0], sizes = [2, 192], strides = [1, 1]} : vector<16x192xf32> to vector<2x192xf32>
    %cst_30 = arith.constant dense<0.000000e+00> : vector<2x192xf32>
    %156 = tpu.matmul %152, %29, %cst_30 {dimension_numbers = #tpu.dot_dimension_numbers<[1], [0], [0], [1], [0, 0, 1, 1], [], []>} : vector<2x64xf32>, vector<64x192xf32>, vector<2x192xf32> -> vector<2x192xf32>
    %157 = vector.extract_strided_slice %155 {offsets = [0, 0], sizes = [2, 128], strides = [1, 1]} : vector<2x192xf32> to vector<2x128xf32>
    %158 = vector.extract_strided_slice %156 {offsets = [0, 0], sizes = [2, 128], strides = [1, 1]} : vector<2x192xf32> to vector<2x128xf32>
    %159 = arith.addf %157, %158 : vector<2x128xf32>
    %cst_31 = arith.constant 5.000000e-01 : f32
    %160 = vector.broadcast %cst_31 : f32 to vector<2x128xf32>
    %161 = arith.mulf %160, %159 : vector<2x128xf32>
    %162 = math.tanh %161 : vector<2x128xf32>
    %cst_32 = arith.constant 5.000000e-01 : f32
    %163 = vector.broadcast %cst_32 : f32 to vector<2x128xf32>
    %164 = arith.mulf %163, %162 : vector<2x128xf32>
    %cst_33 = arith.constant 5.000000e-01 : f32
    %165 = vector.broadcast %cst_33 : f32 to vector<2x128xf32>
    %166 = arith.addf %164, %165 : vector<2x128xf32>
    %167 = vector.extract_strided_slice %166 {offsets = [0, 0], sizes = [2, 64], strides = [1, 1]} : vector<2x128xf32> to vector<2x64xf32>
    %168 = vector.extract_strided_slice %166 {offsets = [0, 64], sizes = [2, 64], strides = [1, 1]} : vector<2x128xf32> to vector<2x64xf32>
    %169 = vector.extract_strided_slice %155 {offsets = [0, 128], sizes = [2, 64], strides = [1, 1]} : vector<2x192xf32> to vector<2x64xf32>
    %170 = vector.extract_strided_slice %156 {offsets = [0, 128], sizes = [2, 64], strides = [1, 1]} : vector<2x192xf32> to vector<2x64xf32>
    %171 = arith.addf %170, %27 : vector<2x64xf32>
    %172 = arith.mulf %167, %171 : vector<2x64xf32>
    %173 = arith.addf %169, %172 : vector<2x64xf32>
    %174 = math.tanh %173 : vector<2x64xf32>
    %175 = arith.subf %152, %174 : vector<2x64xf32>
    %176 = arith.mulf %168, %175 : vector<2x64xf32>
    %177 = arith.addf %174, %176 : vector<2x64xf32>
    %178 = vector.extract_strided_slice %177 {offsets = [0, 0], sizes = [2, 32], strides = [1, 1]} : vector<2x64xf32> to vector<2x32xf32>
    %179 = vector.extract_strided_slice %177 {offsets = [0, 32], sizes = [2, 32], strides = [1, 1]} : vector<2x64xf32> to vector<2x32xf32>
    %180 = vector.extract_strided_slice %24 {offsets = [12, 0], sizes = [2, 192], strides = [1, 1]} : vector<16x192xf32> to vector<2x192xf32>
    %cst_34 = arith.constant dense<0.000000e+00> : vector<2x192xf32>
    %181 = tpu.matmul %177, %29, %cst_34 {dimension_numbers = #tpu.dot_dimension_numbers<[1], [0], [0], [1], [0, 0, 1, 1], [], []>} : vector<2x64xf32>, vector<64x192xf32>, vector<2x192xf32> -> vector<2x192xf32>
    %182 = vector.extract_strided_slice %180 {offsets = [0, 0], sizes = [2, 128], strides = [1, 1]} : vector<2x192xf32> to vector<2x128xf32>
    %183 = vector.extract_strided_slice %181 {offsets = [0, 0], sizes = [2, 128], strides = [1, 1]} : vector<2x192xf32> to vector<2x128xf32>
    %184 = arith.addf %182, %183 : vector<2x128xf32>
    %cst_35 = arith.constant 5.000000e-01 : f32
    %185 = vector.broadcast %cst_35 : f32 to vector<2x128xf32>
    %186 = arith.mulf %185, %184 : vector<2x128xf32>
    %187 = math.tanh %186 : vector<2x128xf32>
    %cst_36 = arith.constant 5.000000e-01 : f32
    %188 = vector.broadcast %cst_36 : f32 to vector<2x128xf32>
    %189 = arith.mulf %188, %187 : vector<2x128xf32>
    %cst_37 = arith.constant 5.000000e-01 : f32
    %190 = vector.broadcast %cst_37 : f32 to vector<2x128xf32>
    %191 = arith.addf %189, %190 : vector<2x128xf32>
    %192 = vector.extract_strided_slice %191 {offsets = [0, 0], sizes = [2, 64], strides = [1, 1]} : vector<2x128xf32> to vector<2x64xf32>
    %193 = vector.extract_strided_slice %191 {offsets = [0, 64], sizes = [2, 64], strides = [1, 1]} : vector<2x128xf32> to vector<2x64xf32>
    %194 = vector.extract_strided_slice %180 {offsets = [0, 128], sizes = [2, 64], strides = [1, 1]} : vector<2x192xf32> to vector<2x64xf32>
    %195 = vector.extract_strided_slice %181 {offsets = [0, 128], sizes = [2, 64], strides = [1, 1]} : vector<2x192xf32> to vector<2x64xf32>
    %196 = arith.addf %195, %27 : vector<2x64xf32>
    %197 = arith.mulf %192, %196 : vector<2x64xf32>
    %198 = arith.addf %194, %197 : vector<2x64xf32>
    %199 = math.tanh %198 : vector<2x64xf32>
    %200 = arith.subf %177, %199 : vector<2x64xf32>
    %201 = arith.mulf %193, %200 : vector<2x64xf32>
    %202 = arith.addf %199, %201 : vector<2x64xf32>
    %203 = vector.extract_strided_slice %202 {offsets = [0, 0], sizes = [2, 32], strides = [1, 1]} : vector<2x64xf32> to vector<2x32xf32>
    %204 = vector.extract_strided_slice %202 {offsets = [0, 32], sizes = [2, 32], strides = [1, 1]} : vector<2x64xf32> to vector<2x32xf32>
    %205 = vector.extract_strided_slice %24 {offsets = [14, 0], sizes = [2, 192], strides = [1, 1]} : vector<16x192xf32> to vector<2x192xf32>
    %cst_38 = arith.constant dense<0.000000e+00> : vector<2x192xf32>
    %206 = tpu.matmul %202, %29, %cst_38 {dimension_numbers = #tpu.dot_dimension_numbers<[1], [0], [0], [1], [0, 0, 1, 1], [], []>} : vector<2x64xf32>, vector<64x192xf32>, vector<2x192xf32> -> vector<2x192xf32>
    %207 = vector.extract_strided_slice %205 {offsets = [0, 0], sizes = [2, 128], strides = [1, 1]} : vector<2x192xf32> to vector<2x128xf32>
    %208 = vector.extract_strided_slice %206 {offsets = [0, 0], sizes = [2, 128], strides = [1, 1]} : vector<2x192xf32> to vector<2x128xf32>
    %209 = arith.addf %207, %208 : vector<2x128xf32>
    %cst_39 = arith.constant 5.000000e-01 : f32
    %210 = vector.broadcast %cst_39 : f32 to vector<2x128xf32>
    %211 = arith.mulf %210, %209 : vector<2x128xf32>
    %212 = math.tanh %211 : vector<2x128xf32>
    %cst_40 = arith.constant 5.000000e-01 : f32
    %213 = vector.broadcast %cst_40 : f32 to vector<2x128xf32>
    %214 = arith.mulf %213, %212 : vector<2x128xf32>
    %cst_41 = arith.constant 5.000000e-01 : f32
    %215 = vector.broadcast %cst_41 : f32 to vector<2x128xf32>
    %216 = arith.addf %214, %215 : vector<2x128xf32>
    %217 = vector.extract_strided_slice %216 {offsets = [0, 0], sizes = [2, 64], strides = [1, 1]} : vector<2x128xf32> to vector<2x64xf32>
    %218 = vector.extract_strided_slice %216 {offsets = [0, 64], sizes = [2, 64], strides = [1, 1]} : vector<2x128xf32> to vector<2x64xf32>
    %219 = vector.extract_strided_slice %205 {offsets = [0, 128], sizes = [2, 64], strides = [1, 1]} : vector<2x192xf32> to vector<2x64xf32>
    %220 = vector.extract_strided_slice %206 {offsets = [0, 128], sizes = [2, 64], strides = [1, 1]} : vector<2x192xf32> to vector<2x64xf32>
    %221 = arith.addf %220, %27 : vector<2x64xf32>
    %222 = arith.mulf %217, %221 : vector<2x64xf32>
    %223 = arith.addf %219, %222 : vector<2x64xf32>
    %224 = math.tanh %223 : vector<2x64xf32>
    %225 = arith.subf %202, %224 : vector<2x64xf32>
    %226 = arith.mulf %218, %225 : vector<2x64xf32>
    %227 = arith.addf %224, %226 : vector<2x64xf32>
    %228 = vector.extract_strided_slice %227 {offsets = [0, 0], sizes = [2, 32], strides = [1, 1]} : vector<2x64xf32> to vector<2x32xf32>
    %229 = vector.extract_strided_slice %227 {offsets = [0, 32], sizes = [2, 32], strides = [1, 1]} : vector<2x64xf32> to vector<2x32xf32>
    %230 = tpu.concatenate %53, %229 in 1 : vector<2x32xf32>, vector<2x32xf32> -> vector<2x64xf32>
    %231 = tpu.concatenate %78, %204 in 1 : vector<2x32xf32>, vector<2x32xf32> -> vector<2x64xf32>
    %232 = tpu.concatenate %103, %179 in 1 : vector<2x32xf32>, vector<2x32xf32> -> vector<2x64xf32>
    %233 = tpu.concatenate %128, %154 in 1 : vector<2x32xf32>, vector<2x32xf32> -> vector<2x64xf32>
    %234 = tpu.concatenate %153, %129 in 1 : vector<2x32xf32>, vector<2x32xf32> -> vector<2x64xf32>
    %235 = tpu.concatenate %178, %104 in 1 : vector<2x32xf32>, vector<2x32xf32> -> vector<2x64xf32>
    %236 = tpu.concatenate %203, %79 in 1 : vector<2x32xf32>, vector<2x32xf32> -> vector<2x64xf32>
    %237 = tpu.concatenate %228, %54 in 1 : vector<2x32xf32>, vector<2x32xf32> -> vector<2x64xf32>
    %c72 = arith.constant 72 : index
    %c0_42 = arith.constant 0 : index
    %238 = vector.load %arg2[%c72, %c0_42] : memref<488x192xf32, #tpu.memory_space<vmem>>, vector<64x96xf32>
    %c72_43 = arith.constant 72 : index
    %c96_44 = arith.constant 96 : index
    %239 = vector.load %arg2[%c72_43, %c96_44] : memref<488x192xf32, #tpu.memory_space<vmem>>, vector<64x96xf32>
    %c2 = arith.constant 2 : index
    %c0_45 = arith.constant 0 : index
    %240 = vector.load %arg3[%c2, %c0_45] : memref<9x192xf32, #tpu.memory_space<vmem>>, vector<1x192xf32>
    %241 = tpu.concatenate %230, %231, %232, %233, %234, %235, %236, %237 in 0 : vector<2x64xf32>, vector<2x64xf32>, vector<2x64xf32>, vector<2x64xf32>, vector<2x64xf32>, vector<2x64xf32>, vector<2x64xf32>, vector<2x64xf32> -> vector<16x64xf32>
    %242 = tpu.concatenate %237, %236, %235, %234, %233, %232, %231, %230 in 0 : vector<2x64xf32>, vector<2x64xf32>, vector<2x64xf32>, vector<2x64xf32>, vector<2x64xf32>, vector<2x64xf32>, vector<2x64xf32>, vector<2x64xf32> -> vector<16x64xf32>
    %cst_46 = arith.constant dense<0.000000e+00> : vector<16x96xf32>
    %243 = tpu.matmul %241, %238, %cst_46 {dimension_numbers = #tpu.dot_dimension_numbers<[1], [0], [0], [1], [0, 0, 1, 1], [], []>} : vector<16x64xf32>, vector<64x96xf32>, vector<16x96xf32> -> vector<16x96xf32>
    %cst_47 = arith.constant dense<0.000000e+00> : vector<16x96xf32>
    %244 = tpu.matmul %242, %239, %cst_47 {dimension_numbers = #tpu.dot_dimension_numbers<[1], [0], [0], [1], [0, 0, 1, 1], [], []>} : vector<16x64xf32>, vector<64x96xf32>, vector<16x96xf32> -> vector<16x96xf32>
    %245 = vector.extract_strided_slice %243 {offsets = [0, 0], sizes = [16, 32], strides = [1, 1]} : vector<16x96xf32> to vector<16x32xf32>
    %246 = vector.extract_strided_slice %244 {offsets = [0, 0], sizes = [16, 32], strides = [1, 1]} : vector<16x96xf32> to vector<16x32xf32>
    %247 = vector.extract_strided_slice %243 {offsets = [0, 32], sizes = [16, 32], strides = [1, 1]} : vector<16x96xf32> to vector<16x32xf32>
    %248 = vector.extract_strided_slice %244 {offsets = [0, 32], sizes = [16, 32], strides = [1, 1]} : vector<16x96xf32> to vector<16x32xf32>
    %249 = vector.extract_strided_slice %243 {offsets = [0, 64], sizes = [16, 32], strides = [1, 1]} : vector<16x96xf32> to vector<16x32xf32>
    %250 = vector.extract_strided_slice %244 {offsets = [0, 64], sizes = [16, 32], strides = [1, 1]} : vector<16x96xf32> to vector<16x32xf32>
    %251 = tpu.concatenate %245, %246, %247, %248, %249, %250 in 1 : vector<16x32xf32>, vector<16x32xf32>, vector<16x32xf32>, vector<16x32xf32>, vector<16x32xf32>, vector<16x32xf32> -> vector<16x192xf32>
    %252 = vector.broadcast %240 : vector<1x192xf32> to vector<16x192xf32>
    %253 = arith.addf %251, %252 : vector<16x192xf32>
    %c3 = arith.constant 3 : index
    %c0_48 = arith.constant 0 : index
    %254 = vector.load %arg3[%c3, %c0_48] : memref<9x192xf32, #tpu.memory_space<vmem>>, vector<1x64xf32>
    %255 = vector.shape_cast %254 : vector<1x64xf32> to vector<1x64xf32>
    %256 = vector.broadcast %255 : vector<1x64xf32> to vector<2x64xf32>
    %c136 = arith.constant 136 : index
    %c0_49 = arith.constant 0 : index
    %257 = vector.load %arg2[%c136, %c0_49] : memref<488x192xf32, #tpu.memory_space<vmem>>, vector<64x192xf32>
    %258 = vector.extract_strided_slice %253 {offsets = [0, 0], sizes = [2, 192], strides = [1, 1]} : vector<16x192xf32> to vector<2x192xf32>
    %cst_50 = arith.constant dense<0.000000e+00> : vector<2x192xf32>
    %259 = tpu.matmul %28, %257, %cst_50 {dimension_numbers = #tpu.dot_dimension_numbers<[1], [0], [0], [1], [0, 0, 1, 1], [], []>} : vector<2x64xf32>, vector<64x192xf32>, vector<2x192xf32> -> vector<2x192xf32>
    %260 = vector.extract_strided_slice %258 {offsets = [0, 0], sizes = [2, 128], strides = [1, 1]} : vector<2x192xf32> to vector<2x128xf32>
    %261 = vector.extract_strided_slice %259 {offsets = [0, 0], sizes = [2, 128], strides = [1, 1]} : vector<2x192xf32> to vector<2x128xf32>
    %262 = arith.addf %260, %261 : vector<2x128xf32>
    %cst_51 = arith.constant 5.000000e-01 : f32
    %263 = vector.broadcast %cst_51 : f32 to vector<2x128xf32>
    %264 = arith.mulf %263, %262 : vector<2x128xf32>
    %265 = math.tanh %264 : vector<2x128xf32>
    %cst_52 = arith.constant 5.000000e-01 : f32
    %266 = vector.broadcast %cst_52 : f32 to vector<2x128xf32>
    %267 = arith.mulf %266, %265 : vector<2x128xf32>
    %cst_53 = arith.constant 5.000000e-01 : f32
    %268 = vector.broadcast %cst_53 : f32 to vector<2x128xf32>
    %269 = arith.addf %267, %268 : vector<2x128xf32>
    %270 = vector.extract_strided_slice %269 {offsets = [0, 0], sizes = [2, 64], strides = [1, 1]} : vector<2x128xf32> to vector<2x64xf32>
    %271 = vector.extract_strided_slice %269 {offsets = [0, 64], sizes = [2, 64], strides = [1, 1]} : vector<2x128xf32> to vector<2x64xf32>
    %272 = vector.extract_strided_slice %258 {offsets = [0, 128], sizes = [2, 64], strides = [1, 1]} : vector<2x192xf32> to vector<2x64xf32>
    %273 = vector.extract_strided_slice %259 {offsets = [0, 128], sizes = [2, 64], strides = [1, 1]} : vector<2x192xf32> to vector<2x64xf32>
    %274 = arith.addf %273, %256 : vector<2x64xf32>
    %275 = arith.mulf %270, %274 : vector<2x64xf32>
    %276 = arith.addf %272, %275 : vector<2x64xf32>
    %277 = math.tanh %276 : vector<2x64xf32>
    %278 = arith.subf %28, %277 : vector<2x64xf32>
    %279 = arith.mulf %271, %278 : vector<2x64xf32>
    %280 = arith.addf %277, %279 : vector<2x64xf32>
    %281 = vector.extract_strided_slice %253 {offsets = [2, 0], sizes = [2, 192], strides = [1, 1]} : vector<16x192xf32> to vector<2x192xf32>
    %cst_54 = arith.constant dense<0.000000e+00> : vector<2x192xf32>
    %282 = tpu.matmul %280, %257, %cst_54 {dimension_numbers = #tpu.dot_dimension_numbers<[1], [0], [0], [1], [0, 0, 1, 1], [], []>} : vector<2x64xf32>, vector<64x192xf32>, vector<2x192xf32> -> vector<2x192xf32>
    %283 = vector.extract_strided_slice %281 {offsets = [0, 0], sizes = [2, 128], strides = [1, 1]} : vector<2x192xf32> to vector<2x128xf32>
    %284 = vector.extract_strided_slice %282 {offsets = [0, 0], sizes = [2, 128], strides = [1, 1]} : vector<2x192xf32> to vector<2x128xf32>
    %285 = arith.addf %283, %284 : vector<2x128xf32>
    %cst_55 = arith.constant 5.000000e-01 : f32
    %286 = vector.broadcast %cst_55 : f32 to vector<2x128xf32>
    %287 = arith.mulf %286, %285 : vector<2x128xf32>
    %288 = math.tanh %287 : vector<2x128xf32>
    %cst_56 = arith.constant 5.000000e-01 : f32
    %289 = vector.broadcast %cst_56 : f32 to vector<2x128xf32>
    %290 = arith.mulf %289, %288 : vector<2x128xf32>
    %cst_57 = arith.constant 5.000000e-01 : f32
    %291 = vector.broadcast %cst_57 : f32 to vector<2x128xf32>
    %292 = arith.addf %290, %291 : vector<2x128xf32>
    %293 = vector.extract_strided_slice %292 {offsets = [0, 0], sizes = [2, 64], strides = [1, 1]} : vector<2x128xf32> to vector<2x64xf32>
    %294 = vector.extract_strided_slice %292 {offsets = [0, 64], sizes = [2, 64], strides = [1, 1]} : vector<2x128xf32> to vector<2x64xf32>
    %295 = vector.extract_strided_slice %281 {offsets = [0, 128], sizes = [2, 64], strides = [1, 1]} : vector<2x192xf32> to vector<2x64xf32>
    %296 = vector.extract_strided_slice %282 {offsets = [0, 128], sizes = [2, 64], strides = [1, 1]} : vector<2x192xf32> to vector<2x64xf32>
    %297 = arith.addf %296, %256 : vector<2x64xf32>
    %298 = arith.mulf %293, %297 : vector<2x64xf32>
    %299 = arith.addf %295, %298 : vector<2x64xf32>
    %300 = math.tanh %299 : vector<2x64xf32>
    %301 = arith.subf %280, %300 : vector<2x64xf32>
    %302 = arith.mulf %294, %301 : vector<2x64xf32>
    %303 = arith.addf %300, %302 : vector<2x64xf32>
    %304 = vector.extract_strided_slice %253 {offsets = [4, 0], sizes = [2, 192], strides = [1, 1]} : vector<16x192xf32> to vector<2x192xf32>
    %cst_58 = arith.constant dense<0.000000e+00> : vector<2x192xf32>
    %305 = tpu.matmul %303, %257, %cst_58 {dimension_numbers = #tpu.dot_dimension_numbers<[1], [0], [0], [1], [0, 0, 1, 1], [], []>} : vector<2x64xf32>, vector<64x192xf32>, vector<2x192xf32> -> vector<2x192xf32>
    %306 = vector.extract_strided_slice %304 {offsets = [0, 0], sizes = [2, 128], strides = [1, 1]} : vector<2x192xf32> to vector<2x128xf32>
    %307 = vector.extract_strided_slice %305 {offsets = [0, 0], sizes = [2, 128], strides = [1, 1]} : vector<2x192xf32> to vector<2x128xf32>
    %308 = arith.addf %306, %307 : vector<2x128xf32>
    %cst_59 = arith.constant 5.000000e-01 : f32
    %309 = vector.broadcast %cst_59 : f32 to vector<2x128xf32>
    %310 = arith.mulf %309, %308 : vector<2x128xf32>
    %311 = math.tanh %310 : vector<2x128xf32>
    %cst_60 = arith.constant 5.000000e-01 : f32
    %312 = vector.broadcast %cst_60 : f32 to vector<2x128xf32>
    %313 = arith.mulf %312, %311 : vector<2x128xf32>
    %cst_61 = arith.constant 5.000000e-01 : f32
    %314 = vector.broadcast %cst_61 : f32 to vector<2x128xf32>
    %315 = arith.addf %313, %314 : vector<2x128xf32>
    %316 = vector.extract_strided_slice %315 {offsets = [0, 0], sizes = [2, 64], strides = [1, 1]} : vector<2x128xf32> to vector<2x64xf32>
    %317 = vector.extract_strided_slice %315 {offsets = [0, 64], sizes = [2, 64], strides = [1, 1]} : vector<2x128xf32> to vector<2x64xf32>
    %318 = vector.extract_strided_slice %304 {offsets = [0, 128], sizes = [2, 64], strides = [1, 1]} : vector<2x192xf32> to vector<2x64xf32>
    %319 = vector.extract_strided_slice %305 {offsets = [0, 128], sizes = [2, 64], strides = [1, 1]} : vector<2x192xf32> to vector<2x64xf32>
    %320 = arith.addf %319, %256 : vector<2x64xf32>
    %321 = arith.mulf %316, %320 : vector<2x64xf32>
    %322 = arith.addf %318, %321 : vector<2x64xf32>
    %323 = math.tanh %322 : vector<2x64xf32>
    %324 = arith.subf %303, %323 : vector<2x64xf32>
    %325 = arith.mulf %317, %324 : vector<2x64xf32>
    %326 = arith.addf %323, %325 : vector<2x64xf32>
    %327 = vector.extract_strided_slice %253 {offsets = [6, 0], sizes = [2, 192], strides = [1, 1]} : vector<16x192xf32> to vector<2x192xf32>
    %cst_62 = arith.constant dense<0.000000e+00> : vector<2x192xf32>
    %328 = tpu.matmul %326, %257, %cst_62 {dimension_numbers = #tpu.dot_dimension_numbers<[1], [0], [0], [1], [0, 0, 1, 1], [], []>} : vector<2x64xf32>, vector<64x192xf32>, vector<2x192xf32> -> vector<2x192xf32>
    %329 = vector.extract_strided_slice %327 {offsets = [0, 0], sizes = [2, 128], strides = [1, 1]} : vector<2x192xf32> to vector<2x128xf32>
    %330 = vector.extract_strided_slice %328 {offsets = [0, 0], sizes = [2, 128], strides = [1, 1]} : vector<2x192xf32> to vector<2x128xf32>
    %331 = arith.addf %329, %330 : vector<2x128xf32>
    %cst_63 = arith.constant 5.000000e-01 : f32
    %332 = vector.broadcast %cst_63 : f32 to vector<2x128xf32>
    %333 = arith.mulf %332, %331 : vector<2x128xf32>
    %334 = math.tanh %333 : vector<2x128xf32>
    %cst_64 = arith.constant 5.000000e-01 : f32
    %335 = vector.broadcast %cst_64 : f32 to vector<2x128xf32>
    %336 = arith.mulf %335, %334 : vector<2x128xf32>
    %cst_65 = arith.constant 5.000000e-01 : f32
    %337 = vector.broadcast %cst_65 : f32 to vector<2x128xf32>
    %338 = arith.addf %336, %337 : vector<2x128xf32>
    %339 = vector.extract_strided_slice %338 {offsets = [0, 0], sizes = [2, 64], strides = [1, 1]} : vector<2x128xf32> to vector<2x64xf32>
    %340 = vector.extract_strided_slice %338 {offsets = [0, 64], sizes = [2, 64], strides = [1, 1]} : vector<2x128xf32> to vector<2x64xf32>
    %341 = vector.extract_strided_slice %327 {offsets = [0, 128], sizes = [2, 64], strides = [1, 1]} : vector<2x192xf32> to vector<2x64xf32>
    %342 = vector.extract_strided_slice %328 {offsets = [0, 128], sizes = [2, 64], strides = [1, 1]} : vector<2x192xf32> to vector<2x64xf32>
    %343 = arith.addf %342, %256 : vector<2x64xf32>
    %344 = arith.mulf %339, %343 : vector<2x64xf32>
    %345 = arith.addf %341, %344 : vector<2x64xf32>
    %346 = math.tanh %345 : vector<2x64xf32>
    %347 = arith.subf %326, %346 : vector<2x64xf32>
    %348 = arith.mulf %340, %347 : vector<2x64xf32>
    %349 = arith.addf %346, %348 : vector<2x64xf32>
    %350 = vector.extract_strided_slice %253 {offsets = [8, 0], sizes = [2, 192], strides = [1, 1]} : vector<16x192xf32> to vector<2x192xf32>
    %cst_66 = arith.constant dense<0.000000e+00> : vector<2x192xf32>
    %351 = tpu.matmul %349, %257, %cst_66 {dimension_numbers = #tpu.dot_dimension_numbers<[1], [0], [0], [1], [0, 0, 1, 1], [], []>} : vector<2x64xf32>, vector<64x192xf32>, vector<2x192xf32> -> vector<2x192xf32>
    %352 = vector.extract_strided_slice %350 {offsets = [0, 0], sizes = [2, 128], strides = [1, 1]} : vector<2x192xf32> to vector<2x128xf32>
    %353 = vector.extract_strided_slice %351 {offsets = [0, 0], sizes = [2, 128], strides = [1, 1]} : vector<2x192xf32> to vector<2x128xf32>
    %354 = arith.addf %352, %353 : vector<2x128xf32>
    %cst_67 = arith.constant 5.000000e-01 : f32
    %355 = vector.broadcast %cst_67 : f32 to vector<2x128xf32>
    %356 = arith.mulf %355, %354 : vector<2x128xf32>
    %357 = math.tanh %356 : vector<2x128xf32>
    %cst_68 = arith.constant 5.000000e-01 : f32
    %358 = vector.broadcast %cst_68 : f32 to vector<2x128xf32>
    %359 = arith.mulf %358, %357 : vector<2x128xf32>
    %cst_69 = arith.constant 5.000000e-01 : f32
    %360 = vector.broadcast %cst_69 : f32 to vector<2x128xf32>
    %361 = arith.addf %359, %360 : vector<2x128xf32>
    %362 = vector.extract_strided_slice %361 {offsets = [0, 0], sizes = [2, 64], strides = [1, 1]} : vector<2x128xf32> to vector<2x64xf32>
    %363 = vector.extract_strided_slice %361 {offsets = [0, 64], sizes = [2, 64], strides = [1, 1]} : vector<2x128xf32> to vector<2x64xf32>
    %364 = vector.extract_strided_slice %350 {offsets = [0, 128], sizes = [2, 64], strides = [1, 1]} : vector<2x192xf32> to vector<2x64xf32>
    %365 = vector.extract_strided_slice %351 {offsets = [0, 128], sizes = [2, 64], strides = [1, 1]} : vector<2x192xf32> to vector<2x64xf32>
    %366 = arith.addf %365, %256 : vector<2x64xf32>
    %367 = arith.mulf %362, %366 : vector<2x64xf32>
    %368 = arith.addf %364, %367 : vector<2x64xf32>
    %369 = math.tanh %368 : vector<2x64xf32>
    %370 = arith.subf %349, %369 : vector<2x64xf32>
    %371 = arith.mulf %363, %370 : vector<2x64xf32>
    %372 = arith.addf %369, %371 : vector<2x64xf32>
    %373 = vector.extract_strided_slice %253 {offsets = [10, 0], sizes = [2, 192], strides = [1, 1]} : vector<16x192xf32> to vector<2x192xf32>
    %cst_70 = arith.constant dense<0.000000e+00> : vector<2x192xf32>
    %374 = tpu.matmul %372, %257, %cst_70 {dimension_numbers = #tpu.dot_dimension_numbers<[1], [0], [0], [1], [0, 0, 1, 1], [], []>} : vector<2x64xf32>, vector<64x192xf32>, vector<2x192xf32> -> vector<2x192xf32>
    %375 = vector.extract_strided_slice %373 {offsets = [0, 0], sizes = [2, 128], strides = [1, 1]} : vector<2x192xf32> to vector<2x128xf32>
    %376 = vector.extract_strided_slice %374 {offsets = [0, 0], sizes = [2, 128], strides = [1, 1]} : vector<2x192xf32> to vector<2x128xf32>
    %377 = arith.addf %375, %376 : vector<2x128xf32>
    %cst_71 = arith.constant 5.000000e-01 : f32
    %378 = vector.broadcast %cst_71 : f32 to vector<2x128xf32>
    %379 = arith.mulf %378, %377 : vector<2x128xf32>
    %380 = math.tanh %379 : vector<2x128xf32>
    %cst_72 = arith.constant 5.000000e-01 : f32
    %381 = vector.broadcast %cst_72 : f32 to vector<2x128xf32>
    %382 = arith.mulf %381, %380 : vector<2x128xf32>
    %cst_73 = arith.constant 5.000000e-01 : f32
    %383 = vector.broadcast %cst_73 : f32 to vector<2x128xf32>
    %384 = arith.addf %382, %383 : vector<2x128xf32>
    %385 = vector.extract_strided_slice %384 {offsets = [0, 0], sizes = [2, 64], strides = [1, 1]} : vector<2x128xf32> to vector<2x64xf32>
    %386 = vector.extract_strided_slice %384 {offsets = [0, 64], sizes = [2, 64], strides = [1, 1]} : vector<2x128xf32> to vector<2x64xf32>
    %387 = vector.extract_strided_slice %373 {offsets = [0, 128], sizes = [2, 64], strides = [1, 1]} : vector<2x192xf32> to vector<2x64xf32>
    %388 = vector.extract_strided_slice %374 {offsets = [0, 128], sizes = [2, 64], strides = [1, 1]} : vector<2x192xf32> to vector<2x64xf32>
    %389 = arith.addf %388, %256 : vector<2x64xf32>
    %390 = arith.mulf %385, %389 : vector<2x64xf32>
    %391 = arith.addf %387, %390 : vector<2x64xf32>
    %392 = math.tanh %391 : vector<2x64xf32>
    %393 = arith.subf %372, %392 : vector<2x64xf32>
    %394 = arith.mulf %386, %393 : vector<2x64xf32>
    %395 = arith.addf %392, %394 : vector<2x64xf32>
    %396 = vector.extract_strided_slice %253 {offsets = [12, 0], sizes = [2, 192], strides = [1, 1]} : vector<16x192xf32> to vector<2x192xf32>
    %cst_74 = arith.constant dense<0.000000e+00> : vector<2x192xf32>
    %397 = tpu.matmul %395, %257, %cst_74 {dimension_numbers = #tpu.dot_dimension_numbers<[1], [0], [0], [1], [0, 0, 1, 1], [], []>} : vector<2x64xf32>, vector<64x192xf32>, vector<2x192xf32> -> vector<2x192xf32>
    %398 = vector.extract_strided_slice %396 {offsets = [0, 0], sizes = [2, 128], strides = [1, 1]} : vector<2x192xf32> to vector<2x128xf32>
    %399 = vector.extract_strided_slice %397 {offsets = [0, 0], sizes = [2, 128], strides = [1, 1]} : vector<2x192xf32> to vector<2x128xf32>
    %400 = arith.addf %398, %399 : vector<2x128xf32>
    %cst_75 = arith.constant 5.000000e-01 : f32
    %401 = vector.broadcast %cst_75 : f32 to vector<2x128xf32>
    %402 = arith.mulf %401, %400 : vector<2x128xf32>
    %403 = math.tanh %402 : vector<2x128xf32>
    %cst_76 = arith.constant 5.000000e-01 : f32
    %404 = vector.broadcast %cst_76 : f32 to vector<2x128xf32>
    %405 = arith.mulf %404, %403 : vector<2x128xf32>
    %cst_77 = arith.constant 5.000000e-01 : f32
    %406 = vector.broadcast %cst_77 : f32 to vector<2x128xf32>
    %407 = arith.addf %405, %406 : vector<2x128xf32>
    %408 = vector.extract_strided_slice %407 {offsets = [0, 0], sizes = [2, 64], strides = [1, 1]} : vector<2x128xf32> to vector<2x64xf32>
    %409 = vector.extract_strided_slice %407 {offsets = [0, 64], sizes = [2, 64], strides = [1, 1]} : vector<2x128xf32> to vector<2x64xf32>
    %410 = vector.extract_strided_slice %396 {offsets = [0, 128], sizes = [2, 64], strides = [1, 1]} : vector<2x192xf32> to vector<2x64xf32>
    %411 = vector.extract_strided_slice %397 {offsets = [0, 128], sizes = [2, 64], strides = [1, 1]} : vector<2x192xf32> to vector<2x64xf32>
    %412 = arith.addf %411, %256 : vector<2x64xf32>
    %413 = arith.mulf %408, %412 : vector<2x64xf32>
    %414 = arith.addf %410, %413 : vector<2x64xf32>
    %415 = math.tanh %414 : vector<2x64xf32>
    %416 = arith.subf %395, %415 : vector<2x64xf32>
    %417 = arith.mulf %409, %416 : vector<2x64xf32>
    %418 = arith.addf %415, %417 : vector<2x64xf32>
    %419 = vector.extract_strided_slice %253 {offsets = [14, 0], sizes = [2, 192], strides = [1, 1]} : vector<16x192xf32> to vector<2x192xf32>
    %cst_78 = arith.constant dense<0.000000e+00> : vector<2x192xf32>
    %420 = tpu.matmul %418, %257, %cst_78 {dimension_numbers = #tpu.dot_dimension_numbers<[1], [0], [0], [1], [0, 0, 1, 1], [], []>} : vector<2x64xf32>, vector<64x192xf32>, vector<2x192xf32> -> vector<2x192xf32>
    %421 = vector.extract_strided_slice %419 {offsets = [0, 0], sizes = [2, 128], strides = [1, 1]} : vector<2x192xf32> to vector<2x128xf32>
    %422 = vector.extract_strided_slice %420 {offsets = [0, 0], sizes = [2, 128], strides = [1, 1]} : vector<2x192xf32> to vector<2x128xf32>
    %423 = arith.addf %421, %422 : vector<2x128xf32>
    %cst_79 = arith.constant 5.000000e-01 : f32
    %424 = vector.broadcast %cst_79 : f32 to vector<2x128xf32>
    %425 = arith.mulf %424, %423 : vector<2x128xf32>
    %426 = math.tanh %425 : vector<2x128xf32>
    %cst_80 = arith.constant 5.000000e-01 : f32
    %427 = vector.broadcast %cst_80 : f32 to vector<2x128xf32>
    %428 = arith.mulf %427, %426 : vector<2x128xf32>
    %cst_81 = arith.constant 5.000000e-01 : f32
    %429 = vector.broadcast %cst_81 : f32 to vector<2x128xf32>
    %430 = arith.addf %428, %429 : vector<2x128xf32>
    %431 = vector.extract_strided_slice %430 {offsets = [0, 0], sizes = [2, 64], strides = [1, 1]} : vector<2x128xf32> to vector<2x64xf32>
    %432 = vector.extract_strided_slice %430 {offsets = [0, 64], sizes = [2, 64], strides = [1, 1]} : vector<2x128xf32> to vector<2x64xf32>
    %433 = vector.extract_strided_slice %419 {offsets = [0, 128], sizes = [2, 64], strides = [1, 1]} : vector<2x192xf32> to vector<2x64xf32>
    %434 = vector.extract_strided_slice %420 {offsets = [0, 128], sizes = [2, 64], strides = [1, 1]} : vector<2x192xf32> to vector<2x64xf32>
    %435 = arith.addf %434, %256 : vector<2x64xf32>
    %436 = arith.mulf %431, %435 : vector<2x64xf32>
    %437 = arith.addf %433, %436 : vector<2x64xf32>
    %438 = math.tanh %437 : vector<2x64xf32>
    %439 = arith.subf %418, %438 : vector<2x64xf32>
    %440 = arith.mulf %432, %439 : vector<2x64xf32>
    %441 = arith.addf %438, %440 : vector<2x64xf32>
    %c200 = arith.constant 200 : index
    %c0_82 = arith.constant 0 : index
    %442 = vector.load %arg2[%c200, %c0_82] : memref<488x192xf32, #tpu.memory_space<vmem>>, vector<64x32xf32>
    %cst_83 = arith.constant dense<0.000000e+00> : vector<2x32xf32>
    %443 = tpu.matmul %227, %442, %cst_83 {dimension_numbers = #tpu.dot_dimension_numbers<[1], [0], [0], [1], [0, 0, 1, 1], [], []>} : vector<2x64xf32>, vector<64x32xf32>, vector<2x32xf32> -> vector<2x32xf32>
    %c264 = arith.constant 264 : index
    %c0_84 = arith.constant 0 : index
    %444 = vector.load %arg2[%c264, %c0_84] : memref<488x192xf32, #tpu.memory_space<vmem>>, vector<64x32xf32>
    %cst_85 = arith.constant dense<0.000000e+00> : vector<2x32xf32>
    %445 = tpu.matmul %441, %444, %cst_85 {dimension_numbers = #tpu.dot_dimension_numbers<[1], [0], [0], [1], [0, 0, 1, 1], [], []>} : vector<2x64xf32>, vector<64x32xf32>, vector<2x32xf32> -> vector<2x32xf32>
    %446 = arith.addf %443, %445 : vector<2x32xf32>
    %c4 = arith.constant 4 : index
    %c0_86 = arith.constant 0 : index
    %447 = vector.load %arg3[%c4, %c0_86] : memref<9x192xf32, #tpu.memory_space<vmem>>, vector<1x32xf32>
    %448 = vector.broadcast %447 : vector<1x32xf32> to vector<2x32xf32>
    %449 = arith.addf %446, %448 : vector<2x32xf32>
    %450 = vector.extract_strided_slice %449 {offsets = [0, 0], sizes = [2, 16], strides = [1, 1]} : vector<2x32xf32> to vector<2x16xf32>
    %451 = vector.extract_strided_slice %449 {offsets = [0, 16], sizes = [2, 16], strides = [1, 1]} : vector<2x32xf32> to vector<2x16xf32>
    %c0_87 = arith.constant 0 : index
    %c0_88 = arith.constant 0 : index
    %452 = vector.load %arg1[%c0_87, %c0_88] : memref<2x16xf32, #tpu.memory_space<vmem>>, vector<2x16xf32>
    %cst_89 = arith.constant 5.000000e-01 : f32
    %453 = vector.broadcast %cst_89 : f32 to vector<2x16xf32>
    %454 = arith.mulf %453, %451 : vector<2x16xf32>
    %455 = math.exp %454 : vector<2x16xf32>
    %456 = arith.mulf %452, %455 : vector<2x16xf32>
    %457 = arith.addf %456, %450 : vector<2x16xf32>
    %c328 = arith.constant 328 : index
    %c0_90 = arith.constant 0 : index
    %458 = vector.load %arg2[%c328, %c0_90] : memref<488x192xf32, #tpu.memory_space<vmem>>, vector<16x64xf32>
    %cst_91 = arith.constant dense<0.000000e+00> : vector<2x64xf32>
    %459 = tpu.matmul %457, %458, %cst_91 {dimension_numbers = #tpu.dot_dimension_numbers<[1], [0], [0], [1], [0, 0, 1, 1], [], []>} : vector<2x16xf32>, vector<16x64xf32>, vector<2x64xf32> -> vector<2x64xf32>
    %c5 = arith.constant 5 : index
    %c0_92 = arith.constant 0 : index
    %460 = vector.load %arg3[%c5, %c0_92] : memref<9x192xf32, #tpu.memory_space<vmem>>, vector<1x64xf32>
    %461 = vector.broadcast %460 : vector<1x64xf32> to vector<2x64xf32>
    %462 = arith.addf %459, %461 : vector<2x64xf32>
    %463 = vector.extract_strided_slice %462 {offsets = [0, 0], sizes = [1, 32], strides = [1, 1]} : vector<2x64xf32> to vector<1x32xf32>
    %464 = vector.extract_strided_slice %462 {offsets = [1, 0], sizes = [1, 32], strides = [1, 1]} : vector<2x64xf32> to vector<1x32xf32>
    %465 = tpu.concatenate %463, %464 in 1 : vector<1x32xf32>, vector<1x32xf32> -> vector<1x64xf32>
    %466 = vector.extract_strided_slice %462 {offsets = [0, 32], sizes = [1, 32], strides = [1, 1]} : vector<2x64xf32> to vector<1x32xf32>
    %467 = vector.extract_strided_slice %462 {offsets = [1, 32], sizes = [1, 32], strides = [1, 1]} : vector<2x64xf32> to vector<1x32xf32>
    %468 = tpu.concatenate %466, %467 in 1 : vector<1x32xf32>, vector<1x32xf32> -> vector<1x64xf32>
    %469 = tpu.concatenate %465, %468 in 0 : vector<1x64xf32>, vector<1x64xf32> -> vector<2x64xf32>
    %c344 = arith.constant 344 : index
    %c0_93 = arith.constant 0 : index
    %470 = vector.load %arg2[%c344, %c0_93] : memref<488x192xf32, #tpu.memory_space<vmem>>, vector<16x192xf32>
    %cst_94 = arith.constant dense<0.000000e+00> : vector<2x192xf32>
    %471 = tpu.matmul %457, %470, %cst_94 {dimension_numbers = #tpu.dot_dimension_numbers<[1], [0], [0], [1], [0, 0, 1, 1], [], []>} : vector<2x16xf32>, vector<16x192xf32>, vector<2x192xf32> -> vector<2x192xf32>
    %c6 = arith.constant 6 : index
    %c0_95 = arith.constant 0 : index
    %472 = vector.load %arg3[%c6, %c0_95] : memref<9x192xf32, #tpu.memory_space<vmem>>, vector<1x192xf32>
    %473 = vector.broadcast %472 : vector<1x192xf32> to vector<2x192xf32>
    %474 = arith.addf %471, %473 : vector<2x192xf32>
    %c7 = arith.constant 7 : index
    %c0_96 = arith.constant 0 : index
    %475 = vector.load %arg3[%c7, %c0_96] : memref<9x192xf32, #tpu.memory_space<vmem>>, vector<1x64xf32>
    %476 = vector.shape_cast %475 : vector<1x64xf32> to vector<1x64xf32>
    %477 = vector.broadcast %476 : vector<1x64xf32> to vector<2x64xf32>
    %c360 = arith.constant 360 : index
    %c0_97 = arith.constant 0 : index
    %478 = vector.load %arg2[%c360, %c0_97] : memref<488x192xf32, #tpu.memory_space<vmem>>, vector<64x192xf32>
    %cst_98 = arith.constant dense<0.000000e+00> : vector<2x192xf32>
    %479 = tpu.matmul %469, %478, %cst_98 {dimension_numbers = #tpu.dot_dimension_numbers<[1], [0], [0], [1], [0, 0, 1, 1], [], []>} : vector<2x64xf32>, vector<64x192xf32>, vector<2x192xf32> -> vector<2x192xf32>
    %480 = vector.extract_strided_slice %474 {offsets = [0, 0], sizes = [2, 128], strides = [1, 1]} : vector<2x192xf32> to vector<2x128xf32>
    %481 = vector.extract_strided_slice %479 {offsets = [0, 0], sizes = [2, 128], strides = [1, 1]} : vector<2x192xf32> to vector<2x128xf32>
    %482 = arith.addf %480, %481 : vector<2x128xf32>
    %cst_99 = arith.constant 5.000000e-01 : f32
    %483 = vector.broadcast %cst_99 : f32 to vector<2x128xf32>
    %484 = arith.mulf %483, %482 : vector<2x128xf32>
    %485 = math.tanh %484 : vector<2x128xf32>
    %cst_100 = arith.constant 5.000000e-01 : f32
    %486 = vector.broadcast %cst_100 : f32 to vector<2x128xf32>
    %487 = arith.mulf %486, %485 : vector<2x128xf32>
    %cst_101 = arith.constant 5.000000e-01 : f32
    %488 = vector.broadcast %cst_101 : f32 to vector<2x128xf32>
    %489 = arith.addf %487, %488 : vector<2x128xf32>
    %490 = vector.extract_strided_slice %489 {offsets = [0, 0], sizes = [2, 64], strides = [1, 1]} : vector<2x128xf32> to vector<2x64xf32>
    %491 = vector.extract_strided_slice %489 {offsets = [0, 64], sizes = [2, 64], strides = [1, 1]} : vector<2x128xf32> to vector<2x64xf32>
    %492 = vector.extract_strided_slice %474 {offsets = [0, 128], sizes = [2, 64], strides = [1, 1]} : vector<2x192xf32> to vector<2x64xf32>
    %493 = vector.extract_strided_slice %479 {offsets = [0, 128], sizes = [2, 64], strides = [1, 1]} : vector<2x192xf32> to vector<2x64xf32>
    %494 = arith.addf %493, %477 : vector<2x64xf32>
    %495 = arith.mulf %490, %494 : vector<2x64xf32>
    %496 = arith.addf %492, %495 : vector<2x64xf32>
    %497 = math.tanh %496 : vector<2x64xf32>
    %498 = arith.subf %469, %497 : vector<2x64xf32>
    %499 = arith.mulf %491, %498 : vector<2x64xf32>
    %500 = arith.addf %497, %499 : vector<2x64xf32>
    %501 = vector.extract_strided_slice %500 {offsets = [0, 0], sizes = [2, 32], strides = [1, 1]} : vector<2x64xf32> to vector<2x32xf32>
    %502 = vector.extract_strided_slice %500 {offsets = [0, 32], sizes = [2, 32], strides = [1, 1]} : vector<2x64xf32> to vector<2x32xf32>
    %cst_102 = arith.constant dense<0.000000e+00> : vector<2x192xf32>
    %503 = tpu.matmul %500, %478, %cst_102 {dimension_numbers = #tpu.dot_dimension_numbers<[1], [0], [0], [1], [0, 0, 1, 1], [], []>} : vector<2x64xf32>, vector<64x192xf32>, vector<2x192xf32> -> vector<2x192xf32>
    %504 = vector.extract_strided_slice %474 {offsets = [0, 0], sizes = [2, 128], strides = [1, 1]} : vector<2x192xf32> to vector<2x128xf32>
    %505 = vector.extract_strided_slice %503 {offsets = [0, 0], sizes = [2, 128], strides = [1, 1]} : vector<2x192xf32> to vector<2x128xf32>
    %506 = arith.addf %504, %505 : vector<2x128xf32>
    %cst_103 = arith.constant 5.000000e-01 : f32
    %507 = vector.broadcast %cst_103 : f32 to vector<2x128xf32>
    %508 = arith.mulf %507, %506 : vector<2x128xf32>
    %509 = math.tanh %508 : vector<2x128xf32>
    %cst_104 = arith.constant 5.000000e-01 : f32
    %510 = vector.broadcast %cst_104 : f32 to vector<2x128xf32>
    %511 = arith.mulf %510, %509 : vector<2x128xf32>
    %cst_105 = arith.constant 5.000000e-01 : f32
    %512 = vector.broadcast %cst_105 : f32 to vector<2x128xf32>
    %513 = arith.addf %511, %512 : vector<2x128xf32>
    %514 = vector.extract_strided_slice %513 {offsets = [0, 0], sizes = [2, 64], strides = [1, 1]} : vector<2x128xf32> to vector<2x64xf32>
    %515 = vector.extract_strided_slice %513 {offsets = [0, 64], sizes = [2, 64], strides = [1, 1]} : vector<2x128xf32> to vector<2x64xf32>
    %516 = vector.extract_strided_slice %474 {offsets = [0, 128], sizes = [2, 64], strides = [1, 1]} : vector<2x192xf32> to vector<2x64xf32>
    %517 = vector.extract_strided_slice %503 {offsets = [0, 128], sizes = [2, 64], strides = [1, 1]} : vector<2x192xf32> to vector<2x64xf32>
    %518 = arith.addf %517, %477 : vector<2x64xf32>
    %519 = arith.mulf %514, %518 : vector<2x64xf32>
    %520 = arith.addf %516, %519 : vector<2x64xf32>
    %521 = math.tanh %520 : vector<2x64xf32>
    %522 = arith.subf %500, %521 : vector<2x64xf32>
    %523 = arith.mulf %515, %522 : vector<2x64xf32>
    %524 = arith.addf %521, %523 : vector<2x64xf32>
    %525 = vector.extract_strided_slice %524 {offsets = [0, 0], sizes = [2, 32], strides = [1, 1]} : vector<2x64xf32> to vector<2x32xf32>
    %526 = vector.extract_strided_slice %524 {offsets = [0, 32], sizes = [2, 32], strides = [1, 1]} : vector<2x64xf32> to vector<2x32xf32>
    %cst_106 = arith.constant dense<0.000000e+00> : vector<2x192xf32>
    %527 = tpu.matmul %524, %478, %cst_106 {dimension_numbers = #tpu.dot_dimension_numbers<[1], [0], [0], [1], [0, 0, 1, 1], [], []>} : vector<2x64xf32>, vector<64x192xf32>, vector<2x192xf32> -> vector<2x192xf32>
    %528 = vector.extract_strided_slice %474 {offsets = [0, 0], sizes = [2, 128], strides = [1, 1]} : vector<2x192xf32> to vector<2x128xf32>
    %529 = vector.extract_strided_slice %527 {offsets = [0, 0], sizes = [2, 128], strides = [1, 1]} : vector<2x192xf32> to vector<2x128xf32>
    %530 = arith.addf %528, %529 : vector<2x128xf32>
    %cst_107 = arith.constant 5.000000e-01 : f32
    %531 = vector.broadcast %cst_107 : f32 to vector<2x128xf32>
    %532 = arith.mulf %531, %530 : vector<2x128xf32>
    %533 = math.tanh %532 : vector<2x128xf32>
    %cst_108 = arith.constant 5.000000e-01 : f32
    %534 = vector.broadcast %cst_108 : f32 to vector<2x128xf32>
    %535 = arith.mulf %534, %533 : vector<2x128xf32>
    %cst_109 = arith.constant 5.000000e-01 : f32
    %536 = vector.broadcast %cst_109 : f32 to vector<2x128xf32>
    %537 = arith.addf %535, %536 : vector<2x128xf32>
    %538 = vector.extract_strided_slice %537 {offsets = [0, 0], sizes = [2, 64], strides = [1, 1]} : vector<2x128xf32> to vector<2x64xf32>
    %539 = vector.extract_strided_slice %537 {offsets = [0, 64], sizes = [2, 64], strides = [1, 1]} : vector<2x128xf32> to vector<2x64xf32>
    %540 = vector.extract_strided_slice %474 {offsets = [0, 128], sizes = [2, 64], strides = [1, 1]} : vector<2x192xf32> to vector<2x64xf32>
    %541 = vector.extract_strided_slice %527 {offsets = [0, 128], sizes = [2, 64], strides = [1, 1]} : vector<2x192xf32> to vector<2x64xf32>
    %542 = arith.addf %541, %477 : vector<2x64xf32>
    %543 = arith.mulf %538, %542 : vector<2x64xf32>
    %544 = arith.addf %540, %543 : vector<2x64xf32>
    %545 = math.tanh %544 : vector<2x64xf32>
    %546 = arith.subf %524, %545 : vector<2x64xf32>
    %547 = arith.mulf %539, %546 : vector<2x64xf32>
    %548 = arith.addf %545, %547 : vector<2x64xf32>
    %549 = vector.extract_strided_slice %548 {offsets = [0, 0], sizes = [2, 32], strides = [1, 1]} : vector<2x64xf32> to vector<2x32xf32>
    %550 = vector.extract_strided_slice %548 {offsets = [0, 32], sizes = [2, 32], strides = [1, 1]} : vector<2x64xf32> to vector<2x32xf32>
    %cst_110 = arith.constant dense<0.000000e+00> : vector<2x192xf32>
    %551 = tpu.matmul %548, %478, %cst_110 {dimension_numbers = #tpu.dot_dimension_numbers<[1], [0], [0], [1], [0, 0, 1, 1], [], []>} : vector<2x64xf32>, vector<64x192xf32>, vector<2x192xf32> -> vector<2x192xf32>
    %552 = vector.extract_strided_slice %474 {offsets = [0, 0], sizes = [2, 128], strides = [1, 1]} : vector<2x192xf32> to vector<2x128xf32>
    %553 = vector.extract_strided_slice %551 {offsets = [0, 0], sizes = [2, 128], strides = [1, 1]} : vector<2x192xf32> to vector<2x128xf32>
    %554 = arith.addf %552, %553 : vector<2x128xf32>
    %cst_111 = arith.constant 5.000000e-01 : f32
    %555 = vector.broadcast %cst_111 : f32 to vector<2x128xf32>
    %556 = arith.mulf %555, %554 : vector<2x128xf32>
    %557 = math.tanh %556 : vector<2x128xf32>
    %cst_112 = arith.constant 5.000000e-01 : f32
    %558 = vector.broadcast %cst_112 : f32 to vector<2x128xf32>
    %559 = arith.mulf %558, %557 : vector<2x128xf32>
    %cst_113 = arith.constant 5.000000e-01 : f32
    %560 = vector.broadcast %cst_113 : f32 to vector<2x128xf32>
    %561 = arith.addf %559, %560 : vector<2x128xf32>
    %562 = vector.extract_strided_slice %561 {offsets = [0, 0], sizes = [2, 64], strides = [1, 1]} : vector<2x128xf32> to vector<2x64xf32>
    %563 = vector.extract_strided_slice %561 {offsets = [0, 64], sizes = [2, 64], strides = [1, 1]} : vector<2x128xf32> to vector<2x64xf32>
    %564 = vector.extract_strided_slice %474 {offsets = [0, 128], sizes = [2, 64], strides = [1, 1]} : vector<2x192xf32> to vector<2x64xf32>
    %565 = vector.extract_strided_slice %551 {offsets = [0, 128], sizes = [2, 64], strides = [1, 1]} : vector<2x192xf32> to vector<2x64xf32>
    %566 = arith.addf %565, %477 : vector<2x64xf32>
    %567 = arith.mulf %562, %566 : vector<2x64xf32>
    %568 = arith.addf %564, %567 : vector<2x64xf32>
    %569 = math.tanh %568 : vector<2x64xf32>
    %570 = arith.subf %548, %569 : vector<2x64xf32>
    %571 = arith.mulf %563, %570 : vector<2x64xf32>
    %572 = arith.addf %569, %571 : vector<2x64xf32>
    %573 = vector.extract_strided_slice %572 {offsets = [0, 0], sizes = [2, 32], strides = [1, 1]} : vector<2x64xf32> to vector<2x32xf32>
    %574 = vector.extract_strided_slice %572 {offsets = [0, 32], sizes = [2, 32], strides = [1, 1]} : vector<2x64xf32> to vector<2x32xf32>
    %cst_114 = arith.constant dense<0.000000e+00> : vector<2x192xf32>
    %575 = tpu.matmul %572, %478, %cst_114 {dimension_numbers = #tpu.dot_dimension_numbers<[1], [0], [0], [1], [0, 0, 1, 1], [], []>} : vector<2x64xf32>, vector<64x192xf32>, vector<2x192xf32> -> vector<2x192xf32>
    %576 = vector.extract_strided_slice %474 {offsets = [0, 0], sizes = [2, 128], strides = [1, 1]} : vector<2x192xf32> to vector<2x128xf32>
    %577 = vector.extract_strided_slice %575 {offsets = [0, 0], sizes = [2, 128], strides = [1, 1]} : vector<2x192xf32> to vector<2x128xf32>
    %578 = arith.addf %576, %577 : vector<2x128xf32>
    %cst_115 = arith.constant 5.000000e-01 : f32
    %579 = vector.broadcast %cst_115 : f32 to vector<2x128xf32>
    %580 = arith.mulf %579, %578 : vector<2x128xf32>
    %581 = math.tanh %580 : vector<2x128xf32>
    %cst_116 = arith.constant 5.000000e-01 : f32
    %582 = vector.broadcast %cst_116 : f32 to vector<2x128xf32>
    %583 = arith.mulf %582, %581 : vector<2x128xf32>
    %cst_117 = arith.constant 5.000000e-01 : f32
    %584 = vector.broadcast %cst_117 : f32 to vector<2x128xf32>
    %585 = arith.addf %583, %584 : vector<2x128xf32>
    %586 = vector.extract_strided_slice %585 {offsets = [0, 0], sizes = [2, 64], strides = [1, 1]} : vector<2x128xf32> to vector<2x64xf32>
    %587 = vector.extract_strided_slice %585 {offsets = [0, 64], sizes = [2, 64], strides = [1, 1]} : vector<2x128xf32> to vector<2x64xf32>
    %588 = vector.extract_strided_slice %474 {offsets = [0, 128], sizes = [2, 64], strides = [1, 1]} : vector<2x192xf32> to vector<2x64xf32>
    %589 = vector.extract_strided_slice %575 {offsets = [0, 128], sizes = [2, 64], strides = [1, 1]} : vector<2x192xf32> to vector<2x64xf32>
    %590 = arith.addf %589, %477 : vector<2x64xf32>
    %591 = arith.mulf %586, %590 : vector<2x64xf32>
    %592 = arith.addf %588, %591 : vector<2x64xf32>
    %593 = math.tanh %592 : vector<2x64xf32>
    %594 = arith.subf %572, %593 : vector<2x64xf32>
    %595 = arith.mulf %587, %594 : vector<2x64xf32>
    %596 = arith.addf %593, %595 : vector<2x64xf32>
    %597 = vector.extract_strided_slice %596 {offsets = [0, 0], sizes = [2, 32], strides = [1, 1]} : vector<2x64xf32> to vector<2x32xf32>
    %598 = vector.extract_strided_slice %596 {offsets = [0, 32], sizes = [2, 32], strides = [1, 1]} : vector<2x64xf32> to vector<2x32xf32>
    %cst_118 = arith.constant dense<0.000000e+00> : vector<2x192xf32>
    %599 = tpu.matmul %596, %478, %cst_118 {dimension_numbers = #tpu.dot_dimension_numbers<[1], [0], [0], [1], [0, 0, 1, 1], [], []>} : vector<2x64xf32>, vector<64x192xf32>, vector<2x192xf32> -> vector<2x192xf32>
    %600 = vector.extract_strided_slice %474 {offsets = [0, 0], sizes = [2, 128], strides = [1, 1]} : vector<2x192xf32> to vector<2x128xf32>
    %601 = vector.extract_strided_slice %599 {offsets = [0, 0], sizes = [2, 128], strides = [1, 1]} : vector<2x192xf32> to vector<2x128xf32>
    %602 = arith.addf %600, %601 : vector<2x128xf32>
    %cst_119 = arith.constant 5.000000e-01 : f32
    %603 = vector.broadcast %cst_119 : f32 to vector<2x128xf32>
    %604 = arith.mulf %603, %602 : vector<2x128xf32>
    %605 = math.tanh %604 : vector<2x128xf32>
    %cst_120 = arith.constant 5.000000e-01 : f32
    %606 = vector.broadcast %cst_120 : f32 to vector<2x128xf32>
    %607 = arith.mulf %606, %605 : vector<2x128xf32>
    %cst_121 = arith.constant 5.000000e-01 : f32
    %608 = vector.broadcast %cst_121 : f32 to vector<2x128xf32>
    %609 = arith.addf %607, %608 : vector<2x128xf32>
    %610 = vector.extract_strided_slice %609 {offsets = [0, 0], sizes = [2, 64], strides = [1, 1]} : vector<2x128xf32> to vector<2x64xf32>
    %611 = vector.extract_strided_slice %609 {offsets = [0, 64], sizes = [2, 64], strides = [1, 1]} : vector<2x128xf32> to vector<2x64xf32>
    %612 = vector.extract_strided_slice %474 {offsets = [0, 128], sizes = [2, 64], strides = [1, 1]} : vector<2x192xf32> to vector<2x64xf32>
    %613 = vector.extract_strided_slice %599 {offsets = [0, 128], sizes = [2, 64], strides = [1, 1]} : vector<2x192xf32> to vector<2x64xf32>
    %614 = arith.addf %613, %477 : vector<2x64xf32>
    %615 = arith.mulf %610, %614 : vector<2x64xf32>
    %616 = arith.addf %612, %615 : vector<2x64xf32>
    %617 = math.tanh %616 : vector<2x64xf32>
    %618 = arith.subf %596, %617 : vector<2x64xf32>
    %619 = arith.mulf %611, %618 : vector<2x64xf32>
    %620 = arith.addf %617, %619 : vector<2x64xf32>
    %621 = vector.extract_strided_slice %620 {offsets = [0, 0], sizes = [2, 32], strides = [1, 1]} : vector<2x64xf32> to vector<2x32xf32>
    %622 = vector.extract_strided_slice %620 {offsets = [0, 32], sizes = [2, 32], strides = [1, 1]} : vector<2x64xf32> to vector<2x32xf32>
    %cst_122 = arith.constant dense<0.000000e+00> : vector<2x192xf32>
    %623 = tpu.matmul %620, %478, %cst_122 {dimension_numbers = #tpu.dot_dimension_numbers<[1], [0], [0], [1], [0, 0, 1, 1], [], []>} : vector<2x64xf32>, vector<64x192xf32>, vector<2x192xf32> -> vector<2x192xf32>
    %624 = vector.extract_strided_slice %474 {offsets = [0, 0], sizes = [2, 128], strides = [1, 1]} : vector<2x192xf32> to vector<2x128xf32>
    %625 = vector.extract_strided_slice %623 {offsets = [0, 0], sizes = [2, 128], strides = [1, 1]} : vector<2x192xf32> to vector<2x128xf32>
    %626 = arith.addf %624, %625 : vector<2x128xf32>
    %cst_123 = arith.constant 5.000000e-01 : f32
    %627 = vector.broadcast %cst_123 : f32 to vector<2x128xf32>
    %628 = arith.mulf %627, %626 : vector<2x128xf32>
    %629 = math.tanh %628 : vector<2x128xf32>
    %cst_124 = arith.constant 5.000000e-01 : f32
    %630 = vector.broadcast %cst_124 : f32 to vector<2x128xf32>
    %631 = arith.mulf %630, %629 : vector<2x128xf32>
    %cst_125 = arith.constant 5.000000e-01 : f32
    %632 = vector.broadcast %cst_125 : f32 to vector<2x128xf32>
    %633 = arith.addf %631, %632 : vector<2x128xf32>
    %634 = vector.extract_strided_slice %633 {offsets = [0, 0], sizes = [2, 64], strides = [1, 1]} : vector<2x128xf32> to vector<2x64xf32>
    %635 = vector.extract_strided_slice %633 {offsets = [0, 64], sizes = [2, 64], strides = [1, 1]} : vector<2x128xf32> to vector<2x64xf32>
    %636 = vector.extract_strided_slice %474 {offsets = [0, 128], sizes = [2, 64], strides = [1, 1]} : vector<2x192xf32> to vector<2x64xf32>
    %637 = vector.extract_strided_slice %623 {offsets = [0, 128], sizes = [2, 64], strides = [1, 1]} : vector<2x192xf32> to vector<2x64xf32>
    %638 = arith.addf %637, %477 : vector<2x64xf32>
    %639 = arith.mulf %634, %638 : vector<2x64xf32>
    %640 = arith.addf %636, %639 : vector<2x64xf32>
    %641 = math.tanh %640 : vector<2x64xf32>
    %642 = arith.subf %620, %641 : vector<2x64xf32>
    %643 = arith.mulf %635, %642 : vector<2x64xf32>
    %644 = arith.addf %641, %643 : vector<2x64xf32>
    %645 = vector.extract_strided_slice %644 {offsets = [0, 0], sizes = [2, 32], strides = [1, 1]} : vector<2x64xf32> to vector<2x32xf32>
    %646 = vector.extract_strided_slice %644 {offsets = [0, 32], sizes = [2, 32], strides = [1, 1]} : vector<2x64xf32> to vector<2x32xf32>
    %cst_126 = arith.constant dense<0.000000e+00> : vector<2x192xf32>
    %647 = tpu.matmul %644, %478, %cst_126 {dimension_numbers = #tpu.dot_dimension_numbers<[1], [0], [0], [1], [0, 0, 1, 1], [], []>} : vector<2x64xf32>, vector<64x192xf32>, vector<2x192xf32> -> vector<2x192xf32>
    %648 = vector.extract_strided_slice %474 {offsets = [0, 0], sizes = [2, 128], strides = [1, 1]} : vector<2x192xf32> to vector<2x128xf32>
    %649 = vector.extract_strided_slice %647 {offsets = [0, 0], sizes = [2, 128], strides = [1, 1]} : vector<2x192xf32> to vector<2x128xf32>
    %650 = arith.addf %648, %649 : vector<2x128xf32>
    %cst_127 = arith.constant 5.000000e-01 : f32
    %651 = vector.broadcast %cst_127 : f32 to vector<2x128xf32>
    %652 = arith.mulf %651, %650 : vector<2x128xf32>
    %653 = math.tanh %652 : vector<2x128xf32>
    %cst_128 = arith.constant 5.000000e-01 : f32
    %654 = vector.broadcast %cst_128 : f32 to vector<2x128xf32>
    %655 = arith.mulf %654, %653 : vector<2x128xf32>
    %cst_129 = arith.constant 5.000000e-01 : f32
    %656 = vector.broadcast %cst_129 : f32 to vector<2x128xf32>
    %657 = arith.addf %655, %656 : vector<2x128xf32>
    %658 = vector.extract_strided_slice %657 {offsets = [0, 0], sizes = [2, 64], strides = [1, 1]} : vector<2x128xf32> to vector<2x64xf32>
    %659 = vector.extract_strided_slice %657 {offsets = [0, 64], sizes = [2, 64], strides = [1, 1]} : vector<2x128xf32> to vector<2x64xf32>
    %660 = vector.extract_strided_slice %474 {offsets = [0, 128], sizes = [2, 64], strides = [1, 1]} : vector<2x192xf32> to vector<2x64xf32>
    %661 = vector.extract_strided_slice %647 {offsets = [0, 128], sizes = [2, 64], strides = [1, 1]} : vector<2x192xf32> to vector<2x64xf32>
    %662 = arith.addf %661, %477 : vector<2x64xf32>
    %663 = arith.mulf %658, %662 : vector<2x64xf32>
    %664 = arith.addf %660, %663 : vector<2x64xf32>
    %665 = math.tanh %664 : vector<2x64xf32>
    %666 = arith.subf %644, %665 : vector<2x64xf32>
    %667 = arith.mulf %659, %666 : vector<2x64xf32>
    %668 = arith.addf %665, %667 : vector<2x64xf32>
    %669 = vector.extract_strided_slice %668 {offsets = [0, 0], sizes = [2, 32], strides = [1, 1]} : vector<2x64xf32> to vector<2x32xf32>
    %670 = vector.extract_strided_slice %668 {offsets = [0, 32], sizes = [2, 32], strides = [1, 1]} : vector<2x64xf32> to vector<2x32xf32>
    %c424 = arith.constant 424 : index
    %c0_130 = arith.constant 0 : index
    %671 = vector.load %arg2[%c424, %c0_130] : memref<488x192xf32, #tpu.memory_space<vmem>>, vector<64x4xf32>
    %c8_131 = arith.constant 8 : index
    %c0_132 = arith.constant 0 : index
    %672 = vector.load %arg3[%c8_131, %c0_132] : memref<9x192xf32, #tpu.memory_space<vmem>>, vector<1x4xf32>
    %673 = tpu.concatenate %501, %670 in 1 : vector<2x32xf32>, vector<2x32xf32> -> vector<2x64xf32>
    %cst_133 = arith.constant dense<0.000000e+00> : vector<2x4xf32>
    %674 = tpu.matmul %673, %671, %cst_133 {dimension_numbers = #tpu.dot_dimension_numbers<[1], [0], [0], [1], [0, 0, 1, 1], [], []>} : vector<2x64xf32>, vector<64x4xf32>, vector<2x4xf32> -> vector<2x4xf32>
    %675 = vector.broadcast %672 : vector<1x4xf32> to vector<2x4xf32>
    %676 = arith.addf %674, %675 : vector<2x4xf32>
    %677 = tpu.concatenate %525, %646 in 1 : vector<2x32xf32>, vector<2x32xf32> -> vector<2x64xf32>
    %cst_134 = arith.constant dense<0.000000e+00> : vector<2x4xf32>
    %678 = tpu.matmul %677, %671, %cst_134 {dimension_numbers = #tpu.dot_dimension_numbers<[1], [0], [0], [1], [0, 0, 1, 1], [], []>} : vector<2x64xf32>, vector<64x4xf32>, vector<2x4xf32> -> vector<2x4xf32>
    %679 = vector.broadcast %672 : vector<1x4xf32> to vector<2x4xf32>
    %680 = arith.addf %678, %679 : vector<2x4xf32>
    %681 = tpu.concatenate %549, %622 in 1 : vector<2x32xf32>, vector<2x32xf32> -> vector<2x64xf32>
    %cst_135 = arith.constant dense<0.000000e+00> : vector<2x4xf32>
    %682 = tpu.matmul %681, %671, %cst_135 {dimension_numbers = #tpu.dot_dimension_numbers<[1], [0], [0], [1], [0, 0, 1, 1], [], []>} : vector<2x64xf32>, vector<64x4xf32>, vector<2x4xf32> -> vector<2x4xf32>
    %683 = vector.broadcast %672 : vector<1x4xf32> to vector<2x4xf32>
    %684 = arith.addf %682, %683 : vector<2x4xf32>
    %685 = tpu.concatenate %573, %598 in 1 : vector<2x32xf32>, vector<2x32xf32> -> vector<2x64xf32>
    %cst_136 = arith.constant dense<0.000000e+00> : vector<2x4xf32>
    %686 = tpu.matmul %685, %671, %cst_136 {dimension_numbers = #tpu.dot_dimension_numbers<[1], [0], [0], [1], [0, 0, 1, 1], [], []>} : vector<2x64xf32>, vector<64x4xf32>, vector<2x4xf32> -> vector<2x4xf32>
    %687 = vector.broadcast %672 : vector<1x4xf32> to vector<2x4xf32>
    %688 = arith.addf %686, %687 : vector<2x4xf32>
    %689 = tpu.concatenate %597, %574 in 1 : vector<2x32xf32>, vector<2x32xf32> -> vector<2x64xf32>
    %cst_137 = arith.constant dense<0.000000e+00> : vector<2x4xf32>
    %690 = tpu.matmul %689, %671, %cst_137 {dimension_numbers = #tpu.dot_dimension_numbers<[1], [0], [0], [1], [0, 0, 1, 1], [], []>} : vector<2x64xf32>, vector<64x4xf32>, vector<2x4xf32> -> vector<2x4xf32>
    %691 = vector.broadcast %672 : vector<1x4xf32> to vector<2x4xf32>
    %692 = arith.addf %690, %691 : vector<2x4xf32>
    %693 = tpu.concatenate %621, %550 in 1 : vector<2x32xf32>, vector<2x32xf32> -> vector<2x64xf32>
    %cst_138 = arith.constant dense<0.000000e+00> : vector<2x4xf32>
    %694 = tpu.matmul %693, %671, %cst_138 {dimension_numbers = #tpu.dot_dimension_numbers<[1], [0], [0], [1], [0, 0, 1, 1], [], []>} : vector<2x64xf32>, vector<64x4xf32>, vector<2x4xf32> -> vector<2x4xf32>
    %695 = vector.broadcast %672 : vector<1x4xf32> to vector<2x4xf32>
    %696 = arith.addf %694, %695 : vector<2x4xf32>
    %697 = tpu.concatenate %645, %526 in 1 : vector<2x32xf32>, vector<2x32xf32> -> vector<2x64xf32>
    %cst_139 = arith.constant dense<0.000000e+00> : vector<2x4xf32>
    %698 = tpu.matmul %697, %671, %cst_139 {dimension_numbers = #tpu.dot_dimension_numbers<[1], [0], [0], [1], [0, 0, 1, 1], [], []>} : vector<2x64xf32>, vector<64x4xf32>, vector<2x4xf32> -> vector<2x4xf32>
    %699 = vector.broadcast %672 : vector<1x4xf32> to vector<2x4xf32>
    %700 = arith.addf %698, %699 : vector<2x4xf32>
    %701 = tpu.concatenate %669, %502 in 1 : vector<2x32xf32>, vector<2x32xf32> -> vector<2x64xf32>
    %cst_140 = arith.constant dense<0.000000e+00> : vector<2x4xf32>
    %702 = tpu.matmul %701, %671, %cst_140 {dimension_numbers = #tpu.dot_dimension_numbers<[1], [0], [0], [1], [0, 0, 1, 1], [], []>} : vector<2x64xf32>, vector<64x4xf32>, vector<2x4xf32> -> vector<2x4xf32>
    %703 = vector.broadcast %672 : vector<1x4xf32> to vector<2x4xf32>
    %704 = arith.addf %702, %703 : vector<2x4xf32>
    %705 = tpu.concatenate %676, %680, %684, %688, %692, %696, %700, %704 in 1 : vector<2x4xf32>, vector<2x4xf32>, vector<2x4xf32>, vector<2x4xf32>, vector<2x4xf32>, vector<2x4xf32>, vector<2x4xf32>, vector<2x4xf32> -> vector<2x32xf32>
    %706 = tpu.concatenate %705, %457, %450, %451 in 1 : vector<2x32xf32>, vector<2x16xf32>, vector<2x16xf32>, vector<2x16xf32> -> vector<2x80xf32>
    %c0_141 = arith.constant 0 : index
    %c0_142 = arith.constant 0 : index
    %707 = vector.load %arg4[%c0_141, %c0_142] : memref<2x80xf32, #tpu.memory_space<vmem>>, vector<2x80xf32>
    tpu.vector_store %arg4[%c0_141, %c0_142], %706 {strides = array<i32>} : memref<2x80xf32, #tpu.memory_space<vmem>>, vector<2x80xf32>,
    return
  }
}

</mosaic_0001>

<bundles_post_ra>
// kernel: vae_forward.1
= control target key start
LH: loop header
LB: loop body
LE: loop exit
PB: predicated region body
PF: predicated region fallthrough
CT: control target
= control target key end

     0   :  { %vm48_vm0 = vcmask 1043456   ;;  %s5248_s19 = smov 16   ;;  %s5249_s20 = smov 4   ;;  %vm46_vm1 = vcmask 1041408   ;;  %vm50_vm2 = vcmask 1045504   ;;  %vm178_vm3 = vcmask 261120   ;;  %s6474_s0 = inlined_call_operand.vmem [shape: f32[2,32], index: 0, kind: input, shape index: {}]   ;;  %s6475_s2 = inlined_call_operand.vmem [shape: f32[488,192], index: 2, kind: input, shape index: {}]   ;;  %s6476_s3 = inlined_call_operand.vmem [shape: f32[9,192], index: 3, kind: input, shape index: {}]   ;;  %s6477_s1 = inlined_call_operand.vmem [shape: f32[2,16], index: 1, kind: input, shape index: {}]   ;;  %s6478_s4 = inlined_call_operand.vmem [shape: f32[2,80], index: 4, kind: output, shape index: {}]  }
   0x1   :  { %v5297_v0 = vld [vmem:[%s6474_s0] sm:$0x3]  ;;  %s5250_s0 = smov 20   ;;  %s5251_s21 = smov 8   ;;  %v19_v5 = vld [vmem:[%s6475_s2 + $0x8] sm:$0xf] }
   0x2   :  { %v18_v1 = vld [vmem:[%s6475_s2] sm:$0xf]  ;;  %64 = vrot.lane.b32.xlu1 %v5297_v0, %s5248_s19  ;;  %v22_v2 = vrot.slane %v5297_v0, 6  ;;  %v26_v3 = vrot.slane %v5297_v0, 4  ;;  %v30_v4 = vrot.slane %v5297_v0, 2  ;;  %s5252_s22 = smov 24  }
   0x3   :  { %4301 = vmatprep.subr.msk.mxu0 %vm48_vm0, %v18_v1  ;;  %s5253_s23 = smov 12   ;;  %s5254_s24 = smov 124   ;;  %v322_v8 = vld [vmem:[%s6475_s2 + $0x18] sm:$0xff]  ;;  %v324_v9 = vld [vmem:[%s6475_s2 + $0x28] sm:$0xff]  ;;  %vm82_vm4 = vcmask 31744   ;;  %v321_v35 = vld [vmem:[%s6475_s2 + $0x10] sm:$0xff] }
   0x4   :  { %4302 = vmatpush3.msk.msra.mxu0 %vm48_vm0, %v18_v1  ;;  %55 = vrot.lane.b32.xlu0 %v22_v2, %s5249_s20  ;;  %s5255_s27 = smov 28   ;;  %s5256_s28 = smov 32   ;;  %v5328_v11 = vpack.c.bf16 %v324_v9, %v322_v8  ;;  %v323_v36 = vld [vmem:[%s6475_s2 + $0x20] sm:$0xff]  ;;  %v326_v37 = vld [vmem:[%s6475_s2 + $0x38] sm:$0xff]  ;;  %v328_v38 = vld [vmem:[%s6475_s2 + $0x48] sm:$0xff]  ;;  %v5263_v49 = vmov 0.0  }
   0x5   :  { %s5257_s29 = smov 112   ;;  %s5258_s30 = smov 120   ;;  %v5361_v40 = vpack.c.bf16 %v323_v36, %v321_v35  ;;  %v5363_v42 = vpack.c.bf16 %v328_v38, %v326_v37  ;;  %v325_v43 = vld [vmem:[%s6475_s2 + $0x30] sm:$0xff]  ;;  %v327_v44 = vld [vmem:[%s6475_s2 + $0x40] sm:$0xff]  ;;  %v330_v46 = vld [vmem:[%s6475_s2 + $0x58] sm:$0xff]  ;;  %vm297_vm5 = vcmask 523264  }
   0x6   :  { %67 = vrot.lane.b32.xlu1 %v22_v2, %s5250_s0  ;;  %s5259_s5 = smov 116   ;;  %s5260_s6 = smov 108   ;;  %4547 = vmatprep.subr.bf16.mxu0 %v5328_v11  ;;  %v332_v47 = vld [vmem:[%s6475_s2 + $0x68] sm:$0xff]  ;;  %v5380_v48 = vpack.c.bf16 %v327_v44, %v325_v43  ;;  %v329_v51 = vld [vmem:[%s6475_s2 + $0x50] sm:$0xff]  ;;  %v331_v52 = vld [vmem:[%s6475_s2 + $0x60] sm:$0xff]  ;;  %vm300_vm6 = vcmask 785408  }
   0x7   :  { %s5261_s7 = smov 104   ;;  %s5262_s8 = smov 100   ;;  %v5384_v50 = vpack.c.bf16 %v332_v47, %v330_v46  ;;  %v334_v53 = vld [vmem:[%s6475_s2 + $0x78] sm:$0xff]  ;;  %v336_v54 = vld [vmem:[%s6475_s2 + $0x88] sm:$0xff]  ;;  %v5399_v55 = vpack.c.bf16 %v331_v52, %v329_v51  ;;  %v333_v57 = vld [vmem:[%s6475_s2 + $0x70] sm:$0xff]  ;;  %vm5267_vm7 = vmmov 0  }
   0x8   :  { %58 = vrot.lane.b32.xlu0 %v26_v3, %s5251_s21  ;;  %v5402_v56 = vpack.c.bf16 %v336_v54, %v334_v53  ;;  %v335_v58 = vld [vmem:[%s6475_s2 + $0x80] sm:$0xff]  ;;  %vm2531_vm8 = vcmask 130048   ;;  %vm2619_vm9 = vcmask 1040384   ;;  %vm4108_vm10 = vcmask 64512  }
   0x9   :  { %v5411_v59 = vpack.c.bf16 %v335_v58, %v333_v57  ;;  %vm4110_vm11 = vcmask 97280   ;;  %vm4113_vm12 = vcmask 162816   ;;  %vm4115_vm13 = vcmask 195584  }
   0xa   :  { %70 = vrot.lane.b32.xlu1 %v26_v3, %s5252_s22  ;;  %vm4117_vm14 = vcmask 228352   ;;  %vm4127_vm15 = vcmask 392192  }
   0xc   :  { %61 = vrot.lane.b32.xlu0 %v30_v4, %s5253_s23 }
   0xe   :  { %23 = vrot.lane.b32.xlu1 %v22_v2, %s5254_s24 }
  0x10   :  { %73 = vrot.lane.b32.xlu0 %v30_v4, %s5255_s27 }
  0x12   :  { %176 = vrot.lane.b32.xlu1 %v19_v5, %s5256_s28 }
  0x14   :  { %174 = vrot.lane.b32.xlu0 %v18_v1, %s5256_s28 }
  0x16   :  { %34 = vrot.lane.b32.xlu1 %v5297_v0, %s5257_s29 }
  0x18   :  { %27 = vrot.lane.b32.xlu0 %v26_v3, %s5258_s30 }
  0x1a   :  { %31 = vrot.lane.b32.xlu1 %v30_v4, %s5259_s5  ;;  %s5264_s5 = smov 64  }
  0x1c   :  { %37 = vrot.lane.b32.xlu0 %v22_v2, %s5260_s6  ;;  %s5265_s6 = smov 96  }
  0x20   :  { %40 = vrot.lane.b32.xlu0 %v26_v3, %s5261_s7 }
  0x24   :  { %43 = vrot.lane.b32.xlu0 %v30_v4, %s5262_s8  ;;  %v306_v4 = vlaneseq }
  0x26   :  { %v307_v5 = vshrl.u32 %v306_v4, 7 }
  0x74   :  { %v65_v6 = vpop.permute.xlu1 %64 }
  0x76   :  { %v56_v7 = vpop.permute.xlu0 %55 }
  0x77   :  { %v76_v14 = vsel %vm46_vm1, %v5297_v0, %v56_v7  ;;  %v20_v7 = vld [vmem:[%s6476_s3] ss:$8 sm:$0x3] }
  0x78   :  { %v68_v10 = vpop.permute.xlu1 %67 }
  0x79   :  { %v79_v19 = vsel %vm46_vm1, %v65_v6, %v68_v10  ;;  %v5446_v6 = vsub.s32 0, %v307_v5 }
  0x7a   :  { %v59_v12 = vpop.permute.xlu0 %58 }
  0x7b   :  { %v77_v15 = vsel %vm48_vm0, %v76_v14, %v59_v12  ;;  %v5453_v10 = vrot.slane %v20_v7, %v5446_v6 }
  0x7c   :  { %v71_v13 = vpop.permute.xlu1 %70 }
  0x7d   :  { %v80_v20 = vsel %vm48_vm0, %v79_v19, %v71_v13  ;;  %v5461_v19 = vsub.s32 1, %v307_v5 }
  0x7e   :  { %v62_v16 = vpop.permute.xlu0 %61 }
  0x7f   :  { %v78_v17 = vsel %vm50_vm2, %v77_v15, %v62_v16 }
  0x80   :  { %169 = vrot.lane.b32.xlu1 %v78_v17, %s5262_s8  ;;  %v24_v18 = vpop.permute.xlu1 %23 }
  0x81   :  { %v47_v26 = vsel %vm46_vm1, %v5297_v0, %v24_v18 }
  0x82   :  { %v74_v21 = vpop.permute.xlu0 %73 }
  0x83   :  { %v81_v22 = vsel %vm50_vm2, %v80_v20, %v74_v21 }
  0x84   :  { %171 = vrot.lane.b32.xlu1 %v81_v22, %s5262_s8  ;;  %v177_v23 = vpop.permute.xlu1 %176  ;;  %v5466_v22 = vld [vmem:[%s6476_s3 + $0x1] ss:$0 sm:$0xff] }
  0x86   :  { %v175_v24 = vpop.permute.xlu0 %174 }
  0x87   :  { %v179_v25 = vsel %vm178_vm3, %v175_v24, %v177_v23 }
  0x88   :  { %v35_v27 = vpop.permute.xlu1 %34  ;;  %4306 = vmatprep.subr.msk.mxu1 %vm48_vm0, %v179_v25 }
  0x89   :  { %4307 = vmatpush3.msk.msra.mxu1 %vm48_vm0, %v179_v25  ;;  %v5469_v25 = vrot.slane %v20_v7, %v5461_v19 }
  0x8a   :  { %v28_v28 = vpop.permute.xlu0 %27  ;;  %4563 = vmatprep.subr.bf16.mxu1 %v5328_v11 }
  0x8b   :  { %v49_v29 = vsel %vm48_vm0, %v47_v26, %v28_v28 }
  0x8c   :  { %v32_v30 = vpop.permute.xlu1 %31 }
  0x8d   :  { %v51_v31 = vsel %vm50_vm2, %v49_v29, %v32_v30 }
  0x8e   :  { %v38_v32 = vpop.permute.xlu0 %37  ;;  %4303 = vmatprep.mubr.msk.f32.mxu0 %vm82_vm4, %v51_v31 }
  0x8f   :  { %v52_v33 = vsel %vm46_vm1, %v35_v27, %v38_v32 }
  0x92   :  { %v41_v34 = vpop.permute.xlu0 %40 }
  0x93   :  { %v53_v39 = vsel %vm48_vm0, %v52_v33, %v41_v34 }
  0x96   :  { %v44_v41 = vpop.permute.xlu0 %43 }
  0x97   :  { %v54_v45 = vsel %vm50_vm2, %v53_v39, %v44_v41 }
  0x98   :  { %4304 = vmatmul.mubr.msk.f32.vlgmr.msra.gmra.mrb[0].mxu0 %vm82_vm4, %v54_v45 }
  0x99   :  { %4549 = vmatpush1.bf16.msra.mxu0 %v5361_v40  ;;  %404 = vmatprep.mubr.f32.mxu0 %v5263_v49 }
  0x9a   :  { %4551 = vmatprep.subr.bf16.mxu0 %v5363_v42 }
  0x9d   :  { %4553 = vmatpush1.bf16.msra.mxu0 %v5380_v48 }
  0x9e   :  { %4555 = vmatprep.subr.bf16.mxu0 %v5384_v50 }
  0xa1   :  { %4557 = vmatpush1.bf16.msra.mxu0 %v5399_v55 }
  0xa2   :  { %4559 = vmatprep.subr.bf16.mxu0 %v5402_v56 }
  0xa5   :  { %4561 = vmatpush1.bf16.msra.mxu0 %v5411_v59 }
  0xa6   :  { %4579 = vmatprep.subr.bf16.mxu0 %v5328_v11 }
  0xa8   :  { %405 = vmatmul.mubr.f32.vlgmr.msra.gmra.mrb[2].mxu0 %v5263_v49 }
  0xa9   :  { %4581 = vmatpush1.bf16.msra.mxu0 %v5361_v40  ;;  %603 = vmatprep.mubr.f32.mxu0 %v5263_v49 }
  0xaa   :  { %4583 = vmatprep.subr.bf16.mxu0 %v5363_v42 }
  0xad   :  { %4585 = vmatpush1.bf16.msra.mxu0 %v5380_v48 }
  0xae   :  { %4587 = vmatprep.subr.bf16.mxu0 %v5384_v50 }
  0xb1   :  { %4589 = vmatpush1.bf16.msra.mxu0 %v5399_v55 }
  0xb2   :  { %4591 = vmatprep.subr.bf16.mxu0 %v5402_v56 }
  0xb5   :  { %4593 = vmatpush1.bf16.msra.mxu0 %v5411_v59 }
  0xb6   :  { %4611 = vmatprep.subr.bf16.mxu0 %v5328_v11 }
  0xf2   :  { %v170_v60 = vpop.permute.xlu1 %169 }
  0xf3   :  { %4308 = vmatprep.mubr.msk.f32.mxu1 %vm82_vm4, %v170_v60 }
  0xf6   :  { %v172_v61 = vpop.permute.xlu1 %171 }
  0xf7   :  { %4309 = vmatmul.mubr.msk.f32.vlgmr.msra.gmra.mrb[0].mxu1 %vm82_vm4, %v172_v61 }
  0xf8   :  { %4565 = vmatpush1.bf16.msra.mxu1 %v5361_v40  ;;  %498 = vmatprep.mubr.f32.mxu1 %v5263_v49 }
  0xf9   :  { %4567 = vmatprep.subr.bf16.mxu1 %v5363_v42 }
  0xfc   :  { %4569 = vmatpush1.bf16.msra.mxu1 %v5380_v48 }
  0xfd   :  { %4571 = vmatprep.subr.bf16.mxu1 %v5384_v50 }
 0x100   :  { %4573 = vmatpush1.bf16.msra.mxu1 %v5399_v55 }
 0x101   :  { %4575 = vmatprep.subr.bf16.mxu1 %v5402_v56 }
 0x104   :  { %4577 = vmatpush1.bf16.msra.mxu1 %v5411_v59 }
 0x105   :  { %4595 = vmatprep.subr.bf16.mxu1 %v5328_v11 }
 0x16b   :  { %v5437_v62 = vpop.f32.mrb[0].mxu0 }
 0x16c   :  { %v158_v63 = vpop.f32.mrb[1].mxu0 }
 0x16d   :  { %271 = vrot.lane.b32.xlu1 %v158_v63, %s5256_s28 }
 0x171   :  { %283 = vrot.lane.b32.xlu1 %v158_v63, %s5264_s5 }
 0x17b   :  { %v406_v0 = vpop.f32.mrb[2].mxu0 }
 0x17c   :  { %v408_v1 = vpop.f32.mrb[3].mxu0 }
 0x17d   :  { %v416_v28 = vadd.f32 %v408_v1, %v5466_v22 }
 0x1ca   :  { %v5441_v2 = vpop.f32.mrb[0].mxu1 }
 0x1cb   :  { %v252_v3 = vpop.f32.mrb[1].mxu1 }
 0x1cc   :  { %263 = vrot.lane.b32.xlu0 %v252_v3, %s5256_s28 }
 0x1d0   :  { %277 = vrot.lane.b32.xlu0 %v252_v3, %s5264_s5 }
 0x1d4   :  { %289 = vrot.lane.b32.xlu0 %v252_v3, %s5265_s6 }
 0x1df   :  { %v272_v12 = vpop.permute.xlu1 %271 }
 0x1e3   :  { %v284_v23 = vpop.permute.xlu1 %283 }
 0x23e   :  { %v264_v8 = vpop.permute.xlu0 %263 }
 0x23f   :  { %v295_v9 = vsel %vm178_vm3, %v158_v63, %v264_v8 }
 0x240   :  { %v298_v13 = vsel %vm297_vm5, %v295_v9, %v272_v12 }
 0x242   :  { %v278_v14 = vpop.permute.xlu0 %277 }
 0x243   :  { %v301_v15 = vsel %vm300_vm6, %v298_v13, %v278_v14 }
 0x244   :  { %v5458_v16 = vadd.f32 %v5453_v10, %v301_v15 }
 0x246   :  { %v411_v17 = vadd.f32 %v406_v0, %v5458_v16  ;;  %v290_v20 = vpop.permute.xlu0 %289 }
 0x247   :  { %v303_v26 = vsel %vm178_vm3, %v284_v23, %v290_v20 }
 0x248   :  { %v412_v18 = vmul.f32 0.5, %v411_v17  ;;  %v5474_v30 = vadd.f32 %v5469_v25, %v303_v26 }
 0x24a   :  { %5150 = vtanh.f32 %v412_v18 }
 0x254   :  { %v5151_v21 = vpop.eup %5150 }
 0x255   :  { %v414_v24 = vmul.f32 0.5, %v5151_v21 }
 0x257   :  { %v415_v27 = vadd.f32 0.5, %v414_v24 }
 0x259   :  { %v417_v29 = vmul.f32 %v416_v28, %v415_v27 }
 0x25b   :  { %v418_v31 = vadd.f32 %v417_v29, %v5474_v30 }
 0x25d   :  { %5152 = vtanh.f32 %v418_v31 }
 0x267   :  { %v5153_v32 = vpop.eup %5152 }
 0x268   :  { %v420_v33 = vsub.f32 0.0, %v5153_v32 }
 0x26a   :  { %422 = vrot.lane.b32.xlu1 %v420_v33, %s5264_s5 }
 0x2dc   :  { %v423_v34 = vpop.permute.xlu1 %422 }
 0x2dd   :  { %v425_v35 = vmul.f32 %v423_v34, %v415_v27 }
 0x2df   :  { %427 = vrot.lane.b32.xlu0 %v425_v35, %s5264_s5 }
 0x351   :  { %v428_v36 = vpop.permute.xlu0 %427 }
 0x352   :  { %v5479_v37 = vadd.f32 %v5153_v32, %v428_v36 }
 0x354   :  { %4142 = vmatmul.mubr.msk.f32.vlgmr.msra.gmra.mrb[2].mxu1 %vm297_vm5, %v5479_v37 }
 0x355   :  { %4597 = vmatpush1.bf16.msra.mxu1 %v5361_v40  ;;  %708 = vmatprep.mubr.f32.mxu1 %v5263_v49 }
 0x356   :  { %4599 = vmatprep.subr.bf16.mxu1 %v5363_v42 }
 0x359   :  { %4601 = vmatpush1.bf16.msra.mxu1 %v5380_v48 }
 0x35a   :  { %4603 = vmatprep.subr.bf16.mxu1 %v5384_v50 }
 0x35d   :  { %4605 = vmatpush1.bf16.msra.mxu1 %v5399_v55 }
 0x35e   :  { %4607 = vmatprep.subr.bf16.mxu1 %v5402_v56 }
 0x361   :  { %4609 = vmatpush1.bf16.msra.mxu1 %v5411_v59 }
 0x362   :  { %4627 = vmatprep.subr.bf16.mxu1 %v5328_v11 }
 0x427   :  { %v500_v38 = vpop.f32.mrb[2].mxu1 }
 0x428   :  { %v506_v39 = vrot.slane %v500_v38, 6  ;;  %v502_v41 = vpop.f32.mrb[3].mxu1 }
 0x429   :  { %v513_v45 = vadd.f32 %v502_v41, %v5466_v22 }
 0x42a   :  { %v508_v43 = vadd.f32 %v506_v39, %v5458_v16 }
 0x42b   :  { %v515_v52 = vrot.slane %v513_v45, 6 }
 0x42c   :  { %v509_v44 = vmul.f32 0.5, %v508_v43 }
 0x42e   :  { %5154 = vtanh.f32 %v509_v44 }
 0x438   :  { %v5155_v46 = vpop.eup %5154 }
 0x439   :  { %v511_v47 = vmul.f32 0.5, %v5155_v46 }
 0x43b   :  { %v512_v51 = vadd.f32 0.5, %v511_v47 }
 0x43d   :  { %v517_v53 = vmul.f32 %v515_v52, %v512_v51 }
 0x43f   :  { %v518_v54 = vadd.f32 %v517_v53, %v5474_v30 }
 0x441   :  { %5156 = vtanh.f32 %v518_v54 }
 0x44b   :  { %v5157_v57 = vpop.eup %5156 }
 0x44c   :  { %v521_v58 = vrot.slane %v5157_v57, 2 }
 0x44e   :  { %v523_v60 = vsub.f32 %v5479_v37, %v521_v58 }
 0x450   :  { %v525_v61 = vrot.slane %v523_v60, 6 }
 0x452   :  { %526 = vrot.lane.b32.xlu1 %v525_v61, %s5264_s5 }
 0x4c4   :  { %v527_v63 = vpop.permute.xlu1 %526 }
 0x4c5   :  { %v529_v0 = vmul.f32 %v527_v63, %v512_v51 }
 0x4c7   :  { %531 = vrot.lane.b32.xlu0 %v529_v0, %s5264_s5 }
 0x539   :  { %v532_v1 = vpop.permute.xlu0 %531 }
 0x53a   :  { %v5498_v3 = vadd.f32 %v5157_v57, %v532_v1 }
 0x53c   :  { %v536_v4 = vrot.slane %v5498_v3, 2 }
 0x53e   :  { %4143 = vmatmul.mubr.msk.f32.vlgmr.msra.gmra.mrb[4].mxu0 %vm297_vm5, %v536_v4 }
 0x53f   :  { %4613 = vmatpush1.bf16.msra.mxu0 %v5361_v40  ;;  %813 = vmatprep.mubr.f32.mxu0 %v5263_v49 }
 0x540   :  { %4615 = vmatprep.subr.bf16.mxu0 %v5363_v42 }
 0x543   :  { %4617 = vmatpush1.bf16.msra.mxu0 %v5380_v48 }
 0x544   :  { %4619 = vmatprep.subr.bf16.mxu0 %v5384_v50 }
 0x547   :  { %4621 = vmatpush1.bf16.msra.mxu0 %v5399_v55 }
 0x548   :  { %4623 = vmatprep.subr.bf16.mxu0 %v5402_v56 }
 0x54b   :  { %4625 = vmatpush1.bf16.msra.mxu0 %v5411_v59 }
 0x54c   :  { %4643 = vmatprep.subr.bf16.mxu0 %v5328_v11 }
 0x611   :  { %v605_v5 = vpop.f32.mrb[4].mxu0 }
 0x612   :  { %v611_v7 = vrot.slane %v605_v5, 4  ;;  %v607_v8 = vpop.f32.mrb[5].mxu0 }
 0x613   :  { %v618_v13 = vadd.f32 %v607_v8, %v5466_v22 }
 0x614   :  { %v613_v9 = vadd.f32 %v611_v7, %v5458_v16 }
 0x615   :  { %v620_v18 = vrot.slane %v618_v13, 4 }
 0x616   :  { %v614_v12 = vmul.f32 0.5, %v613_v9 }
 0x618   :  { %5158 = vtanh.f32 %v614_v12 }
 0x622   :  { %v5159_v14 = vpop.eup %5158 }
 0x623   :  { %v616_v15 = vmul.f32 0.5, %v5159_v14 }
 0x625   :  { %v617_v17 = vadd.f32 0.5, %v616_v15 }
 0x627   :  { %v622_v20 = vmul.f32 %v620_v18, %v617_v17 }
 0x629   :  { %v623_v21 = vadd.f32 %v622_v20, %v5474_v30 }
 0x62b   :  { %5160 = vtanh.f32 %v623_v21 }
 0x635   :  { %v5161_v23 = vpop.eup %5160 }
 0x636   :  { %v626_v24 = vrot.slane %v5161_v23, 2 }
 0x638   :  { %v628_v26 = vsub.f32 %v5498_v3, %v626_v24 }
 0x63a   :  { %v630_v27 = vrot.slane %v628_v26, 6 }
 0x63c   :  { %631 = vrot.lane.b32.xlu1 %v630_v27, %s5264_s5 }
 0x6ae   :  { %v632_v28 = vpop.permute.xlu1 %631 }
 0x6af   :  { %v634_v29 = vmul.f32 %v632_v28, %v617_v17 }
 0x6b1   :  { %636 = vrot.lane.b32.xlu0 %v634_v29, %s5264_s5 }
 0x723   :  { %v637_v31 = vpop.permute.xlu0 %636 }
 0x724   :  { %v5517_v32 = vadd.f32 %v5161_v23, %v637_v31 }
 0x726   :  { %v641_v33 = vrot.slane %v5517_v32, 4 }
 0x728   :  { %4144 = vmatmul.mubr.msk.f32.vlgmr.msra.gmra.mrb[4].mxu1 %vm297_vm5, %v641_v33 }
 0x729   :  { %4629 = vmatpush1.bf16.msra.mxu1 %v5361_v40  ;;  %911 = vmatprep.mubr.f32.mxu1 %v5263_v49 }
 0x72a   :  { %4631 = vmatprep.subr.bf16.mxu1 %v5363_v42 }
 0x72d   :  { %4633 = vmatpush1.bf16.msra.mxu1 %v5380_v48 }
 0x72e   :  { %4635 = vmatprep.subr.bf16.mxu1 %v5384_v50 }
 0x731   :  { %4637 = vmatpush1.bf16.msra.mxu1 %v5399_v55 }
 0x732   :  { %4639 = vmatprep.subr.bf16.mxu1 %v5402_v56 }
 0x735   :  { %4641 = vmatpush1.bf16.msra.mxu1 %v5411_v59 }
 0x736   :  { %4659 = vmatprep.subr.bf16.mxu1 %v5328_v11 }
 0x7fb   :  { %v710_v34 = vpop.f32.mrb[4].mxu1 }
 0x7fc   :  { %v716_v35 = vrot.slane %v710_v34, 2  ;;  %v712_v36 = vpop.f32.mrb[5].mxu1 }
 0x7fd   :  { %v723_v41 = vadd.f32 %v712_v36, %v5466_v22 }
 0x7fe   :  { %v718_v38 = vadd.f32 %v716_v35, %v5458_v16 }
 0x7ff   :  { %v725_v46 = vrot.slane %v723_v41, 2 }
 0x800   :  { %v719_v39 = vmul.f32 0.5, %v718_v38 }
 0x802   :  { %5162 = vtanh.f32 %v719_v39 }
 0x80c   :  { %v5163_v43 = vpop.eup %5162 }
 0x80d   :  { %v721_v44 = vmul.f32 0.5, %v5163_v43 }
 0x80f   :  { %v722_v45 = vadd.f32 0.5, %v721_v44 }
 0x811   :  { %v727_v47 = vmul.f32 %v725_v46, %v722_v45 }
 0x813   :  { %v728_v51 = vadd.f32 %v727_v47, %v5474_v30 }
 0x815   :  { %5164 = vtanh.f32 %v728_v51 }
 0x81f   :  { %v5165_v52 = vpop.eup %5164 }
 0x820   :  { %v731_v53 = vrot.slane %v5165_v52, 2 }
 0x822   :  { %v733_v11 = vsub.f32 %v5517_v32, %v731_v53 }
 0x824   :  { %v735_v54 = vrot.slane %v733_v11, 6 }
 0x826   :  { %736 = vrot.lane.b32.xlu1 %v735_v54, %s5264_s5 }
 0x82a   :  { %265 = vrot.lane.b32.xlu1 %v5441_v2, %s5256_s28 }
 0x82e   :  { %279 = vrot.lane.b32.xlu1 %v5441_v2, %s5264_s5 }
 0x832   :  { %291 = vrot.lane.b32.xlu1 %v5441_v2, %s5265_s6 }
 0x898   :  { %v737_v16 = vpop.permute.xlu1 %736 }
 0x899   :  { %v739_v57 = vmul.f32 %v737_v16, %v722_v45 }
 0x89b   :  { %741 = vrot.lane.b32.xlu0 %v739_v57, %s5264_s5 }
 0x89c   :  { %v266_v2 = vpop.permute.xlu1 %265 }
 0x89d   :  { %v296_v63 = vsel %vm178_vm3, %v5437_v62, %v266_v2 }
 0x89f   :  { %273 = vrot.lane.b32.xlu0 %v5437_v62, %s5256_s28 }
 0x8a0   :  { %v280_v1 = vpop.permute.xlu1 %279 }
 0x8a3   :  { %285 = vrot.lane.b32.xlu0 %v5437_v62, %s5264_s5 }
 0x8a4   :  { %v292_v15 = vpop.permute.xlu1 %291 }
 0x90d   :  { %v742_v30 = vpop.permute.xlu0 %741 }
 0x90e   :  { %v5546_v58 = vadd.f32 %v5165_v52, %v742_v30 }
 0x910   :  { %v746_v60 = vrot.slane %v5546_v58, 6 }
 0x911   :  { %v274_v61 = vpop.permute.xlu0 %273 }
 0x912   :  { %4145 = vmatmul.mubr.msk.f32.vlgmr.msra.gmra.mrb[6].mxu0 %vm297_vm5, %v746_v60  ;;  %v299_v0 = vsel %vm297_vm5, %v296_v63, %v274_v61 }
 0x913   :  { %4645 = vmatpush1.bf16.msra.mxu0 %v5361_v40  ;;  %1016 = vmatprep.mubr.f32.mxu0 %v5263_v49  ;;  %v302_v4 = vsel %vm300_vm6, %v299_v0, %v280_v1 }
 0x914   :  { %4647 = vmatprep.subr.bf16.mxu0 %v5363_v42  ;;  %v5565_v5 = vadd.f32 %v5453_v10, %v302_v4 }
 0x915   :  { %v286_v13 = vpop.permute.xlu0 %285 }
 0x916   :  { %v304_v62 = vsel %vm178_vm3, %v286_v13, %v292_v15 }
 0x917   :  { %4649 = vmatpush1.bf16.msra.mxu0 %v5380_v48  ;;  %v5571_v21 = vadd.f32 %v5469_v25, %v304_v62 }
 0x918   :  { %4651 = vmatprep.subr.bf16.mxu0 %v5384_v50 }
 0x91b   :  { %4653 = vmatpush1.bf16.msra.mxu0 %v5399_v55 }
 0x91c   :  { %4655 = vmatprep.subr.bf16.mxu0 %v5402_v56 }
 0x91f   :  { %4657 = vmatpush1.bf16.msra.mxu0 %v5411_v59 }
 0x9e5   :  { %v815_v7 = vpop.f32.mrb[6].mxu0 }
 0x9e6   :  { %v820_v8 = vadd.f32 %v815_v7, %v5565_v5  ;;  %v817_v9 = vpop.f32.mrb[7].mxu0 }
 0x9e7   :  { %v825_v20 = vadd.f32 %v817_v9, %v5466_v22 }
 0x9e8   :  { %v821_v12 = vmul.f32 0.5, %v820_v8 }
 0x9ea   :  { %5166 = vtanh.f32 %v821_v12 }
 0x9f4   :  { %v5167_v14 = vpop.eup %5166 }
 0x9f5   :  { %v823_v17 = vmul.f32 0.5, %v5167_v14 }
 0x9f7   :  { %v824_v18 = vadd.f32 0.5, %v823_v17 }
 0x9f9   :  { %v826_v10 = vmul.f32 %v825_v20, %v824_v18  ;;  %v1182_v20 = vld [vmem:[%s6475_s2 + $0x90] sm:$0xff] }
 0x9fb   :  { %v827_v23 = vadd.f32 %v826_v10, %v5571_v21  ;;  %v1190_v10 = vld [vmem:[%s6475_s2 + $0x98] sm:$0xff] }
 0x9fd   :  { %5168 = vtanh.f32 %v827_v23  ;;  %v5110_v23 = vpack.i.bf16 %v1190_v10, %v1182_v20 }
 0xa07   :  { %v5169_v24 = vpop.eup %5168 }
 0xa08   :  { %v830_v26 = vrot.slane %v5169_v24, 2 }
 0xa0a   :  { %v832_v27 = vsub.f32 %v5546_v58, %v830_v26  ;;  %v1192_v26 = vld [vmem:[%s6475_s2 + $0xb8] sm:$0xff] }
 0xa0c   :  { %v834_v28 = vrot.slane %v832_v27, 6 }
 0xa0e   :  { %835 = vrot.lane.b32.xlu0 %v834_v28, %s5264_s5  ;;  %v1186_v28 = vld [vmem:[%s6475_s2 + $0xd0] sm:$0xff] }
 0xa80   :  { %v836_v29 = vpop.permute.xlu0 %835 }
 0xa81   :  { %v838_v31 = vmul.f32 %v836_v29, %v824_v18  ;;  %v1194_v29 = vld [vmem:[%s6475_s2 + $0xd8] sm:$0xff] }
 0xa83   :  { %840 = vrot.lane.b32.xlu1 %v838_v31, %s5264_s5  ;;  %v5130_v31 = vpack.i.bf16 %v1194_v29, %v1186_v28 }
 0xaf5   :  { %v841_v33 = vpop.permute.xlu1 %840 }
 0xaf6   :  { %v5577_v34 = vadd.f32 %v5169_v24, %v841_v33  ;;  %v1184_v24 = vld [vmem:[%s6475_s2 + $0xb0] sm:$0xff] }
 0xaf7   :  { %v5120_v27 = vpack.i.bf16 %v1192_v26, %v1184_v24 }
 0xaf8   :  { %4146 = vmatmul.mubr.msk.f32.vlgmr.msra.gmra.mrb[6].mxu1 %vm297_vm5, %v5577_v34 }
 0xaf9   :  { %4661 = vmatpush1.bf16.msra.mxu1 %v5361_v40  ;;  %1121 = vmatprep.mubr.f32.mxu1 %v5263_v49 }
 0xafa   :  { %4663 = vmatprep.subr.bf16.mxu1 %v5363_v42 }
 0xafd   :  { %4665 = vmatpush1.bf16.msra.mxu1 %v5380_v48 }
 0xafe   :  { %4667 = vmatprep.subr.bf16.mxu1 %v5384_v50 }
 0xb01   :  { %4669 = vmatpush1.bf16.msra.mxu1 %v5399_v55 }
 0xb02   :  { %4671 = vmatprep.subr.bf16.mxu1 %v5402_v56 }
 0xb05   :  { %4673 = vmatpush1.bf16.msra.mxu1 %v5411_v59 }
 0xbcb   :  { %v913_v25 = vpop.f32.mrb[6].mxu1 }
 0xbcc   :  { %v919_v35 = vrot.slane %v913_v25, 6  ;;  %v915_v36 = vpop.f32.mrb[7].mxu1 }
 0xbcd   :  { %v926_v39 = vadd.f32 %v915_v36, %v5466_v22 }
 0xbce   :  { %v921_v38 = vadd.f32 %v919_v35, %v5565_v5 }
 0xbcf   :  { %v928_v43 = vrot.slane %v926_v39, 6 }
 0xbd0   :  { %v922_v40 = vmul.f32 0.5, %v921_v38 }
 0xbd2   :  { %5170 = vtanh.f32 %v922_v40 }
 0xbdc   :  { %v5171_v42 = vpop.eup %5170 }
 0xbdd   :  { %v924_v41 = vmul.f32 0.5, %v5171_v42 }
 0xbdf   :  { %v925_v48 = vadd.f32 0.5, %v924_v41 }
 0xbe1   :  { %v930_v50 = vmul.f32 %v928_v43, %v925_v48 }
 0xbe3   :  { %v931_v55 = vadd.f32 %v930_v50, %v5571_v21 }
 0xbe5   :  { %5172 = vtanh.f32 %v931_v55 }
 0xbef   :  { %v5173_v56 = vpop.eup %5172 }
 0xbf0   :  { %v934_v44 = vrot.slane %v5173_v56, 2 }
 0xbf2   :  { %v936_v59 = vsub.f32 %v5577_v34, %v934_v44 }
 0xbf4   :  { %v938_v45 = vrot.slane %v936_v59, 6 }
 0xbf6   :  { %939 = vrot.lane.b32.xlu0 %v938_v45, %s5264_s5 }
 0xc68   :  { %v940_v46 = vpop.permute.xlu0 %939 }
 0xc69   :  { %v942_v47 = vmul.f32 %v940_v46, %v925_v48 }
 0xc6b   :  { %944 = vrot.lane.b32.xlu1 %v942_v47, %s5264_s5 }
 0xcdd   :  { %v945_v51 = vpop.permute.xlu1 %944 }
 0xcde   :  { %v5595_v52 = vadd.f32 %v5173_v56, %v945_v51  ;;  %v1193_v51 = vld [vmem:[%s6475_s2 + $0xc8] sm:$0xff] }
 0xce0   :  { %v949_v53 = vrot.slane %v5595_v52, 2 }
 0xce2   :  { %4147 = vmatmul.mubr.msk.f32.vlgmr.msra.gmra.mrb[8].mxu0 %vm297_vm5, %v949_v53 }
 0xdb5   :  { %v1018_v11 = vpop.f32.mrb[8].mxu0 }
 0xdb6   :  { %v1024_v54 = vrot.slane %v1018_v11, 4  ;;  %v1020_v16 = vpop.f32.mrb[9].mxu0  ;;  %v1187_v11 = vld [vmem:[%s6475_s2 + $0xe0] sm:$0xff] }
 0xdb7   :  { %v1031_v2 = vadd.f32 %v1020_v16, %v5466_v22 }
 0xdb8   :  { %v1026_v57 = vadd.f32 %v1024_v54, %v5565_v5  ;;  %v1195_v54 = vld [vmem:[%s6475_s2 + $0xe8] sm:$0xff] }
 0xdb9   :  { %v1033_v1 = vrot.slane %v1031_v2, 4  ;;  %v5135_v16 = vpack.i.bf16 %v1195_v54, %v1187_v11 }
 0xdba   :  { %v1027_v30 = vmul.f32 0.5, %v1026_v57  ;;  %v1188_v57 = vld [vmem:[%s6475_s2 + $0xf0] sm:$0xff] }
 0xdbc   :  { %5174 = vtanh.f32 %v1027_v30  ;;  %v1196_v30 = vld [vmem:[%s6475_s2 + $0xf8] sm:$0xff] }
 0xdbd   :  { %v5140_v2 = vpack.i.bf16 %v1196_v30, %v1188_v57 }
 0xdc6   :  { %v5175_v61 = vpop.eup %5174 }
 0xdc7   :  { %v1029_v63 = vmul.f32 0.5, %v5175_v61  ;;  %v4682_v61 = vpack.c.bf16 %v1187_v11, %v1186_v28 }
 0xdc9   :  { %v1030_v0 = vadd.f32 0.5, %v1029_v63  ;;  %v1189_v63 = vld [vmem:[%s6475_s2 + $0x100] sm:$0xff] }
 0xdcb   :  { %v1035_v4 = vmul.f32 %v1033_v1, %v1030_v0 }
 0xdcd   :  { %v1036_v7 = vadd.f32 %v1035_v4, %v5571_v21 }
 0xdcf   :  { %5176 = vtanh.f32 %v1036_v7  ;;  %v1197_v7 = vld [vmem:[%s6475_s2 + $0x108] sm:$0xff] }
 0xdd9   :  { %v5177_v8 = vpop.eup %5176 }
 0xdda   :  { %v1039_v9 = vrot.slane %v5177_v8, 2 }
 0xddc   :  { %v1041_v12 = vsub.f32 %v5595_v52, %v1039_v9 }
 0xdde   :  { %v1043_v13 = vrot.slane %v1041_v12, 6 }
 0xde0   :  { %1044 = vrot.lane.b32.xlu0 %v1043_v13, %s5264_s5 }
 0xe52   :  { %v1045_v14 = vpop.permute.xlu0 %1044 }
 0xe53   :  { %v1047_v15 = vmul.f32 %v1045_v14, %v1030_v0  ;;  %v4686_v0 = vpack.c.bf16 %v1189_v63, %v1188_v57  ;;  %v5145_v14 = vpack.i.bf16 %v1197_v7, %v1189_v63  ;;  %v1522_v7 = vld [vmem:[%s6475_s2 + $0x120] sm:$0xff] }
 0xe55   :  { %1049 = vrot.lane.b32.xlu1 %v1047_v15, %s5264_s5  ;;  %v1521_v15 = vld [vmem:[%s6475_s2 + $0x118] sm:$0xff] }
 0xe59   :  { %5111 = vrot.lane.b32.xlu1 %v5110_v23, %s5256_s28 }
 0xe5d   :  { %5121 = vrot.lane.b32.xlu1 %v5120_v27, %s5256_s28 }
 0xe61   :  { %5131 = vrot.lane.b32.xlu1 %v5130_v31, %s5256_s28 }
 0xec7   :  { %v1050_v17 = vpop.permute.xlu1 %1049 }
 0xec8   :  { %v5605_v62 = vadd.f32 %v5177_v8, %v1050_v17  ;;  %v1523_v17 = vld [vmem:[%s6475_s2 + $0x128] sm:$0xff] }
 0xec9   :  { %v5679_v23 = vpack.c.bf16 %v1523_v17, %v1521_v15 }
 0xeca   :  { %v1054_v18 = vrot.slane %v5605_v62, 4 }
 0xecb   :  { %v5112_v1 = vpop.permute.xlu1 %5111 }
 0xecc   :  { %4148 = vmatmul.mubr.msk.f32.vlgmr.msra.gmra.mrb[8].mxu1 %vm297_vm5, %v1054_v18  ;;  %v5114_v12 = vunpack.i.h.bf16 %v5112_v1  ;;  %v5113_v13 = vunpack.i.l.bf16 %v5112_v1 }
 0xece   :  { %v1365_v27 = vsel %vm178_vm3, %v5113_v13, %v5114_v12  ;;  %v1525_v13 = vld [vmem:[%s6475_s2 + $0x138] sm:$0xff] }
 0xecf   :  { %v5122_v8 = vpop.permute.xlu1 %5121 }
 0xed0   :  { %v5123_v10 = vunpack.i.l.bf16 %v5122_v8 }
 0xed3   :  { %v5132_v28 = vpop.permute.xlu1 %5131 }
 0xf9f   :  { %v1123_v33 = vpop.f32.mrb[8].mxu1 }
 0xfa0   :  { %v1129_v25 = vrot.slane %v1123_v33, 2  ;;  %v1125_v35 = vpop.f32.mrb[9].mxu1 }
 0xfa1   :  { %v1136_v40 = vadd.f32 %v1125_v35, %v5466_v22  ;;  %v1191_v22 = vld [vmem:[%s6475_s2 + $0xa8] sm:$0xff] }
 0xfa2   :  { %v1131_v36 = vadd.f32 %v1129_v25, %v5565_v5  ;;  %v1183_v5 = vld [vmem:[%s6475_s2 + $0xa0] sm:$0xff] }
 0xfa3   :  { %v1138_v48 = vrot.slane %v1136_v40, 2  ;;  %v4674_v59 = vpack.c.bf16 %v1183_v5, %v1182_v20  ;;  %v5115_v46 = vpack.i.bf16 %v1191_v22, %v1183_v5  ;;  %v5124_v20 = vunpack.i.h.bf16 %v5122_v8 }
 0xfa4   :  { %v1132_v38 = vmul.f32 0.5, %v1131_v36  ;;  %v5133_v40 = vunpack.i.l.bf16 %v5132_v28  ;;  %v1168_v22 = vrot.slane %v5577_v34, 2 }
 0xfa5   :  { %4675 = vmatprep.subr.bf16.mxu0 %v4674_v59  ;;  %v1367_v25 = vsel %vm178_vm3, %v5123_v10, %v5124_v20 }
 0xfa6   :  { %5178 = vtanh.f32 %v1132_v38  ;;  %4677 = vmatpush3.bf16.msra.mxu0 %v4674_v59  ;;  %v5134_v38 = vunpack.i.h.bf16 %v5132_v28  ;;  %v1173_v59 = vrot.slane %v5517_v32, 2 }
 0xfb0   :  { %v5179_v39 = vpop.eup %5178 }
 0xfb1   :  { %v1134_v42 = vmul.f32 0.5, %v5179_v39 }
 0xfb3   :  { %v1135_v41 = vadd.f32 0.5, %v1134_v42 }
 0xfb5   :  { %v1140_v43 = vmul.f32 %v1138_v48, %v1135_v41 }
 0xfb7   :  { %v1141_v50 = vadd.f32 %v1140_v43, %v5571_v21  ;;  %v1185_v21 = vld [vmem:[%s6475_s2 + $0xc0] sm:$0xff] }
 0xfb8   :  { %v4678_v47 = vpack.c.bf16 %v1185_v21, %v1184_v24  ;;  %v5125_v53 = vpack.i.bf16 %v1193_v51, %v1185_v21  ;;  %v1176_v21 = vrot.slane %v5498_v3, 6  ;;  %v1179_v51 = vrot.slane %v5479_v37, 2 }
 0xfb9   :  { %5180 = vtanh.f32 %v1141_v50  ;;  %v1369_v50 = vsel %vm178_vm3, %v5133_v40, %v5134_v38  ;;  %v1529_v40 = vld [vmem:[%s6475_s2 + $0x158] sm:$0xff] }
 0xfba   :  { %4679 = vmatprep.subr.bf16.mxu0 %v4678_v47 }
 0xfbb   :  { %4681 = vmatpush3.bf16.msra.mxu0 %v4678_v47  ;;  %v1162_v47 = vrot.slane %v5605_v62, 2 }
 0xfbc   :  { %4683 = vmatprep.subr.bf16.mxu0 %v4682_v61 }
 0xfbf   :  { %4685 = vmatpush3.bf16.msra.mxu0 %v4682_v61 }
 0xfc0   :  { %4687 = vmatprep.subr.bf16.mxu0 %v4686_v0 }
 0xfc3   :  { %v5633_v55 = vpop.eup %5180  ;;  %4689 = vmatpush3.bf16.msra.mxu0 %v4686_v0 }
 0xfc4   :  { %v1144_v56 = vrot.slane %v5633_v55, 2  ;;  %4707 = vmatprep.subr.bf16.mxu0 %v5679_v23 }
 0xfc6   :  { %v1146_v44 = vsub.f32 %v5605_v62, %v1144_v56 }
 0xfc8   :  { %v1148_v45 = vrot.slane %v1146_v44, 6  ;;  %v1165_v44 = vrot.slane %v5595_v52, 6 }
 0xfca   :  { %1149 = vrot.lane.b32.xlu0 %v1148_v45, %s5264_s5  ;;  %v1167_v54 = vsel %vm178_vm3, %v5517_v32, %v1165_v44  ;;  %v1164_v32 = vsel %vm178_vm3, %v5498_v3, %v1162_v47  ;;  %v1533_v44 = vld [vmem:[%s6475_s2 + $0x178] sm:$0xff] }
 0xfcb   :  { %v1225_v17 = vrot.slane %v1164_v32, 6 }
 0xfce   :  { %5116 = vrot.lane.b32.xlu0 %v5115_v46, %s5256_s28  ;;  %v1172_v46 = vsel %vm178_vm3, %v5577_v34, %v746_v60  ;;  %v1170_v60 = vsel %vm178_vm3, %v5546_v58, %v1168_v22  ;;  %v1520_v58 = vld [vmem:[%s6475_s2 + $0x110] sm:$0xff] }
 0xfcf   :  { %v1216_v34 = vrot.slane %v1172_v46, 2 }
 0xfd2   :  { %5126 = vrot.lane.b32.xlu0 %v5125_v53, %s5256_s28  ;;  %v1175_v53 = vsel %vm178_vm3, %v5595_v52, %v1173_v59  ;;  %v1535_v59 = vld [vmem:[%s6475_s2 + $0x188] sm:$0xff] }
 0xfd3   :  { %v1213_v61 = vrot.slane %v1175_v53, 6 }
 0xfd6   :  { %5136 = vrot.lane.b32.xlu0 %v5135_v16, %s5256_s28  ;;  %v1178_v16 = vsel %vm178_vm3, %v5605_v62, %v1176_v21  ;;  %v1532_v21 = vld [vmem:[%s6475_s2 + $0x170] sm:$0xff] }
 0xfd7   :  { %v1210_v0 = vrot.slane %v1178_v16, 2 }
 0xfda   :  { %5141 = vrot.lane.b32.xlu0 %v5140_v2, %s5256_s28 }
0x103c   :  { %v1150_v4 = vpop.permute.xlu0 %1149 }
0x103d   :  { %v1152_v9 = vmul.f32 %v1150_v4, %v1135_v41  ;;  %v1203_v4 = vsel %vm46_vm1, %v1172_v46, %v1175_v53  ;;  %v1534_v46 = vld [vmem:[%s6475_s2 + $0x180] sm:$0xff] }
0x103e   :  { %v1204_v20 = vsel %vm48_vm0, %v1203_v4, %v1178_v16  ;;  %v5801_v47 = vpack.c.bf16 %v1534_v46, %v1532_v21 }
0x103f   :  { %1154 = vrot.lane.b32.xlu1 %v1152_v9, %s5264_s5 }
0x1040   :  { %v5117_v18 = vpop.permute.xlu0 %5116 }
0x1041   :  { %v5119_v24 = vunpack.i.h.bf16 %v5117_v18  ;;  %v5118_v26 = vunpack.i.l.bf16 %v5117_v18 }
0x1043   :  { %5146 = vrot.lane.b32.xlu1 %v5145_v14, %s5256_s28  ;;  %v1366_v29 = vsel %vm178_vm3, %v5118_v26, %v5119_v24  ;;  %v1527_v14 = vld [vmem:[%s6475_s2 + $0x148] sm:$0xff]  ;;  %v5739_v26 = vpack.c.bf16 %v1522_v7, %v1520_v58 }
0x1044   :  { %v5127_v31 = vpop.permute.xlu0 %5126  ;;  %v4690_v33 = vpack.c.bf16 %v1366_v29, %v1365_v27 }
0x1045   :  { %v5129_v35 = vunpack.i.h.bf16 %v5127_v31  ;;  %v5128_v36 = vunpack.i.l.bf16 %v5127_v31  ;;  %v5743_v31 = vpack.c.bf16 %v1527_v14, %v1525_v13 }
0x1046   :  { %4691 = vmatprep.subr.bf16.mxu1 %v4690_v33 }
0x1047   :  { %4693 = vmatpush3.bf16.msra.mxu1 %v4690_v33  ;;  %v1368_v39 = vsel %vm178_vm3, %v5128_v36, %v5129_v35  ;;  %v1524_v33 = vld [vmem:[%s6475_s2 + $0x130] sm:$0xff]  ;;  %v1219_v36 = vrot.slane %v1170_v60, 6 }
0x1048   :  { %v5137_v42 = vpop.permute.xlu0 %5136  ;;  %v4694_v41 = vpack.c.bf16 %v1368_v39, %v1367_v25  ;;  %v1526_v25 = vld [vmem:[%s6475_s2 + $0x140] sm:$0xff]  ;;  %v1531_v39 = vld [vmem:[%s6475_s2 + $0x168] sm:$0xff] }
0x1049   :  { %v5139_v48 = vunpack.i.h.bf16 %v5137_v42  ;;  %v5138_v43 = vunpack.i.l.bf16 %v5137_v42 }
0x104a   :  { %4695 = vmatprep.subr.bf16.mxu1 %v4694_v41 }
0x104b   :  { %4697 = vmatpush3.bf16.msra.mxu1 %v4694_v41  ;;  %v1370_v56 = vsel %vm178_vm3, %v5138_v43, %v5139_v48  ;;  %v5763_v41 = vpack.c.bf16 %v1526_v25, %v1524_v33  ;;  %v5767_v43 = vpack.c.bf16 %v1531_v39, %v1529_v40 }
0x104c   :  { %v4698_v5 = vpack.c.bf16 %v1370_v56, %v1369_v50  ;;  %v5142_v45 = vpop.permute.xlu0 %5141  ;;  %v1528_v50 = vld [vmem:[%s6475_s2 + $0x150] sm:$0xff]  ;;  %v1530_v56 = vld [vmem:[%s6475_s2 + $0x160] sm:$0xff] }
0x104d   :  { %v5144_v30 = vunpack.i.h.bf16 %v5142_v45  ;;  %v5143_v2 = vunpack.i.l.bf16 %v5142_v45  ;;  %v5786_v22 = vpack.c.bf16 %v1530_v56, %v1528_v50  ;;  %v5790_v45 = vpack.c.bf16 %v1535_v59, %v1533_v44 }
0x104e   :  { %4699 = vmatprep.subr.bf16.mxu1 %v4698_v5 }
0x104f   :  { %4701 = vmatpush3.bf16.msra.mxu1 %v4698_v5  ;;  %v1371_v12 = vsel %vm178_vm3, %v5143_v2, %v5144_v30  ;;  %v4149_v2 = vld [vmem:[%s6476_s3 + $0x2] ss:$8 sm:$0x3] }
0x10b1   :  { %v1155_v11 = vpop.permute.xlu1 %1154 }
0x10b2   :  { %v5706_v57 = vadd.f32 %v5633_v55, %v1155_v11  ;;  %v1222_v55 = vrot.slane %v1167_v54, 2 }
0x10b4   :  { %v1159_v63 = vrot.slane %v5706_v57, 6  ;;  %v1181_v52 = vsel %vm178_vm3, %v5706_v57, %v1179_v51  ;;  %v1233_v42 = vsel %vm46_vm1, %v1219_v36, %v1222_v55 }
0x10b5   :  { %v1207_v62 = vrot.slane %v1181_v52, 6  ;;  %v5147_v1 = vpop.permute.xlu1 %5146  ;;  %v1205_v38 = vsel %vm50_vm2, %v1204_v20, %v1181_v52  ;;  %v1234_v48 = vsel %vm48_vm0, %v1233_v42, %v1225_v17 }
0x10b6   :  { %v1161_v8 = vsel %vm178_vm3, %v5479_v37, %v1159_v63  ;;  %v5149_v3 = vunpack.i.h.bf16 %v5147_v1  ;;  %v5148_v9 = vunpack.i.l.bf16 %v5147_v1 }
0x10b7   :  { %v1200_v15 = vsel %vm46_vm1, %v1161_v8, %v1164_v32  ;;  %v1230_v18 = vsel %vm46_vm1, %v1207_v62, %v1210_v0  ;;  %v1228_v35 = vrot.slane %v1161_v8, 2  ;;  %v5847_v8 = vld [vmem:[%s6476_s3 + $0x3] ss:$0 sm:$0xff] }
0x10b8   :  { %v1201_v37 = vsel %vm48_vm0, %v1200_v15, %v1167_v54  ;;  %v1231_v10 = vsel %vm48_vm0, %v1230_v18, %v1213_v61  ;;  %v1372_v24 = vsel %vm178_vm3, %v5148_v9, %v5149_v3  ;;  %v5836_v61 = vrot.slane %v4149_v2, %v5446_v6 }
0x10b9   :  { %v1202_v27 = vsel %vm50_vm2, %v1201_v37, %v1170_v60  ;;  %v1232_v28 = vsel %vm50_vm2, %v1231_v10, %v1216_v34  ;;  %v4702_v29 = vpack.c.bf16 %v1372_v24, %v1371_v12  ;;  %v1235_v5 = vsel %vm50_vm2, %v1234_v48, %v1228_v35 }
0x10ba   :  { %4327 = vmatprep.mubr.msk.f32.mxu0 %vm297_vm5, %v1202_v27  ;;  %4346 = vmatprep.mubr.msk.f32.mxu1 %vm297_vm5, %v1232_v28  ;;  %v5850_v12 = vrot.slane %v4149_v2, %v5461_v19  ;;  %vm4130_vm0 = vcmask 648192  }
0x10bb   :  { %4328 = vmatmul.mubr.msk.f32.vlgmr.msra.gmra.mrb[10].mxu0 %vm297_vm5, %v1205_v38  ;;  %4703 = vmatprep.subr.bf16.mxu1 %v4702_v29 }
0x10bc   :  { %4705 = vmatpush3.bf16.msra.mxu1 %v4702_v29  ;;  %4709 = vmatpush1.bf16.msra.mxu0 %v5739_v26 }
0x10bd   :  { %4711 = vmatprep.subr.bf16.mxu0 %v5743_v31  ;;  %1600 = vmatprep.mubr.f32.mxu0 %v5263_v49 }
0x10be   :  { %4723 = vmatprep.subr.bf16.mxu1 %v5679_v23 }
0x10bf   :  { %4347 = vmatmul.mubr.msk.f32.vlgmr.msra.gmra.mrb[10].mxu1 %vm297_vm5, %v1235_v5 }
0x10c0   :  { %4713 = vmatpush1.bf16.msra.mxu0 %v5763_v41  ;;  %4725 = vmatpush1.bf16.msra.mxu1 %v5739_v26 }
0x10c1   :  { %4715 = vmatprep.subr.bf16.mxu0 %v5767_v43  ;;  %4727 = vmatprep.subr.bf16.mxu1 %v5743_v31 }
0x10c2   :  { %1694 = vmatprep.mubr.f32.mxu1 %v5263_v49 }
0x10c4   :  { %4717 = vmatpush1.bf16.msra.mxu0 %v5786_v22  ;;  %4729 = vmatpush1.bf16.msra.mxu1 %v5763_v41 }
0x10c5   :  { %4719 = vmatprep.subr.bf16.mxu0 %v5790_v45  ;;  %4731 = vmatprep.subr.bf16.mxu1 %v5767_v43 }
0x10c8   :  { %4721 = vmatpush1.bf16.msra.mxu0 %v5801_v47  ;;  %4733 = vmatpush1.bf16.msra.mxu1 %v5786_v22 }
0x10c9   :  { %4735 = vmatprep.subr.bf16.mxu1 %v5790_v45  ;;  %4739 = vmatprep.subr.bf16.mxu0 %v5679_v23 }
0x10cb   :  { %1601 = vmatmul.mubr.f32.vlgmr.msra.gmra.mrb[12].mxu0 %v5263_v49 }
0x10cc   :  { %4737 = vmatpush1.bf16.msra.mxu1 %v5801_v47  ;;  %4741 = vmatpush1.bf16.msra.mxu0 %v5739_v26 }
0x10cd   :  { %4743 = vmatprep.subr.bf16.mxu0 %v5743_v31  ;;  %1799 = vmatprep.mubr.f32.mxu0 %v5263_v49 }
0x10ce   :  { %4755 = vmatprep.subr.bf16.mxu1 %v5679_v23 }
0x10d0   :  { %4745 = vmatpush1.bf16.msra.mxu0 %v5763_v41 }
0x10d1   :  { %4747 = vmatprep.subr.bf16.mxu0 %v5767_v43 }
0x10d4   :  { %4749 = vmatpush1.bf16.msra.mxu0 %v5786_v22 }
0x10d5   :  { %4751 = vmatprep.subr.bf16.mxu0 %v5790_v45 }
0x10d8   :  { %4753 = vmatpush1.bf16.msra.mxu0 %v5801_v47 }
0x10d9   :  { %4771 = vmatprep.subr.bf16.mxu0 %v5679_v23 }
0x118e   :  { %v5822_v51 = vpop.f32.mrb[10].mxu0 }
0x118f   :  { %v1308_v53 = vpop.f32.mrb[11].mxu0 }
0x1190   :  { %1472 = vrot.lane.b32.xlu1 %v1308_v53, %s5256_s28 }
0x1192   :  { %v5825_v11 = vpop.f32.mrb[10].mxu1 }
0x1193   :  { %v1453_v54 = vpop.f32.mrb[11].mxu1 }
0x1194   :  { %1484 = vrot.lane.b32.xlu1 %v1308_v53, %s5264_s5  ;;  %1464 = vrot.lane.b32.xlu0 %v1453_v54, %s5256_s28 }
0x1198   :  { %1478 = vrot.lane.b32.xlu0 %v1453_v54, %s5264_s5 }
0x119c   :  { %1490 = vrot.lane.b32.xlu0 %v1453_v54, %s5265_s6 }
0x119e   :  { %v1602_v16 = vpop.f32.mrb[12].mxu0 }
0x119f   :  { %v1604_v30 = vpop.f32.mrb[13].mxu0 }
0x11a0   :  { %v1612_v15 = vadd.f32 %v1604_v30, %v5847_v8 }
0x1202   :  { %v1473_v52 = vpop.permute.xlu1 %1472 }
0x1206   :  { %v1465_v60 = vpop.permute.xlu0 %1464  ;;  %v1485_v3 = vpop.permute.xlu1 %1484 }
0x1207   :  { %v1496_v34 = vsel %vm178_vm3, %v1308_v53, %v1465_v60 }
0x1208   :  { %v1498_v32 = vsel %vm297_vm5, %v1496_v34, %v1473_v52 }
0x120a   :  { %v1479_v0 = vpop.permute.xlu0 %1478 }
0x120b   :  { %v1500_v62 = vsel %vm300_vm6, %v1498_v32, %v1479_v0 }
0x120c   :  { %v5841_v1 = vadd.f32 %v5836_v61, %v1500_v62 }
0x120e   :  { %v1607_v55 = vadd.f32 %v1602_v16, %v5841_v1  ;;  %v1491_v58 = vpop.permute.xlu0 %1490 }
0x120f   :  { %v1502_v13 = vsel %vm178_vm3, %v1485_v3, %v1491_v58 }
0x1210   :  { %v1608_v4 = vmul.f32 0.5, %v1607_v55  ;;  %v5855_v18 = vadd.f32 %v5850_v12, %v1502_v13 }
0x1212   :  { %5182 = vtanh.f32 %v1608_v4 }
0x121c   :  { %v5183_v7 = vpop.eup %5182 }
0x121d   :  { %v1610_v9 = vmul.f32 0.5, %v5183_v7 }
0x121f   :  { %v1611_v14 = vadd.f32 0.5, %v1610_v9 }
0x1221   :  { %v1613_v17 = vmul.f32 %v1612_v15, %v1611_v14 }
0x1223   :  { %v1614_v20 = vadd.f32 %v1613_v17, %v5855_v18 }
0x1225   :  { %5184 = vtanh.f32 %v1614_v20 }
0x122f   :  { %v5185_v37 = vpop.eup %5184 }
0x1230   :  { %v1616_v10 = vsub.f32 0.0, %v5185_v37 }
0x1232   :  { %1618 = vrot.lane.b32.xlu1 %v1616_v10, %s5264_s5 }
0x12a4   :  { %v1619_v24 = vpop.permute.xlu1 %1618 }
0x12a5   :  { %v1621_v27 = vmul.f32 %v1619_v24, %v1611_v14 }
0x12a7   :  { %1623 = vrot.lane.b32.xlu0 %v1621_v27, %s5264_s5 }
0x1319   :  { %v1624_v28 = vpop.permute.xlu0 %1623 }
0x131a   :  { %v1626_v29 = vadd.f32 %v5185_v37, %v1624_v28 }
0x131c   :  { %4154 = vmatmul.mubr.msk.f32.vlgmr.msra.gmra.mrb[12].mxu1 %vm297_vm5, %v1626_v29 }
0x131d   :  { %4757 = vmatpush1.bf16.msra.mxu1 %v5739_v26  ;;  %1904 = vmatprep.mubr.f32.mxu1 %v5263_v49 }
0x131e   :  { %4759 = vmatprep.subr.bf16.mxu1 %v5743_v31 }
0x1321   :  { %4761 = vmatpush1.bf16.msra.mxu1 %v5763_v41 }
0x1322   :  { %4763 = vmatprep.subr.bf16.mxu1 %v5767_v43 }
0x1325   :  { %4765 = vmatpush1.bf16.msra.mxu1 %v5786_v22 }
0x1326   :  { %4767 = vmatprep.subr.bf16.mxu1 %v5790_v45 }
0x1329   :  { %4769 = vmatpush1.bf16.msra.mxu1 %v5801_v47 }
0x132a   :  { %4787 = vmatprep.subr.bf16.mxu1 %v5679_v23 }
0x13ef   :  { %v1696_v33 = vpop.f32.mrb[12].mxu1 }
0x13f0   :  { %v1702_v25 = vrot.slane %v1696_v33, 6  ;;  %v1698_v35 = vpop.f32.mrb[13].mxu1 }
0x13f1   :  { %v1709_v40 = vadd.f32 %v1698_v35, %v5847_v8 }
0x13f2   :  { %v1704_v36 = vadd.f32 %v1702_v25, %v5841_v1 }
0x13f3   :  { %v1711_v50 = vrot.slane %v1709_v40, 6 }
0x13f4   :  { %v1705_v38 = vmul.f32 0.5, %v1704_v36 }
0x13f6   :  { %5186 = vtanh.f32 %v1705_v38 }
0x1400   :  { %v5187_v39 = vpop.eup %5186 }
0x1401   :  { %v1707_v42 = vmul.f32 0.5, %v5187_v39 }
0x1403   :  { %v1708_v48 = vadd.f32 0.5, %v1707_v42 }
0x1405   :  { %v1713_v56 = vmul.f32 %v1711_v50, %v1708_v48 }
0x1407   :  { %v1714_v5 = vadd.f32 %v1713_v56, %v5855_v18 }
0x1409   :  { %5188 = vtanh.f32 %v1714_v5 }
0x1413   :  { %v5189_v44 = vpop.eup %5188 }
0x1414   :  { %v1717_v59 = vrot.slane %v5189_v44, 2 }
0x1416   :  { %v1719_v21 = vsub.f32 %v1626_v29, %v1717_v59 }
0x1418   :  { %v1721_v46 = vrot.slane %v1719_v21, 6 }
0x141a   :  { %1722 = vrot.lane.b32.xlu1 %v1721_v46, %s5264_s5 }
0x148c   :  { %v1723_v53 = vpop.permute.xlu1 %1722 }
0x148d   :  { %v1725_v54 = vmul.f32 %v1723_v53, %v1708_v48 }
0x148f   :  { %1727 = vrot.lane.b32.xlu0 %v1725_v54, %s5264_s5 }
0x1501   :  { %v1728_v16 = vpop.permute.xlu0 %1727 }
0x1502   :  { %v1730_v30 = vadd.f32 %v5189_v44, %v1728_v16 }
0x1504   :  { %v1732_v2 = vrot.slane %v1730_v30, 2 }
0x1506   :  { %4155 = vmatmul.mubr.msk.f32.vlgmr.msra.gmra.mrb[14].mxu0 %vm297_vm5, %v1732_v2 }
0x1507   :  { %4773 = vmatpush1.bf16.msra.mxu0 %v5739_v26  ;;  %2009 = vmatprep.mubr.f32.mxu0 %v5263_v49 }
0x1508   :  { %4775 = vmatprep.subr.bf16.mxu0 %v5743_v31 }
0x150b   :  { %4777 = vmatpush1.bf16.msra.mxu0 %v5763_v41 }
0x150c   :  { %4779 = vmatprep.subr.bf16.mxu0 %v5767_v43 }
0x150f   :  { %4781 = vmatpush1.bf16.msra.mxu0 %v5786_v22 }
0x1510   :  { %4783 = vmatprep.subr.bf16.mxu0 %v5790_v45 }
0x1513   :  { %4785 = vmatpush1.bf16.msra.mxu0 %v5801_v47 }
0x1514   :  { %4803 = vmatprep.subr.bf16.mxu0 %v5679_v23 }
0x15d9   :  { %v1801_v60 = vpop.f32.mrb[14].mxu0 }
0x15da   :  { %v1807_v34 = vrot.slane %v1801_v60, 4  ;;  %v1803_v52 = vpop.f32.mrb[15].mxu0 }
0x15db   :  { %v1814_v62 = vadd.f32 %v1803_v52, %v5847_v8 }
0x15dc   :  { %v1809_v32 = vadd.f32 %v1807_v34, %v5841_v1 }
0x15dd   :  { %v1816_v7 = vrot.slane %v1814_v62, 4 }
0x15de   :  { %v1810_v0 = vmul.f32 0.5, %v1809_v32 }
0x15e0   :  { %5190 = vtanh.f32 %v1810_v0 }
0x15ea   :  { %v5191_v55 = vpop.eup %5190 }
0x15eb   :  { %v1812_v4 = vmul.f32 0.5, %v5191_v55 }
0x15ed   :  { %v1813_v58 = vadd.f32 0.5, %v1812_v4 }
0x15ef   :  { %v1818_v3 = vmul.f32 %v1816_v7, %v1813_v58 }
0x15f1   :  { %v1819_v9 = vadd.f32 %v1818_v3, %v5855_v18 }
0x15f3   :  { %5192 = vtanh.f32 %v1819_v9 }
0x15fd   :  { %v5193_v13 = vpop.eup %5192 }
0x15fe   :  { %v1822_v14 = vrot.slane %v5193_v13, 2 }
0x1600   :  { %v1824_v15 = vsub.f32 %v1730_v30, %v1822_v14 }
0x1602   :  { %v1826_v17 = vrot.slane %v1824_v15, 6 }
0x1604   :  { %1827 = vrot.lane.b32.xlu1 %v1826_v17, %s5264_s5 }
0x1676   :  { %v1828_v20 = vpop.permute.xlu1 %1827 }
0x1677   :  { %v1830_v37 = vmul.f32 %v1828_v20, %v1813_v58 }
0x1679   :  { %1832 = vrot.lane.b32.xlu0 %v1830_v37, %s5264_s5 }
0x16eb   :  { %v1833_v10 = vpop.permute.xlu0 %1832 }
0x16ec   :  { %v1835_v24 = vadd.f32 %v5193_v13, %v1833_v10 }
0x16ee   :  { %v1837_v27 = vrot.slane %v1835_v24, 4 }
0x16f0   :  { %4156 = vmatmul.mubr.msk.f32.vlgmr.msra.gmra.mrb[14].mxu1 %vm297_vm5, %v1837_v27 }
0x16f1   :  { %4789 = vmatpush1.bf16.msra.mxu1 %v5739_v26  ;;  %2107 = vmatprep.mubr.f32.mxu1 %v5263_v49 }
0x16f2   :  { %4791 = vmatprep.subr.bf16.mxu1 %v5743_v31 }
0x16f5   :  { %4793 = vmatpush1.bf16.msra.mxu1 %v5763_v41 }
0x16f6   :  { %4795 = vmatprep.subr.bf16.mxu1 %v5767_v43 }
0x16f9   :  { %4797 = vmatpush1.bf16.msra.mxu1 %v5786_v22 }
0x16fa   :  { %4799 = vmatprep.subr.bf16.mxu1 %v5790_v45 }
0x16fd   :  { %4801 = vmatpush1.bf16.msra.mxu1 %v5801_v47 }
0x16fe   :  { %4819 = vmatprep.subr.bf16.mxu1 %v5679_v23 }
0x17c3   :  { %v1906_v28 = vpop.f32.mrb[14].mxu1 }
0x17c4   :  { %v1912_v29 = vrot.slane %v1906_v28, 2  ;;  %v1908_v33 = vpop.f32.mrb[15].mxu1 }
0x17c5   :  { %v1919_v36 = vadd.f32 %v1908_v33, %v5847_v8 }
0x17c6   :  { %v1914_v25 = vadd.f32 %v1912_v29, %v5841_v1 }
0x17c7   :  { %v1921_v42 = vrot.slane %v1919_v36, 2 }
0x17c8   :  { %v1915_v35 = vmul.f32 0.5, %v1914_v25 }
0x17ca   :  { %5194 = vtanh.f32 %v1915_v35 }
0x17d4   :  { %v5195_v38 = vpop.eup %5194 }
0x17d5   :  { %v1917_v40 = vmul.f32 0.5, %v5195_v38 }
0x17d7   :  { %v1918_v39 = vadd.f32 0.5, %v1917_v40 }
0x17d9   :  { %v1923_v48 = vmul.f32 %v1921_v42, %v1918_v39 }
0x17db   :  { %v1924_v50 = vadd.f32 %v1923_v48, %v5855_v18 }
0x17dd   :  { %5196 = vtanh.f32 %v1924_v50 }
0x17e7   :  { %v5197_v56 = vpop.eup %5196 }
0x17e8   :  { %v1927_v5 = vrot.slane %v5197_v56, 2 }
0x17ea   :  { %v1929_v23 = vsub.f32 %v1835_v24, %v1927_v5 }
0x17ec   :  { %v1931_v44 = vrot.slane %v1929_v23, 6 }
0x17ee   :  { %1932 = vrot.lane.b32.xlu1 %v1931_v44, %s5264_s5 }
0x17f2   :  { %1466 = vrot.lane.b32.xlu1 %v5825_v11, %s5256_s28 }
0x17f6   :  { %1480 = vrot.lane.b32.xlu1 %v5825_v11, %s5264_s5 }
0x17fa   :  { %1492 = vrot.lane.b32.xlu1 %v5825_v11, %s5265_s6 }
0x1860   :  { %v1933_v1 = vpop.permute.xlu1 %1932 }
0x1861   :  { %v1935_v59 = vmul.f32 %v1933_v1, %v1918_v39 }
0x1863   :  { %1937 = vrot.lane.b32.xlu0 %v1935_v59, %s5264_s5 }
0x1864   :  { %v1467_v11 = vpop.permute.xlu1 %1466 }
0x1865   :  { %v1497_v54 = vsel %vm178_vm3, %v5822_v51, %v1467_v11 }
0x1867   :  { %1474 = vrot.lane.b32.xlu0 %v5822_v51, %s5256_s28 }
0x1868   :  { %v1481_v30 = vpop.permute.xlu1 %1480 }
0x186b   :  { %1486 = vrot.lane.b32.xlu0 %v5822_v51, %s5264_s5 }
0x186c   :  { %v1493_v4 = vpop.permute.xlu1 %1492 }
0x18d5   :  { %v1938_v18 = vpop.permute.xlu0 %1937 }
0x18d6   :  { %v1940_v21 = vadd.f32 %v5197_v56, %v1938_v18 }
0x18d8   :  { %v1942_v46 = vrot.slane %v1940_v21, 6 }
0x18d9   :  { %v1475_v53 = vpop.permute.xlu0 %1474 }
0x18da   :  { %4157 = vmatmul.mubr.msk.f32.vlgmr.msra.gmra.mrb[16].mxu0 %vm297_vm5, %v1942_v46  ;;  %v1499_v16 = vsel %vm297_vm5, %v1497_v54, %v1475_v53 }
0x18db   :  { %4805 = vmatpush1.bf16.msra.mxu0 %v5739_v26  ;;  %2212 = vmatprep.mubr.f32.mxu0 %v5263_v49  ;;  %v1501_v2 = vsel %vm300_vm6, %v1499_v16, %v1481_v30 }
0x18dc   :  { %4807 = vmatprep.subr.bf16.mxu0 %v5743_v31  ;;  %v5929_v60 = vadd.f32 %v5836_v61, %v1501_v2 }
0x18dd   :  { %v1487_v62 = vpop.permute.xlu0 %1486 }
0x18de   :  { %v1503_v51 = vsel %vm178_vm3, %v1487_v62, %v1493_v4  ;;  %v2355_v4 = vld [vmem:[%s6475_s2 + $0x1a0] sm:$0xff] }
0x18df   :  { %4809 = vmatpush1.bf16.msra.mxu0 %v5763_v41  ;;  %v5935_v9 = vadd.f32 %v5850_v12, %v1503_v51 }
0x18e0   :  { %4811 = vmatprep.subr.bf16.mxu0 %v5767_v43 }
0x18e3   :  { %4813 = vmatpush1.bf16.msra.mxu0 %v5786_v22 }
0x18e4   :  { %4815 = vmatprep.subr.bf16.mxu0 %v5790_v45 }
0x18e7   :  { %4817 = vmatpush1.bf16.msra.mxu0 %v5801_v47 }
0x19ad   :  { %v2011_v34 = vpop.f32.mrb[16].mxu0 }
0x19ae   :  { %v2016_v52 = vadd.f32 %v2011_v34, %v5929_v60  ;;  %v2013_v32 = vpop.f32.mrb[17].mxu0 }
0x19af   :  { %v2021_v3 = vadd.f32 %v2013_v32, %v5847_v8  ;;  %v5266_v32 = vmov 0.0|0.0  }
0x19b0   :  { %v2017_v0 = vmul.f32 0.5, %v2016_v52  ;;  %4834 = vmatprep.subr.bf16.mxu0 %v5266_v32 }
0x19b2   :  { %5198 = vtanh.f32 %v2017_v0 }
0x19bc   :  { %v5199_v55 = vpop.eup %5198 }
0x19bd   :  { %v2019_v58 = vmul.f32 0.5, %v5199_v55  ;;  %v2354_v55 = vld [vmem:[%s6475_s2 + $0x190] sm:$0xff] }
0x19bf   :  { %v2020_v7 = vadd.f32 0.5, %v2019_v58 }
0x19c1   :  { %v2022_v61 = vmul.f32 %v2021_v3, %v2020_v7 }
0x19c3   :  { %v2023_v13 = vadd.f32 %v2022_v61, %v5935_v9  ;;  %v2356_v61 = vld [vmem:[%s6475_s2 + $0x1b0] sm:$0xff] }
0x19c5   :  { %5200 = vtanh.f32 %v2023_v13  ;;  %v2357_v13 = vld [vmem:[%s6475_s2 + $0x1c0] sm:$0xff] }
0x19cf   :  { %v5201_v14 = vpop.eup %5200 }
0x19d0   :  { %v2026_v15 = vrot.slane %v5201_v14, 2 }
0x19d2   :  { %v2028_v17 = vsub.f32 %v1940_v21, %v2026_v15  ;;  %v2358_v15 = vld [vmem:[%s6475_s2 + $0x1d0] sm:$0xff] }
0x19d4   :  { %v2030_v20 = vrot.slane %v2028_v17, 6  ;;  %v2359_v17 = vld [vmem:[%s6475_s2 + $0x1e0] sm:$0xff] }
0x19d6   :  { %2031 = vrot.lane.b32.xlu0 %v2030_v20, %s5264_s5  ;;  %v4853_v20 = vpack.c.bf16 %v2359_v17, %v2358_v15 }
0x1a48   :  { %v2032_v37 = vpop.permute.xlu0 %2031 }
0x1a49   :  { %v2034_v10 = vmul.f32 %v2032_v37, %v2020_v7  ;;  %v4847_v7 = vpack.c.bf16 %v2355_v4, %v2354_v55  ;;  %v2360_v37 = vld [vmem:[%s6475_s2 + $0x1f0] sm:$0xff] }
0x1a4a   :  { %v2621_v4 = vld [vmem:[%s6475_s2 + $0x2b0] sm:$0xff] }
0x1a4b   :  { %2036 = vrot.lane.b32.xlu1 %v2034_v10, %s5264_s5  ;;  %v2361_v10 = vld [vmem:[%s6475_s2 + $0x200] sm:$0xff] }
0x1abd   :  { %v2037_v24 = vpop.permute.xlu1 %2036 }
0x1abe   :  { %v2039_v27 = vadd.f32 %v5201_v14, %v2037_v24  ;;  %v4850_v14 = vpack.c.bf16 %v2357_v13, %v2356_v61  ;;  %v4856_v24 = vpack.c.bf16 %v2361_v10, %v2360_v37  ;;  %v2518_v13 = vld [vmem:[%s6477_s1] sm:$0x3]  ;;  %v2713_v37 = vld [vmem:[%s6475_s2 + $0x2e8] sm:$0xff]  ;;  %v2710_v10 = vld [vmem:[%s6475_s2 + $0x2d0] sm:$0xff] }
0x1ac0   :  { %4158 = vmatmul.mubr.msk.f32.vlgmr.msra.gmra.mrb[16].mxu1 %vm297_vm5, %v2039_v27 }
0x1ac1   :  { %4821 = vmatpush1.bf16.msra.mxu1 %v5739_v26  ;;  %2317 = vmatprep.mubr.f32.mxu1 %v5263_v49 }
0x1ac2   :  { %4823 = vmatprep.subr.bf16.mxu1 %v5743_v31 }
0x1ac5   :  { %4825 = vmatpush1.bf16.msra.mxu1 %v5763_v41 }
0x1ac6   :  { %4827 = vmatprep.subr.bf16.mxu1 %v5767_v43 }
0x1ac9   :  { %4829 = vmatpush1.bf16.msra.mxu1 %v5786_v22 }
0x1aca   :  { %4831 = vmatprep.subr.bf16.mxu1 %v5790_v45 }
0x1acd   :  { %4833 = vmatpush1.bf16.msra.mxu1 %v5801_v47 }
0x1ace   :  { %4846 = vmatprep.subr.bf16.mxu1 %v5266_v32 }
0x1b93   :  { %v2109_v12 = vpop.f32.mrb[16].mxu1 }
0x1b94   :  { %v2115_v28 = vrot.slane %v2109_v12, 6  ;;  %v2111_v29 = vpop.f32.mrb[17].mxu1 }
0x1b95   :  { %v2122_v25 = vadd.f32 %v2111_v29, %v5847_v8 }
0x1b96   :  { %v2117_v33 = vadd.f32 %v2115_v28, %v5929_v60 }
0x1b97   :  { %v2124_v36 = vrot.slane %v2122_v25, 6 }
0x1b98   :  { %v2118_v26 = vmul.f32 0.5, %v2117_v33 }
0x1b9a   :  { %5202 = vtanh.f32 %v2118_v26 }
0x1ba4   :  { %v5203_v31 = vpop.eup %5202 }
0x1ba5   :  { %v2120_v35 = vmul.f32 0.5, %v5203_v31 }
0x1ba7   :  { %v2121_v41 = vadd.f32 0.5, %v2120_v35 }
0x1ba9   :  { %v2126_v43 = vmul.f32 %v2124_v36, %v2121_v41 }
0x1bab   :  { %v2127_v22 = vadd.f32 %v2126_v43, %v5935_v9 }
0x1bad   :  { %5204 = vtanh.f32 %v2127_v22  ;;  %v2362_v22 = vld [vmem:[%s6475_s2 + $0x210] sm:$0xff] }
0x1bb7   :  { %v5205_v45 = vpop.eup %5204 }
0x1bb8   :  { %v2130_v38 = vrot.slane %v5205_v45, 2 }
0x1bba   :  { %v2132_v47 = vsub.f32 %v2039_v27, %v2130_v38  ;;  %v2365_v38 = vld [vmem:[%s6475_s2 + $0x240] sm:$0xff] }
0x1bbc   :  { %v2134_v40 = vrot.slane %v2132_v47, 6 }
0x1bbe   :  { %2135 = vrot.lane.b32.xlu0 %v2134_v40, %s5264_s5  ;;  %v2366_v40 = vld [vmem:[%s6475_s2 + $0x250] sm:$0xff] }
0x1c30   :  { %v2136_v39 = vpop.permute.xlu0 %2135 }
0x1c31   :  { %v2138_v42 = vmul.f32 %v2136_v39, %v2121_v41  ;;  %v2367_v39 = vld [vmem:[%s6475_s2 + $0x260] sm:$0xff] }
0x1c33   :  { %2140 = vrot.lane.b32.xlu1 %v2138_v42, %s5264_s5 }
0x1ca5   :  { %v2141_v48 = vpop.permute.xlu1 %2140 }
0x1ca6   :  { %v2143_v50 = vadd.f32 %v5205_v45, %v2141_v48 }
0x1ca8   :  { %v2145_v56 = vrot.slane %v2143_v50, 2 }
0x1caa   :  { %4159 = vmatmul.mubr.msk.f32.vlgmr.msra.gmra.mrb[18].mxu0 %vm297_vm5, %v2145_v56 }
0x1cab   :  { %4365 = vmatprep.mubr.msk.f32.mxu0 %vm5267_vm7, %v5263_v49 }
0x1d7d   :  { %v2214_v5 = vpop.f32.mrb[18].mxu0 }
0x1d7e   :  { %v2220_v23 = vrot.slane %v2214_v5, 4  ;;  %v2216_v44 = vpop.f32.mrb[19].mxu0  ;;  %v2368_v5 = vld [vmem:[%s6475_s2 + $0x270] sm:$0xff] }
0x1d7f   :  { %v2227_v18 = vadd.f32 %v2216_v44, %v5847_v8 }
0x1d80   :  { %v2222_v1 = vadd.f32 %v2220_v23, %v5929_v60  ;;  %v2369_v23 = vld [vmem:[%s6475_s2 + $0x280] sm:$0xff] }
0x1d81   :  { %v2229_v53 = vrot.slane %v2227_v18, 4  ;;  %v4844_v44 = vpack.c.bf16 %v2369_v23, %v2368_v5 }
0x1d82   :  { %v2223_v59 = vmul.f32 0.5, %v2222_v1 }
0x1d84   :  { %5206 = vtanh.f32 %v2223_v59 }
0x1d8e   :  { %v5207_v21 = vpop.eup %5206 }
0x1d8f   :  { %v2225_v46 = vmul.f32 0.5, %v5207_v21 }
0x1d91   :  { %v2226_v11 = vadd.f32 0.5, %v2225_v46 }
0x1d93   :  { %v2231_v54 = vmul.f32 %v2229_v53, %v2226_v11  ;;  %v2516_v53 = vld [vmem:[%s6476_s3 + $0x4] ss:$0 sm:$0xff] }
0x1d95   :  { %v2232_v16 = vadd.f32 %v2231_v54, %v5935_v9 }
0x1d97   :  { %5208 = vtanh.f32 %v2232_v16 }
0x1da1   :  { %v5209_v30 = vpop.eup %5208 }
0x1da2   :  { %v2235_v2 = vrot.slane %v5209_v30, 2 }
0x1da4   :  { %v2237_v34 = vsub.f32 %v2143_v50, %v2235_v2  ;;  %v4841_v50 = vpack.c.bf16 %v2367_v39, %v2366_v40 }
0x1da6   :  { %v2239_v52 = vrot.slane %v2237_v34, 6  ;;  %v2622_v34 = vld [vmem:[%s6475_s2 + $0x2b8] sm:$0xff] }
0x1da8   :  { %2240 = vrot.lane.b32.xlu0 %v2239_v52, %s5264_s5  ;;  %v2624_v52 = vld [vmem:[%s6475_s2 + $0x2c8] sm:$0xff] }
0x1da9   :  { %v4861_v55 = vpack.c.bf16 %v2624_v52, %v2622_v34  ;;  %v6180_v52 = vld [vmem:[%s6476_s3 + $0x7] ss:$0 sm:$0xff] }
0x1e1a   :  { %v2241_v0 = vpop.permute.xlu0 %2240 }
0x1e1b   :  { %v2243_v62 = vmul.f32 %v2241_v0, %v2226_v11  ;;  %v2528_v0 = vld [vmem:[%s6475_s2 + $0x290] sm:$0xff] }
0x1e1d   :  { %2245 = vrot.lane.b32.xlu1 %v2243_v62, %s5264_s5  ;;  %v2529_v62 = vld [vmem:[%s6475_s2 + $0x2a0] sm:$0xff] }
0x1e8f   :  { %v2246_v58 = vpop.permute.xlu1 %2245 }
0x1e90   :  { %v2248_v51 = vadd.f32 %v5209_v30, %v2246_v58 }
0x1e92   :  { %v2250_v3 = vrot.slane %v2248_v51, 4 }
0x1e94   :  { %4160 = vmatmul.mubr.msk.f32.vlgmr.msra.gmra.mrb[18].mxu1 %vm297_vm5, %v2250_v3 }
0x1e95   :  { %4848 = vmatpush3.bf16.msra.mxu1 %v4847_v7  ;;  %4384 = vmatprep.mubr.msk.f32.mxu1 %vm5267_vm7, %v5263_v49  ;;  %v2623_v7 = vld [vmem:[%s6475_s2 + $0x2c0] sm:$0xff] }
0x1e96   :  { %4849 = vmatprep.subr.bf16.mxu1 %v5266_v32  ;;  %v4863_v3 = vpack.c.bf16 %v2623_v7, %v2621_v4 }
0x1e99   :  { %4851 = vmatpush3.bf16.msra.mxu1 %v4850_v14 }
0x1e9a   :  { %4852 = vmatprep.subr.bf16.mxu1 %v5266_v32 }
0x1e9d   :  { %4854 = vmatpush3.bf16.msra.mxu1 %v4853_v20  ;;  %v2711_v20 = vld [vmem:[%s6475_s2 + $0x2d8] sm:$0xff] }
0x1e9e   :  { %4855 = vmatprep.subr.bf16.mxu1 %v5266_v32 }
0x1ea1   :  { %4857 = vmatpush3.bf16.msra.mxu1 %v4856_v24  ;;  %v6080_v24 = vpack.c.bf16 %v2713_v37, %v2711_v20 }
0x1ea2   :  { %4862 = vmatprep.subr.bf16.mxu1 %v4861_v55 }
0x1ea4   :  { %4385 = vmatmul.mubr.msk.f32.vlgmr.msra.gmra.mrb[20].mxu1 %vm297_vm5, %v1159_v63 }
0x1ea5   :  { %2702 = vmatprep.mubr.f32.mxu1 %v5263_v49  ;;  %4864 = vmatpush1.bf16.msra.mxu1 %v4863_v3 }
0x1ea6   :  { %4882 = vmatprep.subr.bf16.mxu1 %v6080_v24 }
0x1f67   :  { %v2319_v27 = vpop.f32.mrb[18].mxu1 }
0x1f68   :  { %v2325_v12 = vrot.slane %v2319_v27, 2  ;;  %v2321_v28 = vpop.f32.mrb[19].mxu1  ;;  %v2712_v27 = vld [vmem:[%s6475_s2 + $0x2e0] sm:$0xff] }
0x1f69   :  { %v2332_v26 = vadd.f32 %v2321_v28, %v5847_v8  ;;  %v2364_v8 = vld [vmem:[%s6475_s2 + $0x230] sm:$0xff]  ;;  %v2717_v28 = vld [vmem:[%s6475_s2 + $0x308] sm:$0xff] }
0x1f6a   :  { %v2327_v29 = vadd.f32 %v2325_v12, %v5929_v60  ;;  %v2363_v60 = vld [vmem:[%s6475_s2 + $0x220] sm:$0xff]  ;;  %v2715_v12 = vld [vmem:[%s6475_s2 + $0x2f8] sm:$0xff] }
0x1f6b   :  { %v2334_v43 = vrot.slane %v2332_v26, 2  ;;  %v4835_v45 = vpack.c.bf16 %v2363_v60, %v2362_v22  ;;  %v2714_v26 = vld [vmem:[%s6475_s2 + $0x2f0] sm:$0xff]  ;;  %v2723_v22 = vld [vmem:[%s6475_s2 + $0x338] sm:$0xff]  ;;  %v2725_v60 = vld [vmem:[%s6475_s2 + $0x348] sm:$0xff] }
0x1f6c   :  { %v2328_v33 = vmul.f32 0.5, %v2327_v29  ;;  %v6091_v29 = vpack.c.bf16 %v2712_v27, %v2710_v10 }
0x1f6d   :  { %4836 = vmatpush3.bf16.msra.mxu0 %v4835_v45  ;;  %v2722_v45 = vld [vmem:[%s6475_s2 + $0x330] sm:$0xff] }
0x1f6e   :  { %5210 = vtanh.f32 %v2328_v33  ;;  %4837 = vmatprep.subr.bf16.mxu0 %v5266_v32  ;;  %v6093_v33 = vpack.c.bf16 %v2717_v28, %v2715_v12 }
0x1f77   :  { %v2512_v25 = vpop.f32.mrb[20].mxu1 }
0x1f78   :  { %v5211_v31 = vpop.eup %5210  ;;  %v4386_v35 = vpop.f32.mrb[21].mxu1 }
0x1f79   :  { %v2330_v41 = vmul.f32 0.5, %v5211_v31  ;;  %v2719_v31 = vld [vmem:[%s6475_s2 + $0x318] sm:$0xff]  ;;  %v2721_v35 = vld [vmem:[%s6475_s2 + $0x328] sm:$0xff] }
0x1f7b   :  { %v2331_v36 = vadd.f32 0.5, %v2330_v41 }
0x1f7d   :  { %v2336_v57 = vmul.f32 %v2334_v43, %v2331_v36  ;;  %v2718_v43 = vld [vmem:[%s6475_s2 + $0x310] sm:$0xff] }
0x1f7f   :  { %v2337_v63 = vadd.f32 %v2336_v57, %v5935_v9  ;;  %v4838_v9 = vpack.c.bf16 %v2365_v38, %v2364_v8  ;;  %v2720_v57 = vld [vmem:[%s6475_s2 + $0x320] sm:$0xff]  ;;  %v6137_v8 = vpack.c.bf16 %v2725_v60, %v2723_v22 }
0x1f80   :  { %v2724_v38 = vld [vmem:[%s6475_s2 + $0x340] sm:$0xff] }
0x1f81   :  { %5212 = vtanh.f32 %v2337_v63  ;;  %4839 = vmatpush3.bf16.msra.mxu0 %v4838_v9  ;;  %v6124_v63 = vpack.c.bf16 %v2720_v57, %v2718_v43  ;;  %v6145_v9 = vpack.c.bf16 %v2724_v38, %v2722_v45 }
0x1f82   :  { %4840 = vmatprep.subr.bf16.mxu0 %v5266_v32 }
0x1f85   :  { %4842 = vmatpush3.bf16.msra.mxu0 %v4841_v50 }
0x1f86   :  { %4843 = vmatprep.subr.bf16.mxu0 %v5266_v32 }
0x1f89   :  { %4845 = vmatpush3.bf16.msra.mxu0 %v4844_v44 }
0x1f8a   :  { %4858 = vmatprep.subr.bf16.mxu0 %v5266_v32 }
0x1f8b   :  { %v5213_v47 = vpop.eup %5212 }
0x1f8c   :  { %v2340_v42 = vrot.slane %v5213_v47, 2 }
0x1f8e   :  { %v2342_v48 = vsub.f32 %v2248_v51, %v2340_v42  ;;  %v4859_v51 = vpack.c.bf16 %v2529_v62, %v2528_v0 }
0x1f90   :  { %v2344_v56 = vrot.slane %v2342_v48, 6 }
0x1f92   :  { %2345 = vrot.lane.b32.xlu0 %v2344_v56, %s5264_s5 }
0x2004   :  { %v2346_v1 = vpop.permute.xlu0 %2345 }
0x2005   :  { %v2348_v59 = vmul.f32 %v2346_v1, %v2331_v36  ;;  %v6114_v36 = vpack.c.bf16 %v2721_v35, %v2719_v31 }
0x2007   :  { %2350 = vrot.lane.b32.xlu1 %v2348_v59, %s5264_s5 }
0x2079   :  { %v2351_v18 = vpop.permute.xlu1 %2350 }
0x207a   :  { %v2353_v21 = vadd.f32 %v5213_v47, %v2351_v18  ;;  %v2530_v47 = vld [vmem:[%s6476_s3 + $0x5] ss:$0 sm:$0xff] }
0x207c   :  { %v2371_v46 = vrot.slane %v2353_v21, 6  ;;  %v4164_v21 = vld [vmem:[%s6476_s3 + $0x6] ss:$8 sm:$0x3] }
0x207d   :  { %v2635_v0 = vrot.slane %v4164_v21, %v5461_v19 }
0x207e   :  { %4366 = vmatmul.mubr.msk.f32.vlgmr.msra.gmra.mrb[20].mxu0 %vm297_vm5, %v2371_v46  ;;  %v2631_v46 = vrot.slane %v4164_v21, %v5446_v6 }
0x207f   :  { %4391 = vmatprep.mubr.msk.f32.mxu0 %vm5267_vm7, %v5263_v49  ;;  %4860 = vmatpush3.bf16.msra.mxu0 %v4859_v51 }
0x2080   :  { %4866 = vmatprep.subr.bf16.mxu0 %v6080_v24 }
0x2151   :  { %v2440_v11 = vpop.f32.mrb[20].mxu0 }
0x2152   :  { %v2513_v54 = vadd.f32 %v2512_v25, %v2440_v11  ;;  %v4367_v16 = vpop.f32.mrb[21].mxu0  ;;  %v2716_v25 = vld [vmem:[%s6475_s2 + $0x300] sm:$0xff] }
0x2153   :  { %v6110_v41 = vpack.c.bf16 %v2716_v25, %v2714_v26 }
0x2154   :  { %v6037_v30 = vadd.f32 %v2516_v53, %v2513_v54 }
0x2156   :  { %v2519_v2 = vmul.f32 0.5, %v6037_v30 }
0x2158   :  { %v2520_v58 = vmul.f32 1.442695, %v2519_v2 }
0x215a   :  { %5214 = vpow2.f32 %v2520_v58 }
0x2164   :  { %v5215_v61 = vpop.eup %5214 }
0x2165   :  { %2523 = vrot.lane.b32.xlu0 %v5215_v61, %s5257_s29 }
0x21d7   :  { %v2524_v14 = vpop.permute.xlu0 %2523 }
0x21d8   :  { %v2526_v15 = vmul.f32 %v2524_v14, %v2518_v13 }
0x21da   :  { %v6063_v17 = vadd.f32 %v2526_v15, %v6037_v30 }
0x21dc   :  { %4392 = vmatmul.mubr.msk.f32.vlgmr.msra.gmra.mrb[22].mxu0 %vm2531_vm8, %v6063_v17  ;;  %4165 = vmatmul.mubr.msk.f32.vlgmr.msra.gmra.mrb[22].mxu1 %vm2531_vm8, %v6063_v17 }
0x21dd   :  { %2793 = vmatprep.mubr.f32.mxu0 %v5263_v49  ;;  %2887 = vmatprep.mubr.f32.mxu1 %v5263_v49 }
0x21de   :  { %4868 = vmatpush1.bf16.msra.mxu0 %v6091_v29  ;;  %4884 = vmatpush1.bf16.msra.mxu1 %v6091_v29 }
0x21df   :  { %4870 = vmatprep.subr.bf16.mxu0 %v6093_v33  ;;  %4886 = vmatprep.subr.bf16.mxu1 %v6093_v33 }
0x21e2   :  { %4872 = vmatpush1.bf16.msra.mxu0 %v6110_v41  ;;  %4888 = vmatpush1.bf16.msra.mxu1 %v6110_v41 }
0x21e3   :  { %4874 = vmatprep.subr.bf16.mxu0 %v6114_v36  ;;  %4890 = vmatprep.subr.bf16.mxu1 %v6114_v36 }
0x21e6   :  { %4876 = vmatpush1.bf16.msra.mxu0 %v6124_v63  ;;  %4892 = vmatpush1.bf16.msra.mxu1 %v6124_v63 }
0x21e7   :  { %4878 = vmatprep.subr.bf16.mxu0 %v6137_v8  ;;  %4894 = vmatprep.subr.bf16.mxu1 %v6137_v8 }
0x21ea   :  { %4880 = vmatpush1.bf16.msra.mxu0 %v6145_v9  ;;  %4896 = vmatpush1.bf16.msra.mxu1 %v6145_v9 }
0x21eb   :  { %4898 = vmatprep.subr.bf16.mxu0 %v6080_v24  ;;  %4914 = vmatprep.subr.bf16.mxu1 %v6080_v24 }
0x22af   :  { %v2601_v40 = vpop.f32.mrb[22].mxu0  ;;  %v2704_v39 = vpop.f32.mrb[22].mxu1 }
0x22b0   :  { %v2602_v42 = vadd.f32 %v2601_v40, %v2530_v47  ;;  %v4393_v48 = vpop.f32.mrb[23].mxu0  ;;  %v2706_v50 = vpop.f32.mrb[23].mxu1  ;;  %v6174_v11 = vadd.f32 %v2704_v39, %v2631_v46 }
0x22b1   :  { %v6184_v4 = vadd.f32 %v2706_v50, %v2635_v0 }
0x22b2   :  { %2611 = vrot.lane.b32.xlu1 %v2602_v42, %s5265_s6  ;;  %v2606_v56 = vrot.slane %v2602_v42, 1 }
0x22b4   :  { %2607 = vrot.lane.b32.xlu0 %v2606_v56, %s5256_s28 }
0x2324   :  { %v2612_v5 = vpop.permute.xlu1 %2611 }
0x2325   :  { %v2615_v23 = vsel %vm178_vm3, %v2612_v5, %v2606_v56 }
0x2326   :  { %v2617_v44 = vrot.slane %v2615_v23, 7  ;;  %v2608_v1 = vpop.permute.xlu0 %2607 }
0x2327   :  { %v2610_v59 = vsel %vm178_vm3, %v2602_v42, %v2608_v1 }
0x2328   :  { %v2620_v18 = vsel %vm2619_vm9, %v2610_v59, %v2617_v44 }
0x2329   :  { %4166 = vmatmul.mubr.msk.f32.vlgmr.msra.gmra.mrb[24].mxu0 %vm297_vm5, %v2620_v18 }
0x232a   :  { %4900 = vmatpush1.bf16.msra.mxu0 %v6091_v29  ;;  %2981 = vmatprep.mubr.f32.mxu0 %v5263_v49 }
0x232b   :  { %4902 = vmatprep.subr.bf16.mxu0 %v6093_v33 }
0x232e   :  { %4904 = vmatpush1.bf16.msra.mxu0 %v6110_v41 }
0x232f   :  { %4906 = vmatprep.subr.bf16.mxu0 %v6114_v36 }
0x2332   :  { %4908 = vmatpush1.bf16.msra.mxu0 %v6124_v63 }
0x2333   :  { %4910 = vmatprep.subr.bf16.mxu0 %v6137_v8 }
0x2336   :  { %4912 = vmatpush1.bf16.msra.mxu0 %v6145_v9 }
0x2337   :  { %4930 = vmatprep.subr.bf16.mxu0 %v6080_v24 }
0x23fc   :  { %v2795_v53 = vpop.f32.mrb[24].mxu0 }
0x23fd   :  { %v2800_v54 = vadd.f32 %v2795_v53, %v6174_v11  ;;  %v2797_v16 = vpop.f32.mrb[25].mxu0 }
0x23fe   :  { %v2805_v6 = vadd.f32 %v2797_v16, %v6180_v52 }
0x23ff   :  { %v2801_v2 = vmul.f32 0.5, %v2800_v54 }
0x2401   :  { %5216 = vtanh.f32 %v2801_v2 }
0x240b   :  { %v5217_v34 = vpop.eup %5216 }
0x240c   :  { %v2803_v62 = vmul.f32 0.5, %v5217_v34 }
0x240e   :  { %v2804_v55 = vadd.f32 0.5, %v2803_v62 }
0x2410   :  { %v2806_v58 = vmul.f32 %v2805_v6, %v2804_v55 }
0x2412   :  { %v2807_v51 = vadd.f32 %v2806_v58, %v6184_v4 }
0x2414   :  { %5218 = vtanh.f32 %v2807_v51 }
0x241e   :  { %v5219_v7 = vpop.eup %5218 }
0x241f   :  { %v2809_v3 = vsub.f32 %v2620_v18, %v5219_v7 }
0x2421   :  { %2811 = vrot.lane.b32.xlu1 %v2809_v3, %s5264_s5 }
0x2493   :  { %v2812_v61 = vpop.permute.xlu1 %2811 }
0x2494   :  { %v2814_v13 = vmul.f32 %v2812_v61, %v2804_v55 }
0x2496   :  { %2816 = vrot.lane.b32.xlu0 %v2814_v13, %s5264_s5 }
0x2508   :  { %v2817_v14 = vpop.permute.xlu0 %2816 }
0x2509   :  { %v6189_v19 = vadd.f32 %v5219_v7, %v2817_v14 }
0x250b   :  { %4167 = vmatmul.mubr.msk.f32.vlgmr.msra.gmra.mrb[24].mxu1 %vm297_vm5, %v6189_v19 }
0x250c   :  { %4916 = vmatpush1.bf16.msra.mxu1 %v6091_v29  ;;  %3075 = vmatprep.mubr.f32.mxu1 %v5263_v49 }
0x250d   :  { %4918 = vmatprep.subr.bf16.mxu1 %v6093_v33 }
0x2510   :  { %4920 = vmatpush1.bf16.msra.mxu1 %v6110_v41 }
0x2511   :  { %4922 = vmatprep.subr.bf16.mxu1 %v6114_v36 }
0x2514   :  { %4924 = vmatpush1.bf16.msra.mxu1 %v6124_v63 }
0x2515   :  { %4926 = vmatprep.subr.bf16.mxu1 %v6137_v8 }
0x2518   :  { %4928 = vmatpush1.bf16.msra.mxu1 %v6145_v9 }
0x2519   :  { %4946 = vmatprep.subr.bf16.mxu1 %v6080_v24 }
0x25de   :  { %v2889_v15 = vpop.f32.mrb[24].mxu1 }
0x25df   :  { %v2894_v20 = vadd.f32 %v2889_v15, %v6174_v11  ;;  %v2891_v37 = vpop.f32.mrb[25].mxu1 }
0x25e0   :  { %v2899_v26 = vadd.f32 %v2891_v37, %v6180_v52 }
0x25e1   :  { %v2895_v10 = vmul.f32 0.5, %v2894_v20 }
0x25e3   :  { %5220 = vtanh.f32 %v2895_v10 }
0x25ed   :  { %v5221_v27 = vpop.eup %5220 }
0x25ee   :  { %v2897_v12 = vmul.f32 0.5, %v5221_v27 }
0x25f0   :  { %v2898_v28 = vadd.f32 0.5, %v2897_v12 }
0x25f2   :  { %v2900_v25 = vmul.f32 %v2899_v26, %v2898_v28 }
0x25f4   :  { %v2901_v31 = vadd.f32 %v2900_v25, %v6184_v4 }
0x25f6   :  { %5222 = vtanh.f32 %v2901_v31 }
0x2600   :  { %v5223_v35 = vpop.eup %5222 }
0x2601   :  { %v2903_v43 = vsub.f32 %v6189_v19, %v5223_v35 }
0x2603   :  { %2905 = vrot.lane.b32.xlu1 %v2903_v43, %s5264_s5 }
0x2675   :  { %v2906_v57 = vpop.permute.xlu1 %2905 }
0x2676   :  { %v2908_v22 = vmul.f32 %v2906_v57, %v2898_v28 }
0x2678   :  { %2910 = vrot.lane.b32.xlu0 %v2908_v22, %s5264_s5 }
0x26ea   :  { %v2911_v60 = vpop.permute.xlu0 %2910 }
0x26eb   :  { %v6208_v45 = vadd.f32 %v5223_v35, %v2911_v60 }
0x26ed   :  { %4168 = vmatmul.mubr.msk.f32.vlgmr.msra.gmra.mrb[26].mxu0 %vm297_vm5, %v6208_v45 }
0x26ee   :  { %4932 = vmatpush1.bf16.msra.mxu0 %v6091_v29  ;;  %3169 = vmatprep.mubr.f32.mxu0 %v5263_v49 }
0x26ef   :  { %4934 = vmatprep.subr.bf16.mxu0 %v6093_v33 }
0x26f2   :  { %4936 = vmatpush1.bf16.msra.mxu0 %v6110_v41 }
0x26f3   :  { %4938 = vmatprep.subr.bf16.mxu0 %v6114_v36 }
0x26f6   :  { %4940 = vmatpush1.bf16.msra.mxu0 %v6124_v63 }
0x26f7   :  { %4942 = vmatprep.subr.bf16.mxu0 %v6137_v8 }
0x26fa   :  { %4944 = vmatpush1.bf16.msra.mxu0 %v6145_v9 }
0x26fb   :  { %4962 = vmatprep.subr.bf16.mxu0 %v6080_v24 }
0x27c0   :  { %v2983_v38 = vpop.f32.mrb[26].mxu0 }
0x27c1   :  { %v2988_v47 = vadd.f32 %v2983_v38, %v6174_v11  ;;  %v2985_v40 = vpop.f32.mrb[27].mxu0 }
0x27c2   :  { %v2993_v56 = vadd.f32 %v2985_v40, %v6180_v52 }
0x27c3   :  { %v2989_v39 = vmul.f32 0.5, %v2988_v47 }
0x27c5   :  { %5224 = vtanh.f32 %v2989_v39 }
0x27cf   :  { %v5225_v42 = vpop.eup %5224 }
0x27d0   :  { %v2991_v48 = vmul.f32 0.5, %v5225_v42 }
0x27d2   :  { %v2992_v50 = vadd.f32 0.5, %v2991_v48 }
0x27d4   :  { %v2994_v5 = vmul.f32 %v2993_v56, %v2992_v50 }
0x27d6   :  { %v2995_v23 = vadd.f32 %v2994_v5, %v6184_v4 }
0x27d8   :  { %5226 = vtanh.f32 %v2995_v23 }
0x27e2   :  { %v5227_v44 = vpop.eup %5226 }
0x27e3   :  { %v2997_v1 = vsub.f32 %v6208_v45, %v5227_v44 }
0x27e5   :  { %2999 = vrot.lane.b32.xlu1 %v2997_v1, %s5264_s5 }
0x2857   :  { %v3000_v59 = vpop.permute.xlu1 %2999 }
0x2858   :  { %v3002_v18 = vmul.f32 %v3000_v59, %v2992_v50 }
0x285a   :  { %3004 = vrot.lane.b32.xlu0 %v3002_v18, %s5264_s5 }
0x28cc   :  { %v3005_v21 = vpop.permute.xlu0 %3004 }
0x28cd   :  { %v6227_v46 = vadd.f32 %v5227_v44, %v3005_v21 }
0x28cf   :  { %4169 = vmatmul.mubr.msk.f32.vlgmr.msra.gmra.mrb[26].mxu1 %vm297_vm5, %v6227_v46 }
0x28d0   :  { %4948 = vmatpush1.bf16.msra.mxu1 %v6091_v29  ;;  %3263 = vmatprep.mubr.f32.mxu1 %v5263_v49 }
0x28d1   :  { %4950 = vmatprep.subr.bf16.mxu1 %v6093_v33 }
0x28d4   :  { %4952 = vmatpush1.bf16.msra.mxu1 %v6110_v41 }
0x28d5   :  { %4954 = vmatprep.subr.bf16.mxu1 %v6114_v36 }
0x28d8   :  { %4956 = vmatpush1.bf16.msra.mxu1 %v6124_v63 }
0x28d9   :  { %4958 = vmatprep.subr.bf16.mxu1 %v6137_v8 }
0x28dc   :  { %4960 = vmatpush1.bf16.msra.mxu1 %v6145_v9 }
0x28dd   :  { %4978 = vmatprep.subr.bf16.mxu1 %v6080_v24 }
0x29a2   :  { %v3077_v53 = vpop.f32.mrb[26].mxu1 }
0x29a3   :  { %v3082_v54 = vadd.f32 %v3077_v53, %v6174_v11  ;;  %v3079_v16 = vpop.f32.mrb[27].mxu1 }
0x29a4   :  { %v3087_v55 = vadd.f32 %v3079_v16, %v6180_v52 }
0x29a5   :  { %v3083_v2 = vmul.f32 0.5, %v3082_v54 }
0x29a7   :  { %5228 = vtanh.f32 %v3083_v2 }
0x29b1   :  { %v5229_v34 = vpop.eup %5228 }
0x29b2   :  { %v3085_v0 = vmul.f32 0.5, %v5229_v34 }
0x29b4   :  { %v3086_v62 = vadd.f32 0.5, %v3085_v0 }
0x29b6   :  { %v3088_v6 = vmul.f32 %v3087_v55, %v3086_v62  ;;  %v3479_v55 = vld [vmem:[%s6475_s2 + $0x360] sm:$0xff] }
0x29b8   :  { %v3089_v58 = vadd.f32 %v3088_v6, %v6184_v4 }
0x29ba   :  { %5230 = vtanh.f32 %v3089_v58  ;;  %v3480_v58 = vld [vmem:[%s6475_s2 + $0x370] sm:$0xff] }
0x29c4   :  { %v5231_v51 = vpop.eup %5230 }
0x29c5   :  { %v3091_v7 = vsub.f32 %v6227_v46, %v5231_v51 }
0x29c7   :  { %3093 = vrot.lane.b32.xlu1 %v3091_v7, %s5264_s5 }
0x2a39   :  { %v3094_v24 = vpop.permute.xlu1 %3093 }
0x2a3a   :  { %v3096_v3 = vmul.f32 %v3094_v24, %v3086_v62  ;;  %v3478_v62 = vld [vmem:[%s6475_s2 + $0x350] sm:$0xff] }
0x2a3b   :  { %v6301_v6 = vpack.c.bf16 %v3479_v55, %v3478_v62  ;;  %v3482_v24 = vld [vmem:[%s6475_s2 + $0x390] sm:$0xff] }
0x2a3c   :  { %3098 = vrot.lane.b32.xlu0 %v3096_v3, %s5264_s5  ;;  %v3483_v3 = vld [vmem:[%s6475_s2 + $0x3a0] sm:$0xff] }
0x2aae   :  { %v3099_v61 = vpop.permute.xlu0 %3098 }
0x2aaf   :  { %v6246_v13 = vadd.f32 %v5231_v51, %v3099_v61  ;;  %v3481_v51 = vld [vmem:[%s6475_s2 + $0x380] sm:$0xff]  ;;  %v6321_v61 = vpack.c.bf16 %v3483_v3, %v3482_v24 }
0x2ab0   :  { %v6311_v7 = vpack.c.bf16 %v3481_v51, %v3480_v58 }
0x2ab1   :  { %4170 = vmatmul.mubr.msk.f32.vlgmr.msra.gmra.mrb[28].mxu0 %vm297_vm5, %v6246_v13 }
0x2ab2   :  { %4964 = vmatpush1.bf16.msra.mxu0 %v6091_v29  ;;  %3357 = vmatprep.mubr.f32.mxu0 %v5263_v49 }
0x2ab3   :  { %4966 = vmatprep.subr.bf16.mxu0 %v6093_v33 }
0x2ab6   :  { %4968 = vmatpush1.bf16.msra.mxu0 %v6110_v41 }
0x2ab7   :  { %4970 = vmatprep.subr.bf16.mxu0 %v6114_v36 }
0x2aba   :  { %4972 = vmatpush1.bf16.msra.mxu0 %v6124_v63 }
0x2abb   :  { %4974 = vmatprep.subr.bf16.mxu0 %v6137_v8 }
0x2abe   :  { %4976 = vmatpush1.bf16.msra.mxu0 %v6145_v9 }
0x2abf   :  { %4993 = vmatprep.subr.bf16.mxu0 %v5266_v32 }
0x2b84   :  { %v3171_v14 = vpop.f32.mrb[28].mxu0 }
0x2b85   :  { %v3176_v15 = vadd.f32 %v3171_v14, %v6174_v11  ;;  %v3173_v20 = vpop.f32.mrb[29].mxu0 }
0x2b86   :  { %v3181_v28 = vadd.f32 %v3173_v20, %v6180_v52  ;;  %v3484_v20 = vld [vmem:[%s6475_s2 + $0x3b0] sm:$0xff] }
0x2b87   :  { %v3177_v37 = vmul.f32 0.5, %v3176_v15 }
0x2b89   :  { %5232 = vtanh.f32 %v3177_v37  ;;  %v3485_v37 = vld [vmem:[%s6475_s2 + $0x3c0] sm:$0xff] }
0x2b93   :  { %v5233_v10 = vpop.eup %5232 }
0x2b94   :  { %v3179_v27 = vmul.f32 0.5, %v5233_v10  ;;  %v6332_v10 = vpack.c.bf16 %v3485_v37, %v3484_v20 }
0x2b96   :  { %v3180_v12 = vadd.f32 0.5, %v3179_v27 }
0x2b98   :  { %v3182_v26 = vmul.f32 %v3181_v28, %v3180_v12 }
0x2b9a   :  { %v3183_v25 = vadd.f32 %v3182_v26, %v6184_v4 }
0x2b9c   :  { %5234 = vtanh.f32 %v3183_v25 }
0x2ba6   :  { %v5235_v31 = vpop.eup %5234 }
0x2ba7   :  { %v3185_v35 = vsub.f32 %v6246_v13, %v5235_v31 }
0x2ba9   :  { %3187 = vrot.lane.b32.xlu1 %v3185_v35, %s5264_s5 }
0x2c1b   :  { %v3188_v43 = vpop.permute.xlu1 %3187 }
0x2c1c   :  { %v3190_v57 = vmul.f32 %v3188_v43, %v3180_v12 }
0x2c1e   :  { %3192 = vrot.lane.b32.xlu0 %v3190_v57, %s5264_s5 }
0x2c90   :  { %v3193_v22 = vpop.permute.xlu0 %3192 }
0x2c91   :  { %v6265_v60 = vadd.f32 %v5235_v31, %v3193_v22 }
0x2c93   :  { %4171 = vmatmul.mubr.msk.f32.vlgmr.msra.gmra.mrb[28].mxu1 %vm297_vm5, %v6265_v60  ;;  %v3709_v26 = vsel %vm178_vm3, %v6246_v13, %v6265_v60 }
0x2c94   :  { %4980 = vmatpush1.bf16.msra.mxu1 %v6091_v29  ;;  %3451 = vmatprep.mubr.f32.mxu1 %v5263_v49 }
0x2c95   :  { %4982 = vmatprep.subr.bf16.mxu1 %v6093_v33 }
0x2c98   :  { %4984 = vmatpush1.bf16.msra.mxu1 %v6110_v41 }
0x2c99   :  { %4986 = vmatprep.subr.bf16.mxu1 %v6114_v36 }
0x2c9c   :  { %4988 = vmatpush1.bf16.msra.mxu1 %v6124_v63 }
0x2c9d   :  { %4990 = vmatprep.subr.bf16.mxu1 %v6137_v8 }
0x2ca0   :  { %4992 = vmatpush1.bf16.msra.mxu1 %v6145_v9 }
0x2ca1   :  { %5005 = vmatprep.subr.bf16.mxu1 %v5266_v32 }
0x2d66   :  { %v3265_v38 = vpop.f32.mrb[28].mxu1 }
0x2d67   :  { %v3270_v47 = vadd.f32 %v3265_v38, %v6174_v11  ;;  %v3267_v29 = vpop.f32.mrb[29].mxu1 }
0x2d68   :  { %v3275_v41 = vadd.f32 %v3267_v29, %v6180_v52 }
0x2d69   :  { %v3271_v40 = vmul.f32 0.5, %v3270_v47 }
0x2d6b   :  { %5236 = vtanh.f32 %v3271_v40 }
0x2d75   :  { %v5237_v39 = vpop.eup %5236 }
0x2d76   :  { %v3273_v33 = vmul.f32 0.5, %v5237_v39 }
0x2d78   :  { %v3274_v42 = vadd.f32 0.5, %v3273_v33 }
0x2d7a   :  { %v3276_v36 = vmul.f32 %v3275_v41, %v3274_v42 }
0x2d7c   :  { %v3277_v63 = vadd.f32 %v3276_v36, %v6184_v4 }
0x2d7e   :  { %5238 = vtanh.f32 %v3277_v63 }
0x2d88   :  { %v5239_v8 = vpop.eup %5238 }
0x2d89   :  { %v3279_v9 = vsub.f32 %v6265_v60, %v5239_v8 }
0x2d8b   :  { %3281 = vrot.lane.b32.xlu1 %v3279_v9, %s5264_s5 }
0x2dfd   :  { %v3282_v48 = vpop.permute.xlu1 %3281 }
0x2dfe   :  { %v3284_v50 = vmul.f32 %v3282_v48, %v3274_v42 }
0x2e00   :  { %3286 = vrot.lane.b32.xlu0 %v3284_v50, %s5264_s5 }
0x2e72   :  { %v3287_v56 = vpop.permute.xlu0 %3286 }
0x2e73   :  { %v6284_v5 = vadd.f32 %v5239_v8, %v3287_v56 }
0x2e75   :  { %4172 = vmatmul.mubr.msk.f32.vlgmr.msra.gmra.mrb[30].mxu0 %vm297_vm5, %v6284_v5  ;;  %v3857_v25 = vsel %vm178_vm3, %v6284_v5, %v6227_v46 }
0x2e76   :  { %4410 = vmatprep.mubr.msk.f32.mxu0 %vm5267_vm7, %v5263_v49  ;;  %4995 = vmatpush3.bf16.msra.mxu0 %v6301_v6 }
0x2e77   :  { %4996 = vmatprep.subr.bf16.mxu0 %v5266_v32 }
0x2e7a   :  { %4998 = vmatpush3.bf16.msra.mxu0 %v6311_v7 }
0x2e7b   :  { %4999 = vmatprep.subr.bf16.mxu0 %v5266_v32 }
0x2e7e   :  { %5001 = vmatpush3.bf16.msra.mxu0 %v6321_v61 }
0x2e7f   :  { %5002 = vmatprep.subr.bf16.mxu0 %v5266_v32 }
0x2e82   :  { %5004 = vmatpush3.bf16.msra.mxu0 %v6332_v10 }
0x2e83   :  { %5017 = vmatprep.subr.bf16.mxu0 %v5266_v32 }
0x2f48   :  { %v3359_v23 = vpop.f32.mrb[30].mxu0 }
0x2f49   :  { %v3364_v44 = vadd.f32 %v3359_v23, %v6174_v11  ;;  %v3361_v1 = vpop.f32.mrb[31].mxu0 }
0x2f4a   :  { %v3369_v54 = vadd.f32 %v3361_v1, %v6180_v52 }
0x2f4b   :  { %v3365_v59 = vmul.f32 0.5, %v3364_v44 }
0x2f4d   :  { %5240 = vtanh.f32 %v3365_v59 }
0x2f57   :  { %v5241_v18 = vpop.eup %5240 }
0x2f58   :  { %v3367_v21 = vmul.f32 0.5, %v5241_v18 }
0x2f5a   :  { %v3368_v53 = vadd.f32 0.5, %v3367_v21 }
0x2f5c   :  { %v3370_v16 = vmul.f32 %v3369_v54, %v3368_v53 }
0x2f5e   :  { %v3371_v2 = vadd.f32 %v3370_v16, %v6184_v4 }
0x2f60   :  { %5242 = vtanh.f32 %v3371_v2 }
0x2f6a   :  { %v5243_v34 = vpop.eup %5242 }
0x2f6b   :  { %v3373_v0 = vsub.f32 %v6284_v5, %v5243_v34 }
0x2f6d   :  { %3375 = vrot.lane.b32.xlu1 %v3373_v0, %s5264_s5 }
0x2fdf   :  { %v3376_v14 = vpop.permute.xlu1 %3375 }
0x2fe0   :  { %v3378_v15 = vmul.f32 %v3376_v14, %v3368_v53 }
0x2fe2   :  { %3380 = vrot.lane.b32.xlu0 %v3378_v15, %s5264_s5 }
0x3054   :  { %v3381_v27 = vpop.permute.xlu0 %3380 }
0x3055   :  { %v6336_v12 = vadd.f32 %v5243_v34, %v3381_v27 }
0x3057   :  { %4173 = vmatmul.mubr.msk.f32.vlgmr.msra.gmra.mrb[30].mxu1 %vm297_vm5, %v6336_v12  ;;  %v3561_v28 = vsel %vm178_vm3, %v6208_v45, %v6336_v12 }
0x3058   :  { %5007 = vmatpush3.bf16.msra.mxu1 %v6301_v6  ;;  %4429 = vmatprep.mubr.msk.f32.mxu1 %vm5267_vm7, %v5263_v49 }
0x3059   :  { %5008 = vmatprep.subr.bf16.mxu1 %v5266_v32 }
0x305c   :  { %5010 = vmatpush3.bf16.msra.mxu1 %v6311_v7 }
0x305d   :  { %5011 = vmatprep.subr.bf16.mxu1 %v5266_v32 }
0x3060   :  { %5013 = vmatpush3.bf16.msra.mxu1 %v6321_v61 }
0x3061   :  { %5014 = vmatprep.subr.bf16.mxu1 %v5266_v32 }
0x3064   :  { %5016 = vmatpush3.bf16.msra.mxu1 %v6332_v10 }
0x3065   :  { %5029 = vmatprep.subr.bf16.mxu1 %v5266_v32 }
0x3067   :  { %4430 = vmatmul.mubr.msk.f32.vlgmr.msra.gmra.mrb[32].mxu1 %vm297_vm5, %v3561_v28 }
0x3068   :  { %5031 = vmatpush3.bf16.msra.mxu1 %v6301_v6  ;;  %4467 = vmatprep.mubr.msk.f32.mxu1 %vm5267_vm7, %v5263_v49 }
0x3069   :  { %5032 = vmatprep.subr.bf16.mxu1 %v5266_v32 }
0x306c   :  { %5034 = vmatpush3.bf16.msra.mxu1 %v6311_v7 }
0x306d   :  { %5035 = vmatprep.subr.bf16.mxu1 %v5266_v32 }
0x3070   :  { %5037 = vmatpush3.bf16.msra.mxu1 %v6321_v61 }
0x3071   :  { %5038 = vmatprep.subr.bf16.mxu1 %v5266_v32 }
0x3074   :  { %5040 = vmatpush3.bf16.msra.mxu1 %v6332_v10 }
0x3075   :  { %5053 = vmatprep.subr.bf16.mxu1 %v5266_v32 }
0x3077   :  { %4468 = vmatmul.mubr.msk.f32.vlgmr.msra.gmra.mrb[34].mxu1 %vm297_vm5, %v3709_v26 }
0x3078   :  { %5055 = vmatpush3.bf16.msra.mxu1 %v6301_v6  ;;  %4505 = vmatprep.mubr.msk.f32.mxu1 %vm5267_vm7, %v5263_v49 }
0x3079   :  { %5056 = vmatprep.subr.bf16.mxu1 %v5266_v32 }
0x307c   :  { %5058 = vmatpush3.bf16.msra.mxu1 %v6311_v7 }
0x307d   :  { %5059 = vmatprep.subr.bf16.mxu1 %v5266_v32 }
0x3080   :  { %5061 = vmatpush3.bf16.msra.mxu1 %v6321_v61 }
0x3081   :  { %5062 = vmatprep.subr.bf16.mxu1 %v5266_v32 }
0x3084   :  { %5064 = vmatpush3.bf16.msra.mxu1 %v6332_v10 }
0x3085   :  { %5077 = vmatprep.subr.bf16.mxu1 %v5266_v32 }
0x3087   :  { %4506 = vmatmul.mubr.msk.f32.vlgmr.msra.gmra.mrb[36].mxu1 %vm297_vm5, %v3857_v25 }
0x3088   :  { %5079 = vmatpush3.bf16.msra.mxu1 %v6301_v6  ;;  %4543 = vmatprep.mubr.msk.f32.mxu1 %vm5267_vm7, %v5263_v49 }
0x3089   :  { %5080 = vmatprep.subr.bf16.mxu1 %v5266_v32 }
0x308c   :  { %5082 = vmatpush3.bf16.msra.mxu1 %v6311_v7 }
0x308d   :  { %5083 = vmatprep.subr.bf16.mxu1 %v5266_v32 }
0x3090   :  { %5085 = vmatpush3.bf16.msra.mxu1 %v6321_v61 }
0x3091   :  { %5086 = vmatprep.subr.bf16.mxu1 %v5266_v32 }
0x3094   :  { %5088 = vmatpush3.bf16.msra.mxu1 %v6332_v10 }
0x312a   :  { %v3453_v31 = vpop.f32.mrb[30].mxu1 }
0x312b   :  { %v3458_v35 = vadd.f32 %v3453_v31, %v6174_v11  ;;  %v3455_v43 = vpop.f32.mrb[31].mxu1  ;;  %v6398_v11 = vld [vmem:[%s6476_s3 + $0x10] ss:$0 sm:$0xff]  ;;  %s5268_s3 = smov 48  }
0x312c   :  { %v3463_v39 = vadd.f32 %v3455_v43, %v6180_v52 }
0x312d   :  { %v3459_v57 = vmul.f32 0.5, %v3458_v35 }
0x312f   :  { %5244 = vtanh.f32 %v3459_v57 }
0x3139   :  { %v5245_v22 = vpop.eup %5244 }
0x313a   :  { %v3461_v38 = vmul.f32 0.5, %v5245_v22  ;;  %v3631_v47 = vpop.f32.mrb[32].mxu1 }
0x313b   :  { %v4431_v29 = vpop.f32.mrb[33].mxu1  ;;  %v3632_v9 = vadd.f32 %v3631_v47, %v6398_v11 }
0x313c   :  { %v3462_v40 = vadd.f32 0.5, %v3461_v38 }
0x313e   :  { %v3464_v33 = vmul.f32 %v3463_v39, %v3462_v40 }
0x3140   :  { %v3465_v42 = vadd.f32 %v3464_v33, %v6184_v4 }
0x3142   :  { %5246 = vtanh.f32 %v3465_v42 }
0x314a   :  { %v3779_v41 = vpop.f32.mrb[34].mxu1 }
0x314b   :  { %v4469_v36 = vpop.f32.mrb[35].mxu1  ;;  %v3780_v52 = vadd.f32 %v3779_v41, %v6398_v11 }
0x314c   :  { %v5247_v63 = vpop.eup %5246 }
0x314d   :  { %v3467_v8 = vsub.f32 %v6336_v12, %v5247_v63 }
0x314f   :  { %3469 = vrot.lane.b32.xlu1 %v3467_v8, %s5264_s5 }
0x3153   :  { %4080 = vrot.lane.b32.xlu1 %v3632_v9, %s5249_s20 }
0x3157   :  { %4088 = vrot.lane.b32.xlu1 %v3780_v52, %s5253_s23 }
0x315a   :  { %v3927_v4 = vpop.f32.mrb[36].mxu1 }
0x315b   :  { %v3928_v48 = vadd.f32 %v3927_v4, %v6398_v11  ;;  %v4507_v50 = vpop.f32.mrb[37].mxu1 }
0x315d   :  { %4096 = vrot.lane.b32.xlu1 %v3928_v48, %s5250_s0 }
0x31c1   :  { %v3470_v56 = vpop.permute.xlu1 %3469 }
0x31c2   :  { %v3472_v23 = vmul.f32 %v3470_v56, %v3462_v40 }
0x31c4   :  { %3474 = vrot.lane.b32.xlu0 %v3472_v23, %s5264_s5 }
0x3236   :  { %v3475_v44 = vpop.permute.xlu0 %3474 }
0x3237   :  { %v3477_v1 = vadd.f32 %v5247_v63, %v3475_v44 }
0x3239   :  { %v3487_v59 = vsel %vm178_vm3, %v6189_v19, %v3477_v1  ;;  %v4005_v18 = vsel %vm178_vm3, %v3477_v1, %v6189_v19  ;;  %v3635_v19 = vsel %vm178_vm3, %v6227_v46, %v6284_v5  ;;  %v3783_v46 = vsel %vm178_vm3, %v6265_v60, %v6246_v13 }
0x323a   :  { %4411 = vmatmul.mubr.msk.f32.vlgmr.msra.gmra.mrb[32].mxu0 %vm297_vm5, %v3487_v59  ;;  %4544 = vmatmul.mubr.msk.f32.vlgmr.msra.gmra.mrb[38].mxu1 %vm297_vm5, %v4005_v18  ;;  %v3931_v13 = vsel %vm178_vm3, %v6336_v12, %v6208_v45 }
0x323b   :  { %5019 = vmatpush3.bf16.msra.mxu0 %v6301_v6  ;;  %4448 = vmatprep.mubr.msk.f32.mxu0 %vm5267_vm7, %v5263_v49 }
0x323c   :  { %5020 = vmatprep.subr.bf16.mxu0 %v5266_v32 }
0x323f   :  { %5022 = vmatpush3.bf16.msra.mxu0 %v6311_v7 }
0x3240   :  { %5023 = vmatprep.subr.bf16.mxu0 %v5266_v32 }
0x3243   :  { %5025 = vmatpush3.bf16.msra.mxu0 %v6321_v61 }
0x3244   :  { %5026 = vmatprep.subr.bf16.mxu0 %v5266_v32 }
0x3247   :  { %5028 = vmatpush3.bf16.msra.mxu0 %v6332_v10 }
0x3248   :  { %5041 = vmatprep.subr.bf16.mxu0 %v5266_v32 }
0x324a   :  { %4449 = vmatmul.mubr.msk.f32.vlgmr.msra.gmra.mrb[34].mxu0 %vm297_vm5, %v3635_v19 }
0x324b   :  { %5043 = vmatpush3.bf16.msra.mxu0 %v6301_v6  ;;  %4486 = vmatprep.mubr.msk.f32.mxu0 %vm5267_vm7, %v5263_v49 }
0x324c   :  { %5044 = vmatprep.subr.bf16.mxu0 %v5266_v32 }
0x324f   :  { %5046 = vmatpush3.bf16.msra.mxu0 %v6311_v7 }
0x3250   :  { %5047 = vmatprep.subr.bf16.mxu0 %v5266_v32 }
0x3253   :  { %5049 = vmatpush3.bf16.msra.mxu0 %v6321_v61 }
0x3254   :  { %5050 = vmatprep.subr.bf16.mxu0 %v5266_v32 }
0x3257   :  { %5052 = vmatpush3.bf16.msra.mxu0 %v6332_v10 }
0x3258   :  { %5065 = vmatprep.subr.bf16.mxu0 %v5266_v32 }
0x325a   :  { %4487 = vmatmul.mubr.msk.f32.vlgmr.msra.gmra.mrb[36].mxu0 %vm297_vm5, %v3783_v46 }
0x325b   :  { %5067 = vmatpush3.bf16.msra.mxu0 %v6301_v6  ;;  %4524 = vmatprep.mubr.msk.f32.mxu0 %vm5267_vm7, %v5263_v49 }
0x325c   :  { %5068 = vmatprep.subr.bf16.mxu0 %v5266_v32 }
0x325f   :  { %5070 = vmatpush3.bf16.msra.mxu0 %v6311_v7 }
0x3260   :  { %5071 = vmatprep.subr.bf16.mxu0 %v5266_v32 }
0x3263   :  { %5073 = vmatpush3.bf16.msra.mxu0 %v6321_v61 }
0x3264   :  { %5074 = vmatprep.subr.bf16.mxu0 %v5266_v32 }
0x3267   :  { %5076 = vmatpush3.bf16.msra.mxu0 %v6332_v10 }
0x326a   :  { %4525 = vmatmul.mubr.msk.f32.vlgmr.msra.gmra.mrb[38].mxu0 %vm297_vm5, %v3931_v13 }
0x330d   :  { %v3557_v60 = vpop.f32.mrb[32].mxu0  ;;  %v4075_v49 = vpop.f32.mrb[38].mxu1 }
0x330e   :  { %v4076_v5 = vadd.f32 %v4075_v49, %v6398_v11  ;;  %v4412_v21 = vpop.f32.mrb[33].mxu0  ;;  %v4545_v53 = vpop.f32.mrb[39].mxu1  ;;  %v3558_v6 = vadd.f32 %v3557_v60, %v6398_v11 }
0x3310   :  { %4104 = vrot.lane.b32.xlu1 %v4076_v5, %s5255_s27 }
0x3314   :  { %4123 = vrot.lane.b32.xlu1 %v6037_v30, %s5268_s3  ;;  %v4081_v30 = vpop.permute.xlu1 %4080 }
0x3315   :  { %v4107_v7 = vsel %vm82_vm4, %v3558_v6, %v4081_v30 }
0x3318   :  { %v4089_v58 = vpop.permute.xlu1 %4088 }
0x331c   :  { %v4097_v61 = vpop.permute.xlu1 %4096 }
0x331d   :  { %v3705_v32 = vpop.f32.mrb[34].mxu0 }
0x331e   :  { %v3706_v54 = vadd.f32 %v3705_v32, %v6398_v11  ;;  %v4450_v16 = vpop.f32.mrb[35].mxu0 }
0x3320   :  { %4084 = vrot.lane.b32.xlu0 %v3706_v54, %s5251_s21 }
0x332d   :  { %v3853_v45 = vpop.f32.mrb[36].mxu0 }
0x332e   :  { %v3854_v2 = vadd.f32 %v3853_v45, %v6398_v11  ;;  %v4488_v34 = vpop.f32.mrb[37].mxu0 }
0x3330   :  { %4092 = vrot.lane.b32.xlu0 %v3854_v2, %s5248_s19 }
0x333d   :  { %v4001_v0 = vpop.f32.mrb[38].mxu0 }
0x333e   :  { %v4002_v62 = vadd.f32 %v4001_v0, %v6398_v11  ;;  %v4526_v55 = vpop.f32.mrb[39].mxu0 }
0x3340   :  { %4100 = vrot.lane.b32.xlu0 %v4002_v62, %s5252_s22 }
0x3344   :  { %4119 = vrot.lane.b32.xlu0 %v6063_v17, %s5256_s28 }
0x3382   :  { %v4105_v20 = vpop.permute.xlu1 %4104 }
0x3386   :  { %v4124_v28 = vpop.permute.xlu1 %4123 }
0x3392   :  { %v4085_v51 = vpop.permute.xlu0 %4084 }
0x3393   :  { %v4109_v24 = vsel %vm4108_vm10, %v4107_v7, %v4085_v51 }
0x3394   :  { %v4111_v14 = vsel %vm4110_vm11, %v4109_v24, %v4089_v58 }
0x33a2   :  { %v4093_v3 = vpop.permute.xlu0 %4092 }
0x33a3   :  { %v4112_v15 = vsel %vm2531_vm8, %v4111_v14, %v4093_v3 }
0x33a4   :  { %v4114_v17 = vsel %vm4113_vm12, %v4112_v15, %v4097_v61 }
0x33b2   :  { %v4101_v37 = vpop.permute.xlu0 %4100 }
0x33b3   :  { %v4116_v10 = vsel %vm4115_vm13, %v4114_v17, %v4101_v37 }
0x33b4   :  { %v4118_v12 = vsel %vm4117_vm14, %v4116_v10, %v4105_v20 }
0x33b6   :  { %v4120_v27 = vpop.permute.xlu0 %4119 }
0x33b7   :  { %v4126_v26 = vsel %vm178_vm3, %v4118_v12, %v4120_v27 }
0x33b8   :  { %v4128_v25 = vsel %vm4127_vm15, %v4126_v26, %v4124_v28 }
0x33b9   :  { %v4129_v31 = vsel %vm297_vm5, %v4128_v25, %v4124_v28 }
0x33ba   :  { %4131 = vst.msk [vmem:[%s6478_s4] sm:$0x3] %vm4130_vm0, %v4129_v31 }

</bundles_post_ra>
